<compile_context>
chip_gen: v7x
topology: tpu7x:2x2x1
jax: 0.10.0
libtpu: 0.0.40
codegen_flags: <defaults>
</compile_context>

<pallas_src>
import numpy as np
import jax
import jax.numpy as jnp
from jax.experimental import pallas as pl
from jax.experimental.pallas import tpu as pltpu

# ----------------------- configuration (synthetic) -------------------------
B = 2              # batch
H = 16             # lattice height
W = 16             # lattice width
HW = H * W         # 256 lanes per flattened field
HIDDEN = 4         # hidden channels of the CNN "net"
N_MIX = 2          # mixture components (s channels); net outputs N_MIX + 1
MASK_MU = 1
MASK_OFF = 0
TWO_PI = 2.0 * np.pi
INV_TWO_PI = 1.0 / TWO_PI
LEAKY_SLOPE = 0.01

assert (W & (W - 1)) == 0, "kernel mask/iota tricks assume W is a power of two"
assert H % 4 == 0 and W % 4 == 0

# flat SMEM parameter buffer layout: [w1 | b1 | w2 | b2], conv weights
# re-packed to [ci, dy, dx, co] (matches the fused tap->MAC loop order).
W1_OFF = 0
B1_OFF = W1_OFF + 2 * 9 * HIDDEN
W2_OFF = B1_OFF + HIDDEN
B2_OFF = W2_OFF + HIDDEN * 9 * (N_MIX + 1)
N_PARAMS = B2_OFF + (N_MIX + 1)


# ----------------------------- mask helpers (host / reference only) ---------
def _single_stripes(shape, mu, off):
    m = np.zeros(shape, dtype=np.float32)
    if mu == 0:
        m[:, 0::4] = 1.0
    else:
        m[0::4, :] = 1.0
    return np.roll(m, off, axis=1 - mu)


def _double_stripes(shape, mu, off):
    m = np.zeros(shape, dtype=np.float32)
    if mu == 0:
        m[:, 0::4] = 1.0
        m[:, 1::4] = 1.0
    else:
        m[0::4, :] = 1.0
        m[1::4, :] = 1.0
    return np.roll(m, off, axis=1 - mu)


def plaquette_masks(shape, mu, off):
    frozen = _double_stripes(shape, mu, off + 1)
    active = _single_stripes(shape, mu, off)
    passive = 1.0 - frozen - active
    return active, passive, frozen


# --------------------------- parameter setup --------------------------------
def init_net_params(key):
    k1, k2, k3, k4 = jax.random.split(key, 4)
    w1 = 0.3 * jax.random.normal(k1, (HIDDEN, 2, 3, 3), jnp.float32)
    b1 = 0.1 * jax.random.normal(k2, (HIDDEN,), jnp.float32)
    w2 = 0.3 * jax.random.normal(k3, (N_MIX + 1, HIDDEN, 3, 3), jnp.float32)
    b2 = 0.1 * jax.random.normal(k4, (N_MIX + 1,), jnp.float32)
    return w1, b1, w2, b2


def pack_params_for_kernel(w1, b1, w2, b2):
    """Merge the ~0.75 KB of conv parameters into ONE flat f32 SMEM buffer.
    Conv weights are re-packed from OIHW to [ci, dy, dx, co] so the kernel's
    fused (ci -> tap -> co) loop reads them sequentially."""
    w1p = np.transpose(np.asarray(w1, np.float32), (1, 2, 3, 0)).reshape(-1)
    w2p = np.transpose(np.asarray(w2, np.float32), (1, 2, 3, 0)).reshape(-1)
    flat = np.concatenate([w1p, np.asarray(b1, np.float32).reshape(-1),
                           w2p, np.asarray(b2, np.float32).reshape(-1)])
    assert flat.size == N_PARAMS
    return jnp.asarray(flat, jnp.float32)


# ------------------------------ Pallas kernel --------------------------------
def _atan(v):
    # Cephes-style float32 arctan using only mul/add/select plus EUP approx
    # reciprocals for the argument reduction (error << 5e-3 rad overall).
    tan3pi8 = 2.414213562373095
    tanpi8 = 0.4142135623730951
    a = jnp.abs(v)
    big = a > tan3pi8
    mid = a > tanpi8
    inv_a = pl.reciprocal(a, approx=True)          # EUP, off the VALU path
    inv_ap1 = pl.reciprocal(a + 1.0, approx=True)
    x = jnp.where(big, -inv_a, jnp.where(mid, (a - 1.0) * inv_ap1, a))
    y0 = jnp.where(big, np.pi / 2.0, jnp.where(mid, np.pi / 4.0, 0.0))
    z = x * x
    poly = (((8.05374449538e-2 * z - 1.38776856032e-1) * z
             + 1.99777106478e-1) * z - 3.33329491539e-1)
    r = y0 + poly * z * x + x
    return jnp.where(v < 0, -r, r)


def _wrap_lr(x, j_first, j_last):
    """Wrap-corrected column neighbours of x (B, H*W):
       left[b, i*W+j]  == x[b, i, (j-1) % W]
       right[b, i*W+j] == x[b, i, (j+1) % W]"""
    hw = x.shape[-1]

    def flat(off):   # flat(off)[l] == x[(l + off) % hw]   (np.roll semantics)
        return pltpu.roll(x, shift=(-off) % hw, axis=1)

    left = jnp.where(j_first, flat(W - 1), flat(-1))
    right = jnp.where(j_last, flat(-(W - 1)), flat(1))
    return left, right


def _conv3x3_circular_fused(chans, w_ref, w_off, b_off, cout, j_first, j_last):
    """Circular 3x3 cross-correlation (== torch.nn.Conv2d, padding=1,
    padding_mode='circular') on flattened (B, H*W) channel slabs, with tap
    generation FUSED into the accumulation so at most one tap is live at a
    time.  Row wrap is a pure flat roll (period H*W); the column wrap is
    folded into precomputed left/right neighbour fields (2 selects/channel).
    Weights live in one flat SMEM buffer with layout [ci, dy, dx, co]."""
    hw = chans[0].shape[-1]
    accs = [None] * cout
    for ci, x in enumerate(chans):
        left, right = _wrap_lr(x, j_first, j_last)
        base = {-1: left, 0: x, 1: right}
        for dy in range(3):
            di = dy - 1
            for dx in range(3):
                src = base[dx - 1]
                tap = src if di == 0 else pltpu.roll(src, shift=(-di * W) % hw,
                                                     axis=1)
                woff = w_off + ((ci * 3 + dy) * 3 + dx) * cout
                for co in range(cout):
                    term = w_ref[woff + co] * tap
                    accs[co] = term if accs[co] is None else accs[co] + term
    return [accs[co] + w_ref[b_off + co] for co in range(cout)]


def _plaq_kernel(p_ref, w_ref, pp_ref, lj_ref):
    p = p_ref[...]                                    # (B, HW) f32

    # --- masks & column predicates rebuilt in-register (compile-time stripes)
    lane = jax.lax.broadcasted_iota(jnp.int32, p.shape, 1)
    col = lane & (W - 1)                              # j = lane % W
    j_first = col == 0
    j_last = col == (W - 1)
    if MASK_MU == 1:                                  # stripes along rows i
        unit = W
        m4u = lane & (3 * W)                          # (i % 4) * W
    else:                                             # stripes along cols j
        unit = 1
        m4u = lane & 3                                # j % 4
    a0 = MASK_OFF % 4
    ma_b = m4u == a0 * unit                                            # active
    mf_b = (m4u == ((a0 + 1) % 4) * unit) | (m4u == ((a0 + 2) % 4) * unit)  # frozen

    frozen = jnp.where(mf_b, p, 0.0)
    active = jnp.where(ma_b, p, 0.0)

    # --- net(_frozen_preproc(p)): 2-layer circular 3x3 CNN, fully in-register
    x0 = [jnp.cos(frozen), jnp.sin(frozen)]
    h = _conv3x3_circular_fused(x0, w_ref, W1_OFF, B1_OFF, HIDDEN,
                                j_first, j_last)
    h = [jnp.where(v > 0, v, LEAKY_SLOPE * v) for v in h]          # LeakyReLU
    net = _conv3x3_circular_fused(h, w_ref, W2_OFF, B2_OFF, N_MIX + 1,
                                  j_first, j_last)
    s_list, t = net[:N_MIX], net[N_MIX]

    # --- mixture tan transform + log-Jacobian ---
    half = 0.5 * active
    ch = jnp.cos(half)
    sh = jnp.sin(half)
    tan_half = sh * pl.reciprocal(ch, approx=True)    # EUP recip, not VALU div
    c2 = ch * ch
    s2 = sh * sh

    tt_sum = None
    lj = []
    for s in s_list:
        es = jnp.exp(s)
        ens = jnp.exp(-s)                             # direct, no divide
        tt = 2.0 * _atan(es * tan_half)
        tt = tt - TWO_PI * jnp.floor(tt * INV_TWO_PI)  # remainder(., 2*pi)
        tt_sum = tt if tt_sum is None else tt_sum + tt
        lj.append(-jnp.log(ens * c2 + es * s2))        # tan_transform_logJ

    # logsumexp over the mixture dimension (2-term specialisation)
    if N_MIX == 2:
        diff = lj[0] - lj[1]
        lse = jnp.maximum(lj[0], lj[1]) + jnp.log(1.0 + jnp.exp(-jnp.abs(diff)))
    else:
        m = lj[0]
        for v in lj[1:]:
            m = jnp.maximum(m, v)
        acc = jnp.exp(lj[0] - m)
        for v in lj[1:]:
            acc = acc + jnp.exp(v - m)
        lse = m + jnp.log(acc)

    logJ_field = jnp.where(ma_b, lse - float(np.log(N_MIX)), 0.0)
    lj_ref[...] = jnp.sum(logJ_field, axis=1, keepdims=True)        # sum_d=True

    z = tt_sum * (1.0 / N_MIX) + t                    # mixture mean + shift
    z = z - TWO_PI * jnp.floor(z * INV_TWO_PI)        # remainder(., 2*pi)
    # masks partition the lattice -> ma*z + passive + frozen == where(ma, z, p)
    pp_ref[...] = jnp.where(ma_b, z, p)


def plaquette_coupling_forward(p, packed_params):
    B_, H_, W_ = p.shape
    assert (H_, W_) == (H, W), "kernel is specialised for the configured lattice"
    hw = H_ * W_
    p2 = p.reshape(B_, hw)

    # advisory cost estimate for XLA's scheduler
    conv_flops = B_ * hw * 2 * 9 * (2 * HIDDEN + HIDDEN * (N_MIX + 1))
    misc_flops = B_ * hw * 96
    transcendentals = B_ * hw * (7 + 5 * N_MIX)
    bytes_accessed = 4 * (2 * B_ * hw + B_ + N_PARAMS)

    vmem = pl.BlockSpec(memory_space=pltpu.MemorySpace.VMEM)
    smem = pl.BlockSpec(memory_space=pltpu.MemorySpace.SMEM)
    out_shape = (jax.ShapeDtypeStruct((B_, hw), jnp.float32),
                 jax.ShapeDtypeStruct((B_, 1), jnp.float32))

    pp, lj = pl.pallas_call(
        _plaq_kernel,
        out_shape=out_shape,
        in_specs=[vmem, smem],
        out_specs=(vmem, vmem),
        cost_estimate=pl.CostEstimate(
            flops=int(conv_flops + misc_flops),
            transcendentals=int(transcendentals),
            bytes_accessed=int(bytes_accessed)),
    )(p2, packed_params)
    return pp.reshape(B_, H_, W_), lj.reshape(B_)


# --------------------- pure-JAX reference (for validation) ------------------
def _conv_circ_ref(x, w, b):
    xp = jnp.pad(x, ((0, 0), (0, 0), (1, 1), (1, 1)), mode='wrap')
    y = jax.lax.conv_general_dilated(
        xp, w, (1, 1), 'VALID', dimension_numbers=('NCHW', 'OIHW', 'NCHW'))
    return y + b[None, :, None, None]


def forward_reference(p, w1, b1, w2, b2, masks):
    ma, mp_, mf = masks
    frozen = mf * p
    active = ma * p
    passive = mp_ * p
    x = jnp.stack([jnp.cos(frozen), jnp.sin(frozen)], axis=1)      # (B,2,H,W)
    h = _conv_circ_ref(x, w1, b1)
    h = jnp.where(h > 0, h, LEAKY_SLOPE * h)
    wgt = _conv_circ_ref(h, w2, b2)                                # (B,3,H,W)
    s, t = wgt[:, :-1], wgt[:, -1]
    xx = active[:, None]
    tt = jnp.mod(2.0 * jnp.arctan(jnp.exp(s) * jnp.tan(xx / 2)), TWO_PI)
    lj = -jnp.log(jnp.exp(-s) * jnp.cos(xx / 2) ** 2
                  + jnp.exp(s) * jnp.sin(xx / 2) ** 2)
    logJ = ma * (jax.nn.logsumexp(lj, axis=1) - np.log(s.shape[1]))
    logJ = jnp.sum(logJ, axis=(1, 2))
    pp = ma * jnp.mean(tt, axis=1)
    pp = ma * jnp.mod(pp + t, TWO_PI) + passive + frozen
    return pp, logJ


def _check(p, w1, b1, w2, b2, packed, masks):
    pp, lj = plaquette_coupling_forward(p, packed)
    pp, lj = jax.block_until_ready((pp, lj))
    pp_ref, lj_ref = forward_reference(p, w1, b1, w2, b2, masks)
    # p_prime is an angle field -> compare on the circle (mod-2pi safe)
    d = jnp.abs(pp - pp_ref)
    d = jnp.minimum(d, TWO_PI - d)
    assert float(jnp.max(d)) < 5e-3, float(jnp.max(d))
    assert jnp.allclose(lj, lj_ref, atol=5e-3, rtol=5e-3), (lj, lj_ref)


# --------------------------------- main --------------------------------------
if __name__ == "__main__":
    key = jax.random.PRNGKey(0)
    kp, kn = jax.random.split(key)
    p = jax.random.uniform(kp, (B, H, W), jnp.float32, 0.0, TWO_PI)

    w1, b1, w2, b2 = init_net_params(kn)
    packed = pack_params_for_kernel(w1, b1, w2, b2)
    active, passive, frozen = plaquette_masks((H, W), MASK_MU, MASK_OFF)
    masks = tuple(jnp.asarray(m, dtype=jnp.float32)
                  for m in (active, passive, frozen))

    # main check on random angles
    _check(p, w1, b1, w2, b2, packed, masks)

    # extra check at/near the tan(x/2) pole (active angle ~= pi) to validate
    # the approx-reciprocal path through atan saturation
    p_pole = p.at[:, 0, :].set(np.float32(np.pi))          # row 0 is active
    p_pole = p_pole.at[:, 0, 1].set(np.float32(np.pi - 1e-3))
    p_pole = p_pole.at[:, 0, 2].set(np.float32(np.pi + 1e-3))
    _check(p_pole, w1, b1, w2, b2, packed, masks)

    print("KERNEL_OK")
</pallas_src>

<mosaic_0001>
module attributes {stable_mosaic.version = 11 : i64} {
  func.func @_plaq_kernel(%arg0: memref<2x256xf32, #tpu.memory_space<vmem>>, %arg1: memref<187xf32, #tpu.memory_space<smem>>, %arg2: memref<2x256xf32, #tpu.memory_space<vmem>>, %arg3: memref<2x1xf32, #tpu.memory_space<vmem>>) attributes {dimension_semantics = [], scalar_prefetch = 0 : i64, scratch_operands = 0 : i64, tpu.core_type = #tpu.core_type<tc>} {
    %c0 = arith.constant 0 : index
    %c0_0 = arith.constant 0 : index
    %0 = vector.load %arg0[%c0, %c0_0] : memref<2x256xf32, #tpu.memory_space<vmem>>, vector<2x256xf32>
    %1 = tpu.iota {dimensions = array<i32: 1>} : vector<2x256xi32>
    %c15_i32 = arith.constant 15 : i32
    %2 = vector.broadcast %c15_i32 : i32 to vector<2x256xi32>
    %3 = arith.andi %1, %2 : vector<2x256xi32>
    %c0_i32 = arith.constant 0 : i32
    %4 = vector.broadcast %c0_i32 : i32 to vector<2x256xi32>
    %5 = arith.cmpi eq, %3, %4 : vector<2x256xi32>
    %c15_i32_1 = arith.constant 15 : i32
    %6 = vector.broadcast %c15_i32_1 : i32 to vector<2x256xi32>
    %7 = arith.cmpi eq, %3, %6 : vector<2x256xi32>
    %c48_i32 = arith.constant 48 : i32
    %8 = vector.broadcast %c48_i32 : i32 to vector<2x256xi32>
    %9 = arith.andi %1, %8 : vector<2x256xi32>
    %c0_i32_2 = arith.constant 0 : i32
    %10 = vector.broadcast %c0_i32_2 : i32 to vector<2x256xi32>
    %11 = arith.cmpi eq, %9, %10 : vector<2x256xi32>
    %c16_i32 = arith.constant 16 : i32
    %12 = vector.broadcast %c16_i32 : i32 to vector<2x256xi32>
    %13 = arith.cmpi eq, %9, %12 : vector<2x256xi32>
    %c32_i32 = arith.constant 32 : i32
    %14 = vector.broadcast %c32_i32 : i32 to vector<2x256xi32>
    %15 = arith.cmpi eq, %9, %14 : vector<2x256xi32>
    %16 = arith.ori %13, %15 : vector<2x256xi1>
    %cst = arith.constant 0.000000e+00 : f32
    %17 = vector.broadcast %cst : f32 to vector<2x256xf32>
    %18 = arith.select %16, %0, %17 : vector<2x256xi1>, vector<2x256xf32>
    %cst_3 = arith.constant 0.000000e+00 : f32
    %19 = vector.broadcast %cst_3 : f32 to vector<2x256xf32>
    %20 = arith.select %11, %0, %19 : vector<2x256xi1>, vector<2x256xf32>
    %21 = math.cos %18 : vector<2x256xf32>
    %22 = math.sin %18 : vector<2x256xf32>
    %c241_i32 = arith.constant 241 : i32
    %23 = tpu.dynamic_rotate %21 by %c241_i32 dim 1 : vector<2x256xf32>, i32 -> vector<2x256xf32>
    %c1_i32 = arith.constant 1 : i32
    %24 = tpu.dynamic_rotate %21 by %c1_i32 dim 1 : vector<2x256xf32>, i32 -> vector<2x256xf32>
    %25 = arith.select %5, %23, %24 : vector<2x256xi1>, vector<2x256xf32>
    %c15_i32_4 = arith.constant 15 : i32
    %26 = tpu.dynamic_rotate %21 by %c15_i32_4 dim 1 : vector<2x256xf32>, i32 -> vector<2x256xf32>
    %c255_i32 = arith.constant 255 : i32
    %27 = tpu.dynamic_rotate %21 by %c255_i32 dim 1 : vector<2x256xf32>, i32 -> vector<2x256xf32>
    %28 = arith.select %7, %26, %27 : vector<2x256xi1>, vector<2x256xf32>
    %c16_i32_5 = arith.constant 16 : i32
    %29 = tpu.dynamic_rotate %25 by %c16_i32_5 dim 1 : vector<2x256xf32>, i32 -> vector<2x256xf32>
    %c0_6 = arith.constant 0 : index
    %30 = memref.load %arg1[%c0_6] : memref<187xf32, #tpu.memory_space<smem>>
    %31 = vector.broadcast %30 : f32 to vector<2x256xf32>
    %32 = arith.mulf %31, %29 : vector<2x256xf32>
    %c1 = arith.constant 1 : index
    %33 = memref.load %arg1[%c1] : memref<187xf32, #tpu.memory_space<smem>>
    %34 = vector.broadcast %33 : f32 to vector<2x256xf32>
    %35 = arith.mulf %34, %29 : vector<2x256xf32>
    %c2 = arith.constant 2 : index
    %36 = memref.load %arg1[%c2] : memref<187xf32, #tpu.memory_space<smem>>
    %37 = vector.broadcast %36 : f32 to vector<2x256xf32>
    %38 = arith.mulf %37, %29 : vector<2x256xf32>
    %c3 = arith.constant 3 : index
    %39 = memref.load %arg1[%c3] : memref<187xf32, #tpu.memory_space<smem>>
    %40 = vector.broadcast %39 : f32 to vector<2x256xf32>
    %41 = arith.mulf %40, %29 : vector<2x256xf32>
    %c16_i32_7 = arith.constant 16 : i32
    %42 = tpu.dynamic_rotate %21 by %c16_i32_7 dim 1 : vector<2x256xf32>, i32 -> vector<2x256xf32>
    %c4 = arith.constant 4 : index
    %43 = memref.load %arg1[%c4] : memref<187xf32, #tpu.memory_space<smem>>
    %44 = vector.broadcast %43 : f32 to vector<2x256xf32>
    %45 = arith.mulf %44, %42 : vector<2x256xf32>
    %46 = arith.addf %32, %45 : vector<2x256xf32>
    %c5 = arith.constant 5 : index
    %47 = memref.load %arg1[%c5] : memref<187xf32, #tpu.memory_space<smem>>
    %48 = vector.broadcast %47 : f32 to vector<2x256xf32>
    %49 = arith.mulf %48, %42 : vector<2x256xf32>
    %50 = arith.addf %35, %49 : vector<2x256xf32>
    %c6 = arith.constant 6 : index
    %51 = memref.load %arg1[%c6] : memref<187xf32, #tpu.memory_space<smem>>
    %52 = vector.broadcast %51 : f32 to vector<2x256xf32>
    %53 = arith.mulf %52, %42 : vector<2x256xf32>
    %54 = arith.addf %38, %53 : vector<2x256xf32>
    %c7 = arith.constant 7 : index
    %55 = memref.load %arg1[%c7] : memref<187xf32, #tpu.memory_space<smem>>
    %56 = vector.broadcast %55 : f32 to vector<2x256xf32>
    %57 = arith.mulf %56, %42 : vector<2x256xf32>
    %58 = arith.addf %41, %57 : vector<2x256xf32>
    %c16_i32_8 = arith.constant 16 : i32
    %59 = tpu.dynamic_rotate %28 by %c16_i32_8 dim 1 : vector<2x256xf32>, i32 -> vector<2x256xf32>
    %c8 = arith.constant 8 : index
    %60 = memref.load %arg1[%c8] : memref<187xf32, #tpu.memory_space<smem>>
    %61 = vector.broadcast %60 : f32 to vector<2x256xf32>
    %62 = arith.mulf %61, %59 : vector<2x256xf32>
    %63 = arith.addf %46, %62 : vector<2x256xf32>
    %c9 = arith.constant 9 : index
    %64 = memref.load %arg1[%c9] : memref<187xf32, #tpu.memory_space<smem>>
    %65 = vector.broadcast %64 : f32 to vector<2x256xf32>
    %66 = arith.mulf %65, %59 : vector<2x256xf32>
    %67 = arith.addf %50, %66 : vector<2x256xf32>
    %c10 = arith.constant 10 : index
    %68 = memref.load %arg1[%c10] : memref<187xf32, #tpu.memory_space<smem>>
    %69 = vector.broadcast %68 : f32 to vector<2x256xf32>
    %70 = arith.mulf %69, %59 : vector<2x256xf32>
    %71 = arith.addf %54, %70 : vector<2x256xf32>
    %c11 = arith.constant 11 : index
    %72 = memref.load %arg1[%c11] : memref<187xf32, #tpu.memory_space<smem>>
    %73 = vector.broadcast %72 : f32 to vector<2x256xf32>
    %74 = arith.mulf %73, %59 : vector<2x256xf32>
    %75 = arith.addf %58, %74 : vector<2x256xf32>
    %c12 = arith.constant 12 : index
    %76 = memref.load %arg1[%c12] : memref<187xf32, #tpu.memory_space<smem>>
    %77 = vector.broadcast %76 : f32 to vector<2x256xf32>
    %78 = arith.mulf %77, %25 : vector<2x256xf32>
    %79 = arith.addf %63, %78 : vector<2x256xf32>
    %c13 = arith.constant 13 : index
    %80 = memref.load %arg1[%c13] : memref<187xf32, #tpu.memory_space<smem>>
    %81 = vector.broadcast %80 : f32 to vector<2x256xf32>
    %82 = arith.mulf %81, %25 : vector<2x256xf32>
    %83 = arith.addf %67, %82 : vector<2x256xf32>
    %c14 = arith.constant 14 : index
    %84 = memref.load %arg1[%c14] : memref<187xf32, #tpu.memory_space<smem>>
    %85 = vector.broadcast %84 : f32 to vector<2x256xf32>
    %86 = arith.mulf %85, %25 : vector<2x256xf32>
    %87 = arith.addf %71, %86 : vector<2x256xf32>
    %c15 = arith.constant 15 : index
    %88 = memref.load %arg1[%c15] : memref<187xf32, #tpu.memory_space<smem>>
    %89 = vector.broadcast %88 : f32 to vector<2x256xf32>
    %90 = arith.mulf %89, %25 : vector<2x256xf32>
    %91 = arith.addf %75, %90 : vector<2x256xf32>
    %c16 = arith.constant 16 : index
    %92 = memref.load %arg1[%c16] : memref<187xf32, #tpu.memory_space<smem>>
    %93 = vector.broadcast %92 : f32 to vector<2x256xf32>
    %94 = arith.mulf %93, %21 : vector<2x256xf32>
    %95 = arith.addf %79, %94 : vector<2x256xf32>
    %c17 = arith.constant 17 : index
    %96 = memref.load %arg1[%c17] : memref<187xf32, #tpu.memory_space<smem>>
    %97 = vector.broadcast %96 : f32 to vector<2x256xf32>
    %98 = arith.mulf %97, %21 : vector<2x256xf32>
    %99 = arith.addf %83, %98 : vector<2x256xf32>
    %c18 = arith.constant 18 : index
    %100 = memref.load %arg1[%c18] : memref<187xf32, #tpu.memory_space<smem>>
    %101 = vector.broadcast %100 : f32 to vector<2x256xf32>
    %102 = arith.mulf %101, %21 : vector<2x256xf32>
    %103 = arith.addf %87, %102 : vector<2x256xf32>
    %c19 = arith.constant 19 : index
    %104 = memref.load %arg1[%c19] : memref<187xf32, #tpu.memory_space<smem>>
    %105 = vector.broadcast %104 : f32 to vector<2x256xf32>
    %106 = arith.mulf %105, %21 : vector<2x256xf32>
    %107 = arith.addf %91, %106 : vector<2x256xf32>
    %c20 = arith.constant 20 : index
    %108 = memref.load %arg1[%c20] : memref<187xf32, #tpu.memory_space<smem>>
    %109 = vector.broadcast %108 : f32 to vector<2x256xf32>
    %110 = arith.mulf %109, %28 : vector<2x256xf32>
    %111 = arith.addf %95, %110 : vector<2x256xf32>
    %c21 = arith.constant 21 : index
    %112 = memref.load %arg1[%c21] : memref<187xf32, #tpu.memory_space<smem>>
    %113 = vector.broadcast %112 : f32 to vector<2x256xf32>
    %114 = arith.mulf %113, %28 : vector<2x256xf32>
    %115 = arith.addf %99, %114 : vector<2x256xf32>
    %c22 = arith.constant 22 : index
    %116 = memref.load %arg1[%c22] : memref<187xf32, #tpu.memory_space<smem>>
    %117 = vector.broadcast %116 : f32 to vector<2x256xf32>
    %118 = arith.mulf %117, %28 : vector<2x256xf32>
    %119 = arith.addf %103, %118 : vector<2x256xf32>
    %c23 = arith.constant 23 : index
    %120 = memref.load %arg1[%c23] : memref<187xf32, #tpu.memory_space<smem>>
    %121 = vector.broadcast %120 : f32 to vector<2x256xf32>
    %122 = arith.mulf %121, %28 : vector<2x256xf32>
    %123 = arith.addf %107, %122 : vector<2x256xf32>
    %c240_i32 = arith.constant 240 : i32
    %124 = tpu.dynamic_rotate %25 by %c240_i32 dim 1 : vector<2x256xf32>, i32 -> vector<2x256xf32>
    %c24 = arith.constant 24 : index
    %125 = memref.load %arg1[%c24] : memref<187xf32, #tpu.memory_space<smem>>
    %126 = vector.broadcast %125 : f32 to vector<2x256xf32>
    %127 = arith.mulf %126, %124 : vector<2x256xf32>
    %128 = arith.addf %111, %127 : vector<2x256xf32>
    %c25 = arith.constant 25 : index
    %129 = memref.load %arg1[%c25] : memref<187xf32, #tpu.memory_space<smem>>
    %130 = vector.broadcast %129 : f32 to vector<2x256xf32>
    %131 = arith.mulf %130, %124 : vector<2x256xf32>
    %132 = arith.addf %115, %131 : vector<2x256xf32>
    %c26 = arith.constant 26 : index
    %133 = memref.load %arg1[%c26] : memref<187xf32, #tpu.memory_space<smem>>
    %134 = vector.broadcast %133 : f32 to vector<2x256xf32>
    %135 = arith.mulf %134, %124 : vector<2x256xf32>
    %136 = arith.addf %119, %135 : vector<2x256xf32>
    %c27 = arith.constant 27 : index
    %137 = memref.load %arg1[%c27] : memref<187xf32, #tpu.memory_space<smem>>
    %138 = vector.broadcast %137 : f32 to vector<2x256xf32>
    %139 = arith.mulf %138, %124 : vector<2x256xf32>
    %140 = arith.addf %123, %139 : vector<2x256xf32>
    %c240_i32_9 = arith.constant 240 : i32
    %141 = tpu.dynamic_rotate %21 by %c240_i32_9 dim 1 : vector<2x256xf32>, i32 -> vector<2x256xf32>
    %c28 = arith.constant 28 : index
    %142 = memref.load %arg1[%c28] : memref<187xf32, #tpu.memory_space<smem>>
    %143 = vector.broadcast %142 : f32 to vector<2x256xf32>
    %144 = arith.mulf %143, %141 : vector<2x256xf32>
    %145 = arith.addf %128, %144 : vector<2x256xf32>
    %c29 = arith.constant 29 : index
    %146 = memref.load %arg1[%c29] : memref<187xf32, #tpu.memory_space<smem>>
    %147 = vector.broadcast %146 : f32 to vector<2x256xf32>
    %148 = arith.mulf %147, %141 : vector<2x256xf32>
    %149 = arith.addf %132, %148 : vector<2x256xf32>
    %c30 = arith.constant 30 : index
    %150 = memref.load %arg1[%c30] : memref<187xf32, #tpu.memory_space<smem>>
    %151 = vector.broadcast %150 : f32 to vector<2x256xf32>
    %152 = arith.mulf %151, %141 : vector<2x256xf32>
    %153 = arith.addf %136, %152 : vector<2x256xf32>
    %c31 = arith.constant 31 : index
    %154 = memref.load %arg1[%c31] : memref<187xf32, #tpu.memory_space<smem>>
    %155 = vector.broadcast %154 : f32 to vector<2x256xf32>
    %156 = arith.mulf %155, %141 : vector<2x256xf32>
    %157 = arith.addf %140, %156 : vector<2x256xf32>
    %c240_i32_10 = arith.constant 240 : i32
    %158 = tpu.dynamic_rotate %28 by %c240_i32_10 dim 1 : vector<2x256xf32>, i32 -> vector<2x256xf32>
    %c32 = arith.constant 32 : index
    %159 = memref.load %arg1[%c32] : memref<187xf32, #tpu.memory_space<smem>>
    %160 = vector.broadcast %159 : f32 to vector<2x256xf32>
    %161 = arith.mulf %160, %158 : vector<2x256xf32>
    %162 = arith.addf %145, %161 : vector<2x256xf32>
    %c33 = arith.constant 33 : index
    %163 = memref.load %arg1[%c33] : memref<187xf32, #tpu.memory_space<smem>>
    %164 = vector.broadcast %163 : f32 to vector<2x256xf32>
    %165 = arith.mulf %164, %158 : vector<2x256xf32>
    %166 = arith.addf %149, %165 : vector<2x256xf32>
    %c34 = arith.constant 34 : index
    %167 = memref.load %arg1[%c34] : memref<187xf32, #tpu.memory_space<smem>>
    %168 = vector.broadcast %167 : f32 to vector<2x256xf32>
    %169 = arith.mulf %168, %158 : vector<2x256xf32>
    %170 = arith.addf %153, %169 : vector<2x256xf32>
    %c35 = arith.constant 35 : index
    %171 = memref.load %arg1[%c35] : memref<187xf32, #tpu.memory_space<smem>>
    %172 = vector.broadcast %171 : f32 to vector<2x256xf32>
    %173 = arith.mulf %172, %158 : vector<2x256xf32>
    %174 = arith.addf %157, %173 : vector<2x256xf32>
    %c241_i32_11 = arith.constant 241 : i32
    %175 = tpu.dynamic_rotate %22 by %c241_i32_11 dim 1 : vector<2x256xf32>, i32 -> vector<2x256xf32>
    %c1_i32_12 = arith.constant 1 : i32
    %176 = tpu.dynamic_rotate %22 by %c1_i32_12 dim 1 : vector<2x256xf32>, i32 -> vector<2x256xf32>
    %177 = arith.select %5, %175, %176 : vector<2x256xi1>, vector<2x256xf32>
    %c15_i32_13 = arith.constant 15 : i32
    %178 = tpu.dynamic_rotate %22 by %c15_i32_13 dim 1 : vector<2x256xf32>, i32 -> vector<2x256xf32>
    %c255_i32_14 = arith.constant 255 : i32
    %179 = tpu.dynamic_rotate %22 by %c255_i32_14 dim 1 : vector<2x256xf32>, i32 -> vector<2x256xf32>
    %180 = arith.select %7, %178, %179 : vector<2x256xi1>, vector<2x256xf32>
    %c16_i32_15 = arith.constant 16 : i32
    %181 = tpu.dynamic_rotate %177 by %c16_i32_15 dim 1 : vector<2x256xf32>, i32 -> vector<2x256xf32>
    %c36 = arith.constant 36 : index
    %182 = memref.load %arg1[%c36] : memref<187xf32, #tpu.memory_space<smem>>
    %183 = vector.broadcast %182 : f32 to vector<2x256xf32>
    %184 = arith.mulf %183, %181 : vector<2x256xf32>
    %185 = arith.addf %162, %184 : vector<2x256xf32>
    %c37 = arith.constant 37 : index
    %186 = memref.load %arg1[%c37] : memref<187xf32, #tpu.memory_space<smem>>
    %187 = vector.broadcast %186 : f32 to vector<2x256xf32>
    %188 = arith.mulf %187, %181 : vector<2x256xf32>
    %189 = arith.addf %166, %188 : vector<2x256xf32>
    %c38 = arith.constant 38 : index
    %190 = memref.load %arg1[%c38] : memref<187xf32, #tpu.memory_space<smem>>
    %191 = vector.broadcast %190 : f32 to vector<2x256xf32>
    %192 = arith.mulf %191, %181 : vector<2x256xf32>
    %193 = arith.addf %170, %192 : vector<2x256xf32>
    %c39 = arith.constant 39 : index
    %194 = memref.load %arg1[%c39] : memref<187xf32, #tpu.memory_space<smem>>
    %195 = vector.broadcast %194 : f32 to vector<2x256xf32>
    %196 = arith.mulf %195, %181 : vector<2x256xf32>
    %197 = arith.addf %174, %196 : vector<2x256xf32>
    %c16_i32_16 = arith.constant 16 : i32
    %198 = tpu.dynamic_rotate %22 by %c16_i32_16 dim 1 : vector<2x256xf32>, i32 -> vector<2x256xf32>
    %c40 = arith.constant 40 : index
    %199 = memref.load %arg1[%c40] : memref<187xf32, #tpu.memory_space<smem>>
    %200 = vector.broadcast %199 : f32 to vector<2x256xf32>
    %201 = arith.mulf %200, %198 : vector<2x256xf32>
    %202 = arith.addf %185, %201 : vector<2x256xf32>
    %c41 = arith.constant 41 : index
    %203 = memref.load %arg1[%c41] : memref<187xf32, #tpu.memory_space<smem>>
    %204 = vector.broadcast %203 : f32 to vector<2x256xf32>
    %205 = arith.mulf %204, %198 : vector<2x256xf32>
    %206 = arith.addf %189, %205 : vector<2x256xf32>
    %c42 = arith.constant 42 : index
    %207 = memref.load %arg1[%c42] : memref<187xf32, #tpu.memory_space<smem>>
    %208 = vector.broadcast %207 : f32 to vector<2x256xf32>
    %209 = arith.mulf %208, %198 : vector<2x256xf32>
    %210 = arith.addf %193, %209 : vector<2x256xf32>
    %c43 = arith.constant 43 : index
    %211 = memref.load %arg1[%c43] : memref<187xf32, #tpu.memory_space<smem>>
    %212 = vector.broadcast %211 : f32 to vector<2x256xf32>
    %213 = arith.mulf %212, %198 : vector<2x256xf32>
    %214 = arith.addf %197, %213 : vector<2x256xf32>
    %c16_i32_17 = arith.constant 16 : i32
    %215 = tpu.dynamic_rotate %180 by %c16_i32_17 dim 1 : vector<2x256xf32>, i32 -> vector<2x256xf32>
    %c44 = arith.constant 44 : index
    %216 = memref.load %arg1[%c44] : memref<187xf32, #tpu.memory_space<smem>>
    %217 = vector.broadcast %216 : f32 to vector<2x256xf32>
    %218 = arith.mulf %217, %215 : vector<2x256xf32>
    %219 = arith.addf %202, %218 : vector<2x256xf32>
    %c45 = arith.constant 45 : index
    %220 = memref.load %arg1[%c45] : memref<187xf32, #tpu.memory_space<smem>>
    %221 = vector.broadcast %220 : f32 to vector<2x256xf32>
    %222 = arith.mulf %221, %215 : vector<2x256xf32>
    %223 = arith.addf %206, %222 : vector<2x256xf32>
    %c46 = arith.constant 46 : index
    %224 = memref.load %arg1[%c46] : memref<187xf32, #tpu.memory_space<smem>>
    %225 = vector.broadcast %224 : f32 to vector<2x256xf32>
    %226 = arith.mulf %225, %215 : vector<2x256xf32>
    %227 = arith.addf %210, %226 : vector<2x256xf32>
    %c47 = arith.constant 47 : index
    %228 = memref.load %arg1[%c47] : memref<187xf32, #tpu.memory_space<smem>>
    %229 = vector.broadcast %228 : f32 to vector<2x256xf32>
    %230 = arith.mulf %229, %215 : vector<2x256xf32>
    %231 = arith.addf %214, %230 : vector<2x256xf32>
    %c48 = arith.constant 48 : index
    %232 = memref.load %arg1[%c48] : memref<187xf32, #tpu.memory_space<smem>>
    %233 = vector.broadcast %232 : f32 to vector<2x256xf32>
    %234 = arith.mulf %233, %177 : vector<2x256xf32>
    %235 = arith.addf %219, %234 : vector<2x256xf32>
    %c49 = arith.constant 49 : index
    %236 = memref.load %arg1[%c49] : memref<187xf32, #tpu.memory_space<smem>>
    %237 = vector.broadcast %236 : f32 to vector<2x256xf32>
    %238 = arith.mulf %237, %177 : vector<2x256xf32>
    %239 = arith.addf %223, %238 : vector<2x256xf32>
    %c50 = arith.constant 50 : index
    %240 = memref.load %arg1[%c50] : memref<187xf32, #tpu.memory_space<smem>>
    %241 = vector.broadcast %240 : f32 to vector<2x256xf32>
    %242 = arith.mulf %241, %177 : vector<2x256xf32>
    %243 = arith.addf %227, %242 : vector<2x256xf32>
    %c51 = arith.constant 51 : index
    %244 = memref.load %arg1[%c51] : memref<187xf32, #tpu.memory_space<smem>>
    %245 = vector.broadcast %244 : f32 to vector<2x256xf32>
    %246 = arith.mulf %245, %177 : vector<2x256xf32>
    %247 = arith.addf %231, %246 : vector<2x256xf32>
    %c52 = arith.constant 52 : index
    %248 = memref.load %arg1[%c52] : memref<187xf32, #tpu.memory_space<smem>>
    %249 = vector.broadcast %248 : f32 to vector<2x256xf32>
    %250 = arith.mulf %249, %22 : vector<2x256xf32>
    %251 = arith.addf %235, %250 : vector<2x256xf32>
    %c53 = arith.constant 53 : index
    %252 = memref.load %arg1[%c53] : memref<187xf32, #tpu.memory_space<smem>>
    %253 = vector.broadcast %252 : f32 to vector<2x256xf32>
    %254 = arith.mulf %253, %22 : vector<2x256xf32>
    %255 = arith.addf %239, %254 : vector<2x256xf32>
    %c54 = arith.constant 54 : index
    %256 = memref.load %arg1[%c54] : memref<187xf32, #tpu.memory_space<smem>>
    %257 = vector.broadcast %256 : f32 to vector<2x256xf32>
    %258 = arith.mulf %257, %22 : vector<2x256xf32>
    %259 = arith.addf %243, %258 : vector<2x256xf32>
    %c55 = arith.constant 55 : index
    %260 = memref.load %arg1[%c55] : memref<187xf32, #tpu.memory_space<smem>>
    %261 = vector.broadcast %260 : f32 to vector<2x256xf32>
    %262 = arith.mulf %261, %22 : vector<2x256xf32>
    %263 = arith.addf %247, %262 : vector<2x256xf32>
    %c56 = arith.constant 56 : index
    %264 = memref.load %arg1[%c56] : memref<187xf32, #tpu.memory_space<smem>>
    %265 = vector.broadcast %264 : f32 to vector<2x256xf32>
    %266 = arith.mulf %265, %180 : vector<2x256xf32>
    %267 = arith.addf %251, %266 : vector<2x256xf32>
    %c57 = arith.constant 57 : index
    %268 = memref.load %arg1[%c57] : memref<187xf32, #tpu.memory_space<smem>>
    %269 = vector.broadcast %268 : f32 to vector<2x256xf32>
    %270 = arith.mulf %269, %180 : vector<2x256xf32>
    %271 = arith.addf %255, %270 : vector<2x256xf32>
    %c58 = arith.constant 58 : index
    %272 = memref.load %arg1[%c58] : memref<187xf32, #tpu.memory_space<smem>>
    %273 = vector.broadcast %272 : f32 to vector<2x256xf32>
    %274 = arith.mulf %273, %180 : vector<2x256xf32>
    %275 = arith.addf %259, %274 : vector<2x256xf32>
    %c59 = arith.constant 59 : index
    %276 = memref.load %arg1[%c59] : memref<187xf32, #tpu.memory_space<smem>>
    %277 = vector.broadcast %276 : f32 to vector<2x256xf32>
    %278 = arith.mulf %277, %180 : vector<2x256xf32>
    %279 = arith.addf %263, %278 : vector<2x256xf32>
    %c240_i32_18 = arith.constant 240 : i32
    %280 = tpu.dynamic_rotate %177 by %c240_i32_18 dim 1 : vector<2x256xf32>, i32 -> vector<2x256xf32>
    %c60 = arith.constant 60 : index
    %281 = memref.load %arg1[%c60] : memref<187xf32, #tpu.memory_space<smem>>
    %282 = vector.broadcast %281 : f32 to vector<2x256xf32>
    %283 = arith.mulf %282, %280 : vector<2x256xf32>
    %284 = arith.addf %267, %283 : vector<2x256xf32>
    %c61 = arith.constant 61 : index
    %285 = memref.load %arg1[%c61] : memref<187xf32, #tpu.memory_space<smem>>
    %286 = vector.broadcast %285 : f32 to vector<2x256xf32>
    %287 = arith.mulf %286, %280 : vector<2x256xf32>
    %288 = arith.addf %271, %287 : vector<2x256xf32>
    %c62 = arith.constant 62 : index
    %289 = memref.load %arg1[%c62] : memref<187xf32, #tpu.memory_space<smem>>
    %290 = vector.broadcast %289 : f32 to vector<2x256xf32>
    %291 = arith.mulf %290, %280 : vector<2x256xf32>
    %292 = arith.addf %275, %291 : vector<2x256xf32>
    %c63 = arith.constant 63 : index
    %293 = memref.load %arg1[%c63] : memref<187xf32, #tpu.memory_space<smem>>
    %294 = vector.broadcast %293 : f32 to vector<2x256xf32>
    %295 = arith.mulf %294, %280 : vector<2x256xf32>
    %296 = arith.addf %279, %295 : vector<2x256xf32>
    %c240_i32_19 = arith.constant 240 : i32
    %297 = tpu.dynamic_rotate %22 by %c240_i32_19 dim 1 : vector<2x256xf32>, i32 -> vector<2x256xf32>
    %c64 = arith.constant 64 : index
    %298 = memref.load %arg1[%c64] : memref<187xf32, #tpu.memory_space<smem>>
    %299 = vector.broadcast %298 : f32 to vector<2x256xf32>
    %300 = arith.mulf %299, %297 : vector<2x256xf32>
    %301 = arith.addf %284, %300 : vector<2x256xf32>
    %c65 = arith.constant 65 : index
    %302 = memref.load %arg1[%c65] : memref<187xf32, #tpu.memory_space<smem>>
    %303 = vector.broadcast %302 : f32 to vector<2x256xf32>
    %304 = arith.mulf %303, %297 : vector<2x256xf32>
    %305 = arith.addf %288, %304 : vector<2x256xf32>
    %c66 = arith.constant 66 : index
    %306 = memref.load %arg1[%c66] : memref<187xf32, #tpu.memory_space<smem>>
    %307 = vector.broadcast %306 : f32 to vector<2x256xf32>
    %308 = arith.mulf %307, %297 : vector<2x256xf32>
    %309 = arith.addf %292, %308 : vector<2x256xf32>
    %c67 = arith.constant 67 : index
    %310 = memref.load %arg1[%c67] : memref<187xf32, #tpu.memory_space<smem>>
    %311 = vector.broadcast %310 : f32 to vector<2x256xf32>
    %312 = arith.mulf %311, %297 : vector<2x256xf32>
    %313 = arith.addf %296, %312 : vector<2x256xf32>
    %c240_i32_20 = arith.constant 240 : i32
    %314 = tpu.dynamic_rotate %180 by %c240_i32_20 dim 1 : vector<2x256xf32>, i32 -> vector<2x256xf32>
    %c68 = arith.constant 68 : index
    %315 = memref.load %arg1[%c68] : memref<187xf32, #tpu.memory_space<smem>>
    %316 = vector.broadcast %315 : f32 to vector<2x256xf32>
    %317 = arith.mulf %316, %314 : vector<2x256xf32>
    %318 = arith.addf %301, %317 : vector<2x256xf32>
    %c69 = arith.constant 69 : index
    %319 = memref.load %arg1[%c69] : memref<187xf32, #tpu.memory_space<smem>>
    %320 = vector.broadcast %319 : f32 to vector<2x256xf32>
    %321 = arith.mulf %320, %314 : vector<2x256xf32>
    %322 = arith.addf %305, %321 : vector<2x256xf32>
    %c70 = arith.constant 70 : index
    %323 = memref.load %arg1[%c70] : memref<187xf32, #tpu.memory_space<smem>>
    %324 = vector.broadcast %323 : f32 to vector<2x256xf32>
    %325 = arith.mulf %324, %314 : vector<2x256xf32>
    %326 = arith.addf %309, %325 : vector<2x256xf32>
    %c71 = arith.constant 71 : index
    %327 = memref.load %arg1[%c71] : memref<187xf32, #tpu.memory_space<smem>>
    %328 = vector.broadcast %327 : f32 to vector<2x256xf32>
    %329 = arith.mulf %328, %314 : vector<2x256xf32>
    %330 = arith.addf %313, %329 : vector<2x256xf32>
    %c72 = arith.constant 72 : index
    %331 = memref.load %arg1[%c72] : memref<187xf32, #tpu.memory_space<smem>>
    %332 = vector.broadcast %331 : f32 to vector<2x256xf32>
    %333 = arith.addf %318, %332 : vector<2x256xf32>
    %c73 = arith.constant 73 : index
    %334 = memref.load %arg1[%c73] : memref<187xf32, #tpu.memory_space<smem>>
    %335 = vector.broadcast %334 : f32 to vector<2x256xf32>
    %336 = arith.addf %322, %335 : vector<2x256xf32>
    %c74 = arith.constant 74 : index
    %337 = memref.load %arg1[%c74] : memref<187xf32, #tpu.memory_space<smem>>
    %338 = vector.broadcast %337 : f32 to vector<2x256xf32>
    %339 = arith.addf %326, %338 : vector<2x256xf32>
    %c75 = arith.constant 75 : index
    %340 = memref.load %arg1[%c75] : memref<187xf32, #tpu.memory_space<smem>>
    %341 = vector.broadcast %340 : f32 to vector<2x256xf32>
    %342 = arith.addf %330, %341 : vector<2x256xf32>
    %cst_21 = arith.constant 0.000000e+00 : f32
    %343 = vector.broadcast %cst_21 : f32 to vector<2x256xf32>
    %344 = arith.cmpf ogt, %333, %343 : vector<2x256xf32>
    %cst_22 = arith.constant 0.00999999977 : f32
    %345 = vector.broadcast %cst_22 : f32 to vector<2x256xf32>
    %346 = arith.mulf %345, %333 : vector<2x256xf32>
    %347 = arith.select %344, %333, %346 : vector<2x256xi1>, vector<2x256xf32>
    %cst_23 = arith.constant 0.000000e+00 : f32
    %348 = vector.broadcast %cst_23 : f32 to vector<2x256xf32>
    %349 = arith.cmpf ogt, %336, %348 : vector<2x256xf32>
    %cst_24 = arith.constant 0.00999999977 : f32
    %350 = vector.broadcast %cst_24 : f32 to vector<2x256xf32>
    %351 = arith.mulf %350, %336 : vector<2x256xf32>
    %352 = arith.select %349, %336, %351 : vector<2x256xi1>, vector<2x256xf32>
    %cst_25 = arith.constant 0.000000e+00 : f32
    %353 = vector.broadcast %cst_25 : f32 to vector<2x256xf32>
    %354 = arith.cmpf ogt, %339, %353 : vector<2x256xf32>
    %cst_26 = arith.constant 0.00999999977 : f32
    %355 = vector.broadcast %cst_26 : f32 to vector<2x256xf32>
    %356 = arith.mulf %355, %339 : vector<2x256xf32>
    %357 = arith.select %354, %339, %356 : vector<2x256xi1>, vector<2x256xf32>
    %cst_27 = arith.constant 0.000000e+00 : f32
    %358 = vector.broadcast %cst_27 : f32 to vector<2x256xf32>
    %359 = arith.cmpf ogt, %342, %358 : vector<2x256xf32>
    %cst_28 = arith.constant 0.00999999977 : f32
    %360 = vector.broadcast %cst_28 : f32 to vector<2x256xf32>
    %361 = arith.mulf %360, %342 : vector<2x256xf32>
    %362 = arith.select %359, %342, %361 : vector<2x256xi1>, vector<2x256xf32>
    %c241_i32_29 = arith.constant 241 : i32
    %363 = tpu.dynamic_rotate %347 by %c241_i32_29 dim 1 : vector<2x256xf32>, i32 -> vector<2x256xf32>
    %c1_i32_30 = arith.constant 1 : i32
    %364 = tpu.dynamic_rotate %347 by %c1_i32_30 dim 1 : vector<2x256xf32>, i32 -> vector<2x256xf32>
    %365 = arith.select %5, %363, %364 : vector<2x256xi1>, vector<2x256xf32>
    %c15_i32_31 = arith.constant 15 : i32
    %366 = tpu.dynamic_rotate %347 by %c15_i32_31 dim 1 : vector<2x256xf32>, i32 -> vector<2x256xf32>
    %c255_i32_32 = arith.constant 255 : i32
    %367 = tpu.dynamic_rotate %347 by %c255_i32_32 dim 1 : vector<2x256xf32>, i32 -> vector<2x256xf32>
    %368 = arith.select %7, %366, %367 : vector<2x256xi1>, vector<2x256xf32>
    %c16_i32_33 = arith.constant 16 : i32
    %369 = tpu.dynamic_rotate %365 by %c16_i32_33 dim 1 : vector<2x256xf32>, i32 -> vector<2x256xf32>
    %c76 = arith.constant 76 : index
    %370 = memref.load %arg1[%c76] : memref<187xf32, #tpu.memory_space<smem>>
    %371 = vector.broadcast %370 : f32 to vector<2x256xf32>
    %372 = arith.mulf %371, %369 : vector<2x256xf32>
    %c77 = arith.constant 77 : index
    %373 = memref.load %arg1[%c77] : memref<187xf32, #tpu.memory_space<smem>>
    %374 = vector.broadcast %373 : f32 to vector<2x256xf32>
    %375 = arith.mulf %374, %369 : vector<2x256xf32>
    %c78 = arith.constant 78 : index
    %376 = memref.load %arg1[%c78] : memref<187xf32, #tpu.memory_space<smem>>
    %377 = vector.broadcast %376 : f32 to vector<2x256xf32>
    %378 = arith.mulf %377, %369 : vector<2x256xf32>
    %c16_i32_34 = arith.constant 16 : i32
    %379 = tpu.dynamic_rotate %347 by %c16_i32_34 dim 1 : vector<2x256xf32>, i32 -> vector<2x256xf32>
    %c79 = arith.constant 79 : index
    %380 = memref.load %arg1[%c79] : memref<187xf32, #tpu.memory_space<smem>>
    %381 = vector.broadcast %380 : f32 to vector<2x256xf32>
    %382 = arith.mulf %381, %379 : vector<2x256xf32>
    %383 = arith.addf %372, %382 : vector<2x256xf32>
    %c80 = arith.constant 80 : index
    %384 = memref.load %arg1[%c80] : memref<187xf32, #tpu.memory_space<smem>>
    %385 = vector.broadcast %384 : f32 to vector<2x256xf32>
    %386 = arith.mulf %385, %379 : vector<2x256xf32>
    %387 = arith.addf %375, %386 : vector<2x256xf32>
    %c81 = arith.constant 81 : index
    %388 = memref.load %arg1[%c81] : memref<187xf32, #tpu.memory_space<smem>>
    %389 = vector.broadcast %388 : f32 to vector<2x256xf32>
    %390 = arith.mulf %389, %379 : vector<2x256xf32>
    %391 = arith.addf %378, %390 : vector<2x256xf32>
    %c16_i32_35 = arith.constant 16 : i32
    %392 = tpu.dynamic_rotate %368 by %c16_i32_35 dim 1 : vector<2x256xf32>, i32 -> vector<2x256xf32>
    %c82 = arith.constant 82 : index
    %393 = memref.load %arg1[%c82] : memref<187xf32, #tpu.memory_space<smem>>
    %394 = vector.broadcast %393 : f32 to vector<2x256xf32>
    %395 = arith.mulf %394, %392 : vector<2x256xf32>
    %396 = arith.addf %383, %395 : vector<2x256xf32>
    %c83 = arith.constant 83 : index
    %397 = memref.load %arg1[%c83] : memref<187xf32, #tpu.memory_space<smem>>
    %398 = vector.broadcast %397 : f32 to vector<2x256xf32>
    %399 = arith.mulf %398, %392 : vector<2x256xf32>
    %400 = arith.addf %387, %399 : vector<2x256xf32>
    %c84 = arith.constant 84 : index
    %401 = memref.load %arg1[%c84] : memref<187xf32, #tpu.memory_space<smem>>
    %402 = vector.broadcast %401 : f32 to vector<2x256xf32>
    %403 = arith.mulf %402, %392 : vector<2x256xf32>
    %404 = arith.addf %391, %403 : vector<2x256xf32>
    %c85 = arith.constant 85 : index
    %405 = memref.load %arg1[%c85] : memref<187xf32, #tpu.memory_space<smem>>
    %406 = vector.broadcast %405 : f32 to vector<2x256xf32>
    %407 = arith.mulf %406, %365 : vector<2x256xf32>
    %408 = arith.addf %396, %407 : vector<2x256xf32>
    %c86 = arith.constant 86 : index
    %409 = memref.load %arg1[%c86] : memref<187xf32, #tpu.memory_space<smem>>
    %410 = vector.broadcast %409 : f32 to vector<2x256xf32>
    %411 = arith.mulf %410, %365 : vector<2x256xf32>
    %412 = arith.addf %400, %411 : vector<2x256xf32>
    %c87 = arith.constant 87 : index
    %413 = memref.load %arg1[%c87] : memref<187xf32, #tpu.memory_space<smem>>
    %414 = vector.broadcast %413 : f32 to vector<2x256xf32>
    %415 = arith.mulf %414, %365 : vector<2x256xf32>
    %416 = arith.addf %404, %415 : vector<2x256xf32>
    %c88 = arith.constant 88 : index
    %417 = memref.load %arg1[%c88] : memref<187xf32, #tpu.memory_space<smem>>
    %418 = vector.broadcast %417 : f32 to vector<2x256xf32>
    %419 = arith.mulf %418, %347 : vector<2x256xf32>
    %420 = arith.addf %408, %419 : vector<2x256xf32>
    %c89 = arith.constant 89 : index
    %421 = memref.load %arg1[%c89] : memref<187xf32, #tpu.memory_space<smem>>
    %422 = vector.broadcast %421 : f32 to vector<2x256xf32>
    %423 = arith.mulf %422, %347 : vector<2x256xf32>
    %424 = arith.addf %412, %423 : vector<2x256xf32>
    %c90 = arith.constant 90 : index
    %425 = memref.load %arg1[%c90] : memref<187xf32, #tpu.memory_space<smem>>
    %426 = vector.broadcast %425 : f32 to vector<2x256xf32>
    %427 = arith.mulf %426, %347 : vector<2x256xf32>
    %428 = arith.addf %416, %427 : vector<2x256xf32>
    %c91 = arith.constant 91 : index
    %429 = memref.load %arg1[%c91] : memref<187xf32, #tpu.memory_space<smem>>
    %430 = vector.broadcast %429 : f32 to vector<2x256xf32>
    %431 = arith.mulf %430, %368 : vector<2x256xf32>
    %432 = arith.addf %420, %431 : vector<2x256xf32>
    %c92 = arith.constant 92 : index
    %433 = memref.load %arg1[%c92] : memref<187xf32, #tpu.memory_space<smem>>
    %434 = vector.broadcast %433 : f32 to vector<2x256xf32>
    %435 = arith.mulf %434, %368 : vector<2x256xf32>
    %436 = arith.addf %424, %435 : vector<2x256xf32>
    %c93 = arith.constant 93 : index
    %437 = memref.load %arg1[%c93] : memref<187xf32, #tpu.memory_space<smem>>
    %438 = vector.broadcast %437 : f32 to vector<2x256xf32>
    %439 = arith.mulf %438, %368 : vector<2x256xf32>
    %440 = arith.addf %428, %439 : vector<2x256xf32>
    %c240_i32_36 = arith.constant 240 : i32
    %441 = tpu.dynamic_rotate %365 by %c240_i32_36 dim 1 : vector<2x256xf32>, i32 -> vector<2x256xf32>
    %c94 = arith.constant 94 : index
    %442 = memref.load %arg1[%c94] : memref<187xf32, #tpu.memory_space<smem>>
    %443 = vector.broadcast %442 : f32 to vector<2x256xf32>
    %444 = arith.mulf %443, %441 : vector<2x256xf32>
    %445 = arith.addf %432, %444 : vector<2x256xf32>
    %c95 = arith.constant 95 : index
    %446 = memref.load %arg1[%c95] : memref<187xf32, #tpu.memory_space<smem>>
    %447 = vector.broadcast %446 : f32 to vector<2x256xf32>
    %448 = arith.mulf %447, %441 : vector<2x256xf32>
    %449 = arith.addf %436, %448 : vector<2x256xf32>
    %c96 = arith.constant 96 : index
    %450 = memref.load %arg1[%c96] : memref<187xf32, #tpu.memory_space<smem>>
    %451 = vector.broadcast %450 : f32 to vector<2x256xf32>
    %452 = arith.mulf %451, %441 : vector<2x256xf32>
    %453 = arith.addf %440, %452 : vector<2x256xf32>
    %c240_i32_37 = arith.constant 240 : i32
    %454 = tpu.dynamic_rotate %347 by %c240_i32_37 dim 1 : vector<2x256xf32>, i32 -> vector<2x256xf32>
    %c97 = arith.constant 97 : index
    %455 = memref.load %arg1[%c97] : memref<187xf32, #tpu.memory_space<smem>>
    %456 = vector.broadcast %455 : f32 to vector<2x256xf32>
    %457 = arith.mulf %456, %454 : vector<2x256xf32>
    %458 = arith.addf %445, %457 : vector<2x256xf32>
    %c98 = arith.constant 98 : index
    %459 = memref.load %arg1[%c98] : memref<187xf32, #tpu.memory_space<smem>>
    %460 = vector.broadcast %459 : f32 to vector<2x256xf32>
    %461 = arith.mulf %460, %454 : vector<2x256xf32>
    %462 = arith.addf %449, %461 : vector<2x256xf32>
    %c99 = arith.constant 99 : index
    %463 = memref.load %arg1[%c99] : memref<187xf32, #tpu.memory_space<smem>>
    %464 = vector.broadcast %463 : f32 to vector<2x256xf32>
    %465 = arith.mulf %464, %454 : vector<2x256xf32>
    %466 = arith.addf %453, %465 : vector<2x256xf32>
    %c240_i32_38 = arith.constant 240 : i32
    %467 = tpu.dynamic_rotate %368 by %c240_i32_38 dim 1 : vector<2x256xf32>, i32 -> vector<2x256xf32>
    %c100 = arith.constant 100 : index
    %468 = memref.load %arg1[%c100] : memref<187xf32, #tpu.memory_space<smem>>
    %469 = vector.broadcast %468 : f32 to vector<2x256xf32>
    %470 = arith.mulf %469, %467 : vector<2x256xf32>
    %471 = arith.addf %458, %470 : vector<2x256xf32>
    %c101 = arith.constant 101 : index
    %472 = memref.load %arg1[%c101] : memref<187xf32, #tpu.memory_space<smem>>
    %473 = vector.broadcast %472 : f32 to vector<2x256xf32>
    %474 = arith.mulf %473, %467 : vector<2x256xf32>
    %475 = arith.addf %462, %474 : vector<2x256xf32>
    %c102 = arith.constant 102 : index
    %476 = memref.load %arg1[%c102] : memref<187xf32, #tpu.memory_space<smem>>
    %477 = vector.broadcast %476 : f32 to vector<2x256xf32>
    %478 = arith.mulf %477, %467 : vector<2x256xf32>
    %479 = arith.addf %466, %478 : vector<2x256xf32>
    %c241_i32_39 = arith.constant 241 : i32
    %480 = tpu.dynamic_rotate %352 by %c241_i32_39 dim 1 : vector<2x256xf32>, i32 -> vector<2x256xf32>
    %c1_i32_40 = arith.constant 1 : i32
    %481 = tpu.dynamic_rotate %352 by %c1_i32_40 dim 1 : vector<2x256xf32>, i32 -> vector<2x256xf32>
    %482 = arith.select %5, %480, %481 : vector<2x256xi1>, vector<2x256xf32>
    %c15_i32_41 = arith.constant 15 : i32
    %483 = tpu.dynamic_rotate %352 by %c15_i32_41 dim 1 : vector<2x256xf32>, i32 -> vector<2x256xf32>
    %c255_i32_42 = arith.constant 255 : i32
    %484 = tpu.dynamic_rotate %352 by %c255_i32_42 dim 1 : vector<2x256xf32>, i32 -> vector<2x256xf32>
    %485 = arith.select %7, %483, %484 : vector<2x256xi1>, vector<2x256xf32>
    %c16_i32_43 = arith.constant 16 : i32
    %486 = tpu.dynamic_rotate %482 by %c16_i32_43 dim 1 : vector<2x256xf32>, i32 -> vector<2x256xf32>
    %c103 = arith.constant 103 : index
    %487 = memref.load %arg1[%c103] : memref<187xf32, #tpu.memory_space<smem>>
    %488 = vector.broadcast %487 : f32 to vector<2x256xf32>
    %489 = arith.mulf %488, %486 : vector<2x256xf32>
    %490 = arith.addf %471, %489 : vector<2x256xf32>
    %c104 = arith.constant 104 : index
    %491 = memref.load %arg1[%c104] : memref<187xf32, #tpu.memory_space<smem>>
    %492 = vector.broadcast %491 : f32 to vector<2x256xf32>
    %493 = arith.mulf %492, %486 : vector<2x256xf32>
    %494 = arith.addf %475, %493 : vector<2x256xf32>
    %c105 = arith.constant 105 : index
    %495 = memref.load %arg1[%c105] : memref<187xf32, #tpu.memory_space<smem>>
    %496 = vector.broadcast %495 : f32 to vector<2x256xf32>
    %497 = arith.mulf %496, %486 : vector<2x256xf32>
    %498 = arith.addf %479, %497 : vector<2x256xf32>
    %c16_i32_44 = arith.constant 16 : i32
    %499 = tpu.dynamic_rotate %352 by %c16_i32_44 dim 1 : vector<2x256xf32>, i32 -> vector<2x256xf32>
    %c106 = arith.constant 106 : index
    %500 = memref.load %arg1[%c106] : memref<187xf32, #tpu.memory_space<smem>>
    %501 = vector.broadcast %500 : f32 to vector<2x256xf32>
    %502 = arith.mulf %501, %499 : vector<2x256xf32>
    %503 = arith.addf %490, %502 : vector<2x256xf32>
    %c107 = arith.constant 107 : index
    %504 = memref.load %arg1[%c107] : memref<187xf32, #tpu.memory_space<smem>>
    %505 = vector.broadcast %504 : f32 to vector<2x256xf32>
    %506 = arith.mulf %505, %499 : vector<2x256xf32>
    %507 = arith.addf %494, %506 : vector<2x256xf32>
    %c108 = arith.constant 108 : index
    %508 = memref.load %arg1[%c108] : memref<187xf32, #tpu.memory_space<smem>>
    %509 = vector.broadcast %508 : f32 to vector<2x256xf32>
    %510 = arith.mulf %509, %499 : vector<2x256xf32>
    %511 = arith.addf %498, %510 : vector<2x256xf32>
    %c16_i32_45 = arith.constant 16 : i32
    %512 = tpu.dynamic_rotate %485 by %c16_i32_45 dim 1 : vector<2x256xf32>, i32 -> vector<2x256xf32>
    %c109 = arith.constant 109 : index
    %513 = memref.load %arg1[%c109] : memref<187xf32, #tpu.memory_space<smem>>
    %514 = vector.broadcast %513 : f32 to vector<2x256xf32>
    %515 = arith.mulf %514, %512 : vector<2x256xf32>
    %516 = arith.addf %503, %515 : vector<2x256xf32>
    %c110 = arith.constant 110 : index
    %517 = memref.load %arg1[%c110] : memref<187xf32, #tpu.memory_space<smem>>
    %518 = vector.broadcast %517 : f32 to vector<2x256xf32>
    %519 = arith.mulf %518, %512 : vector<2x256xf32>
    %520 = arith.addf %507, %519 : vector<2x256xf32>
    %c111 = arith.constant 111 : index
    %521 = memref.load %arg1[%c111] : memref<187xf32, #tpu.memory_space<smem>>
    %522 = vector.broadcast %521 : f32 to vector<2x256xf32>
    %523 = arith.mulf %522, %512 : vector<2x256xf32>
    %524 = arith.addf %511, %523 : vector<2x256xf32>
    %c112 = arith.constant 112 : index
    %525 = memref.load %arg1[%c112] : memref<187xf32, #tpu.memory_space<smem>>
    %526 = vector.broadcast %525 : f32 to vector<2x256xf32>
    %527 = arith.mulf %526, %482 : vector<2x256xf32>
    %528 = arith.addf %516, %527 : vector<2x256xf32>
    %c113 = arith.constant 113 : index
    %529 = memref.load %arg1[%c113] : memref<187xf32, #tpu.memory_space<smem>>
    %530 = vector.broadcast %529 : f32 to vector<2x256xf32>
    %531 = arith.mulf %530, %482 : vector<2x256xf32>
    %532 = arith.addf %520, %531 : vector<2x256xf32>
    %c114 = arith.constant 114 : index
    %533 = memref.load %arg1[%c114] : memref<187xf32, #tpu.memory_space<smem>>
    %534 = vector.broadcast %533 : f32 to vector<2x256xf32>
    %535 = arith.mulf %534, %482 : vector<2x256xf32>
    %536 = arith.addf %524, %535 : vector<2x256xf32>
    %c115 = arith.constant 115 : index
    %537 = memref.load %arg1[%c115] : memref<187xf32, #tpu.memory_space<smem>>
    %538 = vector.broadcast %537 : f32 to vector<2x256xf32>
    %539 = arith.mulf %538, %352 : vector<2x256xf32>
    %540 = arith.addf %528, %539 : vector<2x256xf32>
    %c116 = arith.constant 116 : index
    %541 = memref.load %arg1[%c116] : memref<187xf32, #tpu.memory_space<smem>>
    %542 = vector.broadcast %541 : f32 to vector<2x256xf32>
    %543 = arith.mulf %542, %352 : vector<2x256xf32>
    %544 = arith.addf %532, %543 : vector<2x256xf32>
    %c117 = arith.constant 117 : index
    %545 = memref.load %arg1[%c117] : memref<187xf32, #tpu.memory_space<smem>>
    %546 = vector.broadcast %545 : f32 to vector<2x256xf32>
    %547 = arith.mulf %546, %352 : vector<2x256xf32>
    %548 = arith.addf %536, %547 : vector<2x256xf32>
    %c118 = arith.constant 118 : index
    %549 = memref.load %arg1[%c118] : memref<187xf32, #tpu.memory_space<smem>>
    %550 = vector.broadcast %549 : f32 to vector<2x256xf32>
    %551 = arith.mulf %550, %485 : vector<2x256xf32>
    %552 = arith.addf %540, %551 : vector<2x256xf32>
    %c119 = arith.constant 119 : index
    %553 = memref.load %arg1[%c119] : memref<187xf32, #tpu.memory_space<smem>>
    %554 = vector.broadcast %553 : f32 to vector<2x256xf32>
    %555 = arith.mulf %554, %485 : vector<2x256xf32>
    %556 = arith.addf %544, %555 : vector<2x256xf32>
    %c120 = arith.constant 120 : index
    %557 = memref.load %arg1[%c120] : memref<187xf32, #tpu.memory_space<smem>>
    %558 = vector.broadcast %557 : f32 to vector<2x256xf32>
    %559 = arith.mulf %558, %485 : vector<2x256xf32>
    %560 = arith.addf %548, %559 : vector<2x256xf32>
    %c240_i32_46 = arith.constant 240 : i32
    %561 = tpu.dynamic_rotate %482 by %c240_i32_46 dim 1 : vector<2x256xf32>, i32 -> vector<2x256xf32>
    %c121 = arith.constant 121 : index
    %562 = memref.load %arg1[%c121] : memref<187xf32, #tpu.memory_space<smem>>
    %563 = vector.broadcast %562 : f32 to vector<2x256xf32>
    %564 = arith.mulf %563, %561 : vector<2x256xf32>
    %565 = arith.addf %552, %564 : vector<2x256xf32>
    %c122 = arith.constant 122 : index
    %566 = memref.load %arg1[%c122] : memref<187xf32, #tpu.memory_space<smem>>
    %567 = vector.broadcast %566 : f32 to vector<2x256xf32>
    %568 = arith.mulf %567, %561 : vector<2x256xf32>
    %569 = arith.addf %556, %568 : vector<2x256xf32>
    %c123 = arith.constant 123 : index
    %570 = memref.load %arg1[%c123] : memref<187xf32, #tpu.memory_space<smem>>
    %571 = vector.broadcast %570 : f32 to vector<2x256xf32>
    %572 = arith.mulf %571, %561 : vector<2x256xf32>
    %573 = arith.addf %560, %572 : vector<2x256xf32>
    %c240_i32_47 = arith.constant 240 : i32
    %574 = tpu.dynamic_rotate %352 by %c240_i32_47 dim 1 : vector<2x256xf32>, i32 -> vector<2x256xf32>
    %c124 = arith.constant 124 : index
    %575 = memref.load %arg1[%c124] : memref<187xf32, #tpu.memory_space<smem>>
    %576 = vector.broadcast %575 : f32 to vector<2x256xf32>
    %577 = arith.mulf %576, %574 : vector<2x256xf32>
    %578 = arith.addf %565, %577 : vector<2x256xf32>
    %c125 = arith.constant 125 : index
    %579 = memref.load %arg1[%c125] : memref<187xf32, #tpu.memory_space<smem>>
    %580 = vector.broadcast %579 : f32 to vector<2x256xf32>
    %581 = arith.mulf %580, %574 : vector<2x256xf32>
    %582 = arith.addf %569, %581 : vector<2x256xf32>
    %c126 = arith.constant 126 : index
    %583 = memref.load %arg1[%c126] : memref<187xf32, #tpu.memory_space<smem>>
    %584 = vector.broadcast %583 : f32 to vector<2x256xf32>
    %585 = arith.mulf %584, %574 : vector<2x256xf32>
    %586 = arith.addf %573, %585 : vector<2x256xf32>
    %c240_i32_48 = arith.constant 240 : i32
    %587 = tpu.dynamic_rotate %485 by %c240_i32_48 dim 1 : vector<2x256xf32>, i32 -> vector<2x256xf32>
    %c127 = arith.constant 127 : index
    %588 = memref.load %arg1[%c127] : memref<187xf32, #tpu.memory_space<smem>>
    %589 = vector.broadcast %588 : f32 to vector<2x256xf32>
    %590 = arith.mulf %589, %587 : vector<2x256xf32>
    %591 = arith.addf %578, %590 : vector<2x256xf32>
    %c128 = arith.constant 128 : index
    %592 = memref.load %arg1[%c128] : memref<187xf32, #tpu.memory_space<smem>>
    %593 = vector.broadcast %592 : f32 to vector<2x256xf32>
    %594 = arith.mulf %593, %587 : vector<2x256xf32>
    %595 = arith.addf %582, %594 : vector<2x256xf32>
    %c129 = arith.constant 129 : index
    %596 = memref.load %arg1[%c129] : memref<187xf32, #tpu.memory_space<smem>>
    %597 = vector.broadcast %596 : f32 to vector<2x256xf32>
    %598 = arith.mulf %597, %587 : vector<2x256xf32>
    %599 = arith.addf %586, %598 : vector<2x256xf32>
    %c241_i32_49 = arith.constant 241 : i32
    %600 = tpu.dynamic_rotate %357 by %c241_i32_49 dim 1 : vector<2x256xf32>, i32 -> vector<2x256xf32>
    %c1_i32_50 = arith.constant 1 : i32
    %601 = tpu.dynamic_rotate %357 by %c1_i32_50 dim 1 : vector<2x256xf32>, i32 -> vector<2x256xf32>
    %602 = arith.select %5, %600, %601 : vector<2x256xi1>, vector<2x256xf32>
    %c15_i32_51 = arith.constant 15 : i32
    %603 = tpu.dynamic_rotate %357 by %c15_i32_51 dim 1 : vector<2x256xf32>, i32 -> vector<2x256xf32>
    %c255_i32_52 = arith.constant 255 : i32
    %604 = tpu.dynamic_rotate %357 by %c255_i32_52 dim 1 : vector<2x256xf32>, i32 -> vector<2x256xf32>
    %605 = arith.select %7, %603, %604 : vector<2x256xi1>, vector<2x256xf32>
    %c16_i32_53 = arith.constant 16 : i32
    %606 = tpu.dynamic_rotate %602 by %c16_i32_53 dim 1 : vector<2x256xf32>, i32 -> vector<2x256xf32>
    %c130 = arith.constant 130 : index
    %607 = memref.load %arg1[%c130] : memref<187xf32, #tpu.memory_space<smem>>
    %608 = vector.broadcast %607 : f32 to vector<2x256xf32>
    %609 = arith.mulf %608, %606 : vector<2x256xf32>
    %610 = arith.addf %591, %609 : vector<2x256xf32>
    %c131 = arith.constant 131 : index
    %611 = memref.load %arg1[%c131] : memref<187xf32, #tpu.memory_space<smem>>
    %612 = vector.broadcast %611 : f32 to vector<2x256xf32>
    %613 = arith.mulf %612, %606 : vector<2x256xf32>
    %614 = arith.addf %595, %613 : vector<2x256xf32>
    %c132 = arith.constant 132 : index
    %615 = memref.load %arg1[%c132] : memref<187xf32, #tpu.memory_space<smem>>
    %616 = vector.broadcast %615 : f32 to vector<2x256xf32>
    %617 = arith.mulf %616, %606 : vector<2x256xf32>
    %618 = arith.addf %599, %617 : vector<2x256xf32>
    %c16_i32_54 = arith.constant 16 : i32
    %619 = tpu.dynamic_rotate %357 by %c16_i32_54 dim 1 : vector<2x256xf32>, i32 -> vector<2x256xf32>
    %c133 = arith.constant 133 : index
    %620 = memref.load %arg1[%c133] : memref<187xf32, #tpu.memory_space<smem>>
    %621 = vector.broadcast %620 : f32 to vector<2x256xf32>
    %622 = arith.mulf %621, %619 : vector<2x256xf32>
    %623 = arith.addf %610, %622 : vector<2x256xf32>
    %c134 = arith.constant 134 : index
    %624 = memref.load %arg1[%c134] : memref<187xf32, #tpu.memory_space<smem>>
    %625 = vector.broadcast %624 : f32 to vector<2x256xf32>
    %626 = arith.mulf %625, %619 : vector<2x256xf32>
    %627 = arith.addf %614, %626 : vector<2x256xf32>
    %c135 = arith.constant 135 : index
    %628 = memref.load %arg1[%c135] : memref<187xf32, #tpu.memory_space<smem>>
    %629 = vector.broadcast %628 : f32 to vector<2x256xf32>
    %630 = arith.mulf %629, %619 : vector<2x256xf32>
    %631 = arith.addf %618, %630 : vector<2x256xf32>
    %c16_i32_55 = arith.constant 16 : i32
    %632 = tpu.dynamic_rotate %605 by %c16_i32_55 dim 1 : vector<2x256xf32>, i32 -> vector<2x256xf32>
    %c136 = arith.constant 136 : index
    %633 = memref.load %arg1[%c136] : memref<187xf32, #tpu.memory_space<smem>>
    %634 = vector.broadcast %633 : f32 to vector<2x256xf32>
    %635 = arith.mulf %634, %632 : vector<2x256xf32>
    %636 = arith.addf %623, %635 : vector<2x256xf32>
    %c137 = arith.constant 137 : index
    %637 = memref.load %arg1[%c137] : memref<187xf32, #tpu.memory_space<smem>>
    %638 = vector.broadcast %637 : f32 to vector<2x256xf32>
    %639 = arith.mulf %638, %632 : vector<2x256xf32>
    %640 = arith.addf %627, %639 : vector<2x256xf32>
    %c138 = arith.constant 138 : index
    %641 = memref.load %arg1[%c138] : memref<187xf32, #tpu.memory_space<smem>>
    %642 = vector.broadcast %641 : f32 to vector<2x256xf32>
    %643 = arith.mulf %642, %632 : vector<2x256xf32>
    %644 = arith.addf %631, %643 : vector<2x256xf32>
    %c139 = arith.constant 139 : index
    %645 = memref.load %arg1[%c139] : memref<187xf32, #tpu.memory_space<smem>>
    %646 = vector.broadcast %645 : f32 to vector<2x256xf32>
    %647 = arith.mulf %646, %602 : vector<2x256xf32>
    %648 = arith.addf %636, %647 : vector<2x256xf32>
    %c140 = arith.constant 140 : index
    %649 = memref.load %arg1[%c140] : memref<187xf32, #tpu.memory_space<smem>>
    %650 = vector.broadcast %649 : f32 to vector<2x256xf32>
    %651 = arith.mulf %650, %602 : vector<2x256xf32>
    %652 = arith.addf %640, %651 : vector<2x256xf32>
    %c141 = arith.constant 141 : index
    %653 = memref.load %arg1[%c141] : memref<187xf32, #tpu.memory_space<smem>>
    %654 = vector.broadcast %653 : f32 to vector<2x256xf32>
    %655 = arith.mulf %654, %602 : vector<2x256xf32>
    %656 = arith.addf %644, %655 : vector<2x256xf32>
    %c142 = arith.constant 142 : index
    %657 = memref.load %arg1[%c142] : memref<187xf32, #tpu.memory_space<smem>>
    %658 = vector.broadcast %657 : f32 to vector<2x256xf32>
    %659 = arith.mulf %658, %357 : vector<2x256xf32>
    %660 = arith.addf %648, %659 : vector<2x256xf32>
    %c143 = arith.constant 143 : index
    %661 = memref.load %arg1[%c143] : memref<187xf32, #tpu.memory_space<smem>>
    %662 = vector.broadcast %661 : f32 to vector<2x256xf32>
    %663 = arith.mulf %662, %357 : vector<2x256xf32>
    %664 = arith.addf %652, %663 : vector<2x256xf32>
    %c144 = arith.constant 144 : index
    %665 = memref.load %arg1[%c144] : memref<187xf32, #tpu.memory_space<smem>>
    %666 = vector.broadcast %665 : f32 to vector<2x256xf32>
    %667 = arith.mulf %666, %357 : vector<2x256xf32>
    %668 = arith.addf %656, %667 : vector<2x256xf32>
    %c145 = arith.constant 145 : index
    %669 = memref.load %arg1[%c145] : memref<187xf32, #tpu.memory_space<smem>>
    %670 = vector.broadcast %669 : f32 to vector<2x256xf32>
    %671 = arith.mulf %670, %605 : vector<2x256xf32>
    %672 = arith.addf %660, %671 : vector<2x256xf32>
    %c146 = arith.constant 146 : index
    %673 = memref.load %arg1[%c146] : memref<187xf32, #tpu.memory_space<smem>>
    %674 = vector.broadcast %673 : f32 to vector<2x256xf32>
    %675 = arith.mulf %674, %605 : vector<2x256xf32>
    %676 = arith.addf %664, %675 : vector<2x256xf32>
    %c147 = arith.constant 147 : index
    %677 = memref.load %arg1[%c147] : memref<187xf32, #tpu.memory_space<smem>>
    %678 = vector.broadcast %677 : f32 to vector<2x256xf32>
    %679 = arith.mulf %678, %605 : vector<2x256xf32>
    %680 = arith.addf %668, %679 : vector<2x256xf32>
    %c240_i32_56 = arith.constant 240 : i32
    %681 = tpu.dynamic_rotate %602 by %c240_i32_56 dim 1 : vector<2x256xf32>, i32 -> vector<2x256xf32>
    %c148 = arith.constant 148 : index
    %682 = memref.load %arg1[%c148] : memref<187xf32, #tpu.memory_space<smem>>
    %683 = vector.broadcast %682 : f32 to vector<2x256xf32>
    %684 = arith.mulf %683, %681 : vector<2x256xf32>
    %685 = arith.addf %672, %684 : vector<2x256xf32>
    %c149 = arith.constant 149 : index
    %686 = memref.load %arg1[%c149] : memref<187xf32, #tpu.memory_space<smem>>
    %687 = vector.broadcast %686 : f32 to vector<2x256xf32>
    %688 = arith.mulf %687, %681 : vector<2x256xf32>
    %689 = arith.addf %676, %688 : vector<2x256xf32>
    %c150 = arith.constant 150 : index
    %690 = memref.load %arg1[%c150] : memref<187xf32, #tpu.memory_space<smem>>
    %691 = vector.broadcast %690 : f32 to vector<2x256xf32>
    %692 = arith.mulf %691, %681 : vector<2x256xf32>
    %693 = arith.addf %680, %692 : vector<2x256xf32>
    %c240_i32_57 = arith.constant 240 : i32
    %694 = tpu.dynamic_rotate %357 by %c240_i32_57 dim 1 : vector<2x256xf32>, i32 -> vector<2x256xf32>
    %c151 = arith.constant 151 : index
    %695 = memref.load %arg1[%c151] : memref<187xf32, #tpu.memory_space<smem>>
    %696 = vector.broadcast %695 : f32 to vector<2x256xf32>
    %697 = arith.mulf %696, %694 : vector<2x256xf32>
    %698 = arith.addf %685, %697 : vector<2x256xf32>
    %c152 = arith.constant 152 : index
    %699 = memref.load %arg1[%c152] : memref<187xf32, #tpu.memory_space<smem>>
    %700 = vector.broadcast %699 : f32 to vector<2x256xf32>
    %701 = arith.mulf %700, %694 : vector<2x256xf32>
    %702 = arith.addf %689, %701 : vector<2x256xf32>
    %c153 = arith.constant 153 : index
    %703 = memref.load %arg1[%c153] : memref<187xf32, #tpu.memory_space<smem>>
    %704 = vector.broadcast %703 : f32 to vector<2x256xf32>
    %705 = arith.mulf %704, %694 : vector<2x256xf32>
    %706 = arith.addf %693, %705 : vector<2x256xf32>
    %c240_i32_58 = arith.constant 240 : i32
    %707 = tpu.dynamic_rotate %605 by %c240_i32_58 dim 1 : vector<2x256xf32>, i32 -> vector<2x256xf32>
    %c154 = arith.constant 154 : index
    %708 = memref.load %arg1[%c154] : memref<187xf32, #tpu.memory_space<smem>>
    %709 = vector.broadcast %708 : f32 to vector<2x256xf32>
    %710 = arith.mulf %709, %707 : vector<2x256xf32>
    %711 = arith.addf %698, %710 : vector<2x256xf32>
    %c155 = arith.constant 155 : index
    %712 = memref.load %arg1[%c155] : memref<187xf32, #tpu.memory_space<smem>>
    %713 = vector.broadcast %712 : f32 to vector<2x256xf32>
    %714 = arith.mulf %713, %707 : vector<2x256xf32>
    %715 = arith.addf %702, %714 : vector<2x256xf32>
    %c156 = arith.constant 156 : index
    %716 = memref.load %arg1[%c156] : memref<187xf32, #tpu.memory_space<smem>>
    %717 = vector.broadcast %716 : f32 to vector<2x256xf32>
    %718 = arith.mulf %717, %707 : vector<2x256xf32>
    %719 = arith.addf %706, %718 : vector<2x256xf32>
    %c241_i32_59 = arith.constant 241 : i32
    %720 = tpu.dynamic_rotate %362 by %c241_i32_59 dim 1 : vector<2x256xf32>, i32 -> vector<2x256xf32>
    %c1_i32_60 = arith.constant 1 : i32
    %721 = tpu.dynamic_rotate %362 by %c1_i32_60 dim 1 : vector<2x256xf32>, i32 -> vector<2x256xf32>
    %722 = arith.select %5, %720, %721 : vector<2x256xi1>, vector<2x256xf32>
    %c15_i32_61 = arith.constant 15 : i32
    %723 = tpu.dynamic_rotate %362 by %c15_i32_61 dim 1 : vector<2x256xf32>, i32 -> vector<2x256xf32>
    %c255_i32_62 = arith.constant 255 : i32
    %724 = tpu.dynamic_rotate %362 by %c255_i32_62 dim 1 : vector<2x256xf32>, i32 -> vector<2x256xf32>
    %725 = arith.select %7, %723, %724 : vector<2x256xi1>, vector<2x256xf32>
    %c16_i32_63 = arith.constant 16 : i32
    %726 = tpu.dynamic_rotate %722 by %c16_i32_63 dim 1 : vector<2x256xf32>, i32 -> vector<2x256xf32>
    %c157 = arith.constant 157 : index
    %727 = memref.load %arg1[%c157] : memref<187xf32, #tpu.memory_space<smem>>
    %728 = vector.broadcast %727 : f32 to vector<2x256xf32>
    %729 = arith.mulf %728, %726 : vector<2x256xf32>
    %730 = arith.addf %711, %729 : vector<2x256xf32>
    %c158 = arith.constant 158 : index
    %731 = memref.load %arg1[%c158] : memref<187xf32, #tpu.memory_space<smem>>
    %732 = vector.broadcast %731 : f32 to vector<2x256xf32>
    %733 = arith.mulf %732, %726 : vector<2x256xf32>
    %734 = arith.addf %715, %733 : vector<2x256xf32>
    %c159 = arith.constant 159 : index
    %735 = memref.load %arg1[%c159] : memref<187xf32, #tpu.memory_space<smem>>
    %736 = vector.broadcast %735 : f32 to vector<2x256xf32>
    %737 = arith.mulf %736, %726 : vector<2x256xf32>
    %738 = arith.addf %719, %737 : vector<2x256xf32>
    %c16_i32_64 = arith.constant 16 : i32
    %739 = tpu.dynamic_rotate %362 by %c16_i32_64 dim 1 : vector<2x256xf32>, i32 -> vector<2x256xf32>
    %c160 = arith.constant 160 : index
    %740 = memref.load %arg1[%c160] : memref<187xf32, #tpu.memory_space<smem>>
    %741 = vector.broadcast %740 : f32 to vector<2x256xf32>
    %742 = arith.mulf %741, %739 : vector<2x256xf32>
    %743 = arith.addf %730, %742 : vector<2x256xf32>
    %c161 = arith.constant 161 : index
    %744 = memref.load %arg1[%c161] : memref<187xf32, #tpu.memory_space<smem>>
    %745 = vector.broadcast %744 : f32 to vector<2x256xf32>
    %746 = arith.mulf %745, %739 : vector<2x256xf32>
    %747 = arith.addf %734, %746 : vector<2x256xf32>
    %c162 = arith.constant 162 : index
    %748 = memref.load %arg1[%c162] : memref<187xf32, #tpu.memory_space<smem>>
    %749 = vector.broadcast %748 : f32 to vector<2x256xf32>
    %750 = arith.mulf %749, %739 : vector<2x256xf32>
    %751 = arith.addf %738, %750 : vector<2x256xf32>
    %c16_i32_65 = arith.constant 16 : i32
    %752 = tpu.dynamic_rotate %725 by %c16_i32_65 dim 1 : vector<2x256xf32>, i32 -> vector<2x256xf32>
    %c163 = arith.constant 163 : index
    %753 = memref.load %arg1[%c163] : memref<187xf32, #tpu.memory_space<smem>>
    %754 = vector.broadcast %753 : f32 to vector<2x256xf32>
    %755 = arith.mulf %754, %752 : vector<2x256xf32>
    %756 = arith.addf %743, %755 : vector<2x256xf32>
    %c164 = arith.constant 164 : index
    %757 = memref.load %arg1[%c164] : memref<187xf32, #tpu.memory_space<smem>>
    %758 = vector.broadcast %757 : f32 to vector<2x256xf32>
    %759 = arith.mulf %758, %752 : vector<2x256xf32>
    %760 = arith.addf %747, %759 : vector<2x256xf32>
    %c165 = arith.constant 165 : index
    %761 = memref.load %arg1[%c165] : memref<187xf32, #tpu.memory_space<smem>>
    %762 = vector.broadcast %761 : f32 to vector<2x256xf32>
    %763 = arith.mulf %762, %752 : vector<2x256xf32>
    %764 = arith.addf %751, %763 : vector<2x256xf32>
    %c166 = arith.constant 166 : index
    %765 = memref.load %arg1[%c166] : memref<187xf32, #tpu.memory_space<smem>>
    %766 = vector.broadcast %765 : f32 to vector<2x256xf32>
    %767 = arith.mulf %766, %722 : vector<2x256xf32>
    %768 = arith.addf %756, %767 : vector<2x256xf32>
    %c167 = arith.constant 167 : index
    %769 = memref.load %arg1[%c167] : memref<187xf32, #tpu.memory_space<smem>>
    %770 = vector.broadcast %769 : f32 to vector<2x256xf32>
    %771 = arith.mulf %770, %722 : vector<2x256xf32>
    %772 = arith.addf %760, %771 : vector<2x256xf32>
    %c168 = arith.constant 168 : index
    %773 = memref.load %arg1[%c168] : memref<187xf32, #tpu.memory_space<smem>>
    %774 = vector.broadcast %773 : f32 to vector<2x256xf32>
    %775 = arith.mulf %774, %722 : vector<2x256xf32>
    %776 = arith.addf %764, %775 : vector<2x256xf32>
    %c169 = arith.constant 169 : index
    %777 = memref.load %arg1[%c169] : memref<187xf32, #tpu.memory_space<smem>>
    %778 = vector.broadcast %777 : f32 to vector<2x256xf32>
    %779 = arith.mulf %778, %362 : vector<2x256xf32>
    %780 = arith.addf %768, %779 : vector<2x256xf32>
    %c170 = arith.constant 170 : index
    %781 = memref.load %arg1[%c170] : memref<187xf32, #tpu.memory_space<smem>>
    %782 = vector.broadcast %781 : f32 to vector<2x256xf32>
    %783 = arith.mulf %782, %362 : vector<2x256xf32>
    %784 = arith.addf %772, %783 : vector<2x256xf32>
    %c171 = arith.constant 171 : index
    %785 = memref.load %arg1[%c171] : memref<187xf32, #tpu.memory_space<smem>>
    %786 = vector.broadcast %785 : f32 to vector<2x256xf32>
    %787 = arith.mulf %786, %362 : vector<2x256xf32>
    %788 = arith.addf %776, %787 : vector<2x256xf32>
    %c172 = arith.constant 172 : index
    %789 = memref.load %arg1[%c172] : memref<187xf32, #tpu.memory_space<smem>>
    %790 = vector.broadcast %789 : f32 to vector<2x256xf32>
    %791 = arith.mulf %790, %725 : vector<2x256xf32>
    %792 = arith.addf %780, %791 : vector<2x256xf32>
    %c173 = arith.constant 173 : index
    %793 = memref.load %arg1[%c173] : memref<187xf32, #tpu.memory_space<smem>>
    %794 = vector.broadcast %793 : f32 to vector<2x256xf32>
    %795 = arith.mulf %794, %725 : vector<2x256xf32>
    %796 = arith.addf %784, %795 : vector<2x256xf32>
    %c174 = arith.constant 174 : index
    %797 = memref.load %arg1[%c174] : memref<187xf32, #tpu.memory_space<smem>>
    %798 = vector.broadcast %797 : f32 to vector<2x256xf32>
    %799 = arith.mulf %798, %725 : vector<2x256xf32>
    %800 = arith.addf %788, %799 : vector<2x256xf32>
    %c240_i32_66 = arith.constant 240 : i32
    %801 = tpu.dynamic_rotate %722 by %c240_i32_66 dim 1 : vector<2x256xf32>, i32 -> vector<2x256xf32>
    %c175 = arith.constant 175 : index
    %802 = memref.load %arg1[%c175] : memref<187xf32, #tpu.memory_space<smem>>
    %803 = vector.broadcast %802 : f32 to vector<2x256xf32>
    %804 = arith.mulf %803, %801 : vector<2x256xf32>
    %805 = arith.addf %792, %804 : vector<2x256xf32>
    %c176 = arith.constant 176 : index
    %806 = memref.load %arg1[%c176] : memref<187xf32, #tpu.memory_space<smem>>
    %807 = vector.broadcast %806 : f32 to vector<2x256xf32>
    %808 = arith.mulf %807, %801 : vector<2x256xf32>
    %809 = arith.addf %796, %808 : vector<2x256xf32>
    %c177 = arith.constant 177 : index
    %810 = memref.load %arg1[%c177] : memref<187xf32, #tpu.memory_space<smem>>
    %811 = vector.broadcast %810 : f32 to vector<2x256xf32>
    %812 = arith.mulf %811, %801 : vector<2x256xf32>
    %813 = arith.addf %800, %812 : vector<2x256xf32>
    %c240_i32_67 = arith.constant 240 : i32
    %814 = tpu.dynamic_rotate %362 by %c240_i32_67 dim 1 : vector<2x256xf32>, i32 -> vector<2x256xf32>
    %c178 = arith.constant 178 : index
    %815 = memref.load %arg1[%c178] : memref<187xf32, #tpu.memory_space<smem>>
    %816 = vector.broadcast %815 : f32 to vector<2x256xf32>
    %817 = arith.mulf %816, %814 : vector<2x256xf32>
    %818 = arith.addf %805, %817 : vector<2x256xf32>
    %c179 = arith.constant 179 : index
    %819 = memref.load %arg1[%c179] : memref<187xf32, #tpu.memory_space<smem>>
    %820 = vector.broadcast %819 : f32 to vector<2x256xf32>
    %821 = arith.mulf %820, %814 : vector<2x256xf32>
    %822 = arith.addf %809, %821 : vector<2x256xf32>
    %c180 = arith.constant 180 : index
    %823 = memref.load %arg1[%c180] : memref<187xf32, #tpu.memory_space<smem>>
    %824 = vector.broadcast %823 : f32 to vector<2x256xf32>
    %825 = arith.mulf %824, %814 : vector<2x256xf32>
    %826 = arith.addf %813, %825 : vector<2x256xf32>
    %c240_i32_68 = arith.constant 240 : i32
    %827 = tpu.dynamic_rotate %725 by %c240_i32_68 dim 1 : vector<2x256xf32>, i32 -> vector<2x256xf32>
    %c181 = arith.constant 181 : index
    %828 = memref.load %arg1[%c181] : memref<187xf32, #tpu.memory_space<smem>>
    %829 = vector.broadcast %828 : f32 to vector<2x256xf32>
    %830 = arith.mulf %829, %827 : vector<2x256xf32>
    %831 = arith.addf %818, %830 : vector<2x256xf32>
    %c182 = arith.constant 182 : index
    %832 = memref.load %arg1[%c182] : memref<187xf32, #tpu.memory_space<smem>>
    %833 = vector.broadcast %832 : f32 to vector<2x256xf32>
    %834 = arith.mulf %833, %827 : vector<2x256xf32>
    %835 = arith.addf %822, %834 : vector<2x256xf32>
    %c183 = arith.constant 183 : index
    %836 = memref.load %arg1[%c183] : memref<187xf32, #tpu.memory_space<smem>>
    %837 = vector.broadcast %836 : f32 to vector<2x256xf32>
    %838 = arith.mulf %837, %827 : vector<2x256xf32>
    %839 = arith.addf %826, %838 : vector<2x256xf32>
    %c184 = arith.constant 184 : index
    %840 = memref.load %arg1[%c184] : memref<187xf32, #tpu.memory_space<smem>>
    %841 = vector.broadcast %840 : f32 to vector<2x256xf32>
    %842 = arith.addf %831, %841 : vector<2x256xf32>
    %c185 = arith.constant 185 : index
    %843 = memref.load %arg1[%c185] : memref<187xf32, #tpu.memory_space<smem>>
    %844 = vector.broadcast %843 : f32 to vector<2x256xf32>
    %845 = arith.addf %835, %844 : vector<2x256xf32>
    %c186 = arith.constant 186 : index
    %846 = memref.load %arg1[%c186] : memref<187xf32, #tpu.memory_space<smem>>
    %847 = vector.broadcast %846 : f32 to vector<2x256xf32>
    %848 = arith.addf %839, %847 : vector<2x256xf32>
    %cst_69 = arith.constant 5.000000e-01 : f32
    %849 = vector.broadcast %cst_69 : f32 to vector<2x256xf32>
    %850 = arith.mulf %849, %20 : vector<2x256xf32>
    %851 = math.cos %850 : vector<2x256xf32>
    %852 = math.sin %850 : vector<2x256xf32>
    %853 = tpu.reciprocal %851 {approx = true} : vector<2x256xf32> -> vector<2x256xf32>
    %854 = arith.mulf %852, %853 : vector<2x256xf32>
    %855 = arith.mulf %851, %851 : vector<2x256xf32>
    %856 = arith.mulf %852, %852 : vector<2x256xf32>
    %857 = math.exp %842 : vector<2x256xf32>
    %cst_70 = arith.constant 0.000000e+00 : f32
    %858 = vector.broadcast %cst_70 : f32 to vector<2x256xf32>
    %859 = arith.subf %858, %842 : vector<2x256xf32>
    %860 = math.exp %859 : vector<2x256xf32>
    %861 = arith.mulf %857, %854 : vector<2x256xf32>
    %862 = math.absf %861 : vector<2x256xf32>
    %cst_71 = arith.constant 2.41421366 : f32
    %863 = vector.broadcast %cst_71 : f32 to vector<2x256xf32>
    %864 = arith.cmpf ogt, %862, %863 : vector<2x256xf32>
    %cst_72 = arith.constant 0.414213568 : f32
    %865 = vector.broadcast %cst_72 : f32 to vector<2x256xf32>
    %866 = arith.cmpf ogt, %862, %865 : vector<2x256xf32>
    %867 = tpu.reciprocal %862 {approx = true} : vector<2x256xf32> -> vector<2x256xf32>
    %cst_73 = arith.constant 1.000000e+00 : f32
    %868 = vector.broadcast %cst_73 : f32 to vector<2x256xf32>
    %869 = arith.addf %862, %868 : vector<2x256xf32>
    %870 = tpu.reciprocal %869 {approx = true} : vector<2x256xf32> -> vector<2x256xf32>
    %cst_74 = arith.constant 0.000000e+00 : f32
    %871 = vector.broadcast %cst_74 : f32 to vector<2x256xf32>
    %872 = arith.subf %871, %867 : vector<2x256xf32>
    %cst_75 = arith.constant 1.000000e+00 : f32
    %873 = vector.broadcast %cst_75 : f32 to vector<2x256xf32>
    %874 = arith.subf %862, %873 : vector<2x256xf32>
    %875 = arith.mulf %874, %870 : vector<2x256xf32>
    %876 = arith.select %866, %875, %862 : vector<2x256xi1>, vector<2x256xf32>
    %877 = arith.select %864, %872, %876 : vector<2x256xi1>, vector<2x256xf32>
    %cst_76 = arith.constant 0.785398185 : f32
    %cst_77 = arith.constant 0.000000e+00 : f32
    %878 = vector.broadcast %cst_76 : f32 to vector<2x256xf32>
    %879 = vector.broadcast %cst_77 : f32 to vector<2x256xf32>
    %880 = arith.select %866, %878, %879 : vector<2x256xi1>, vector<2x256xf32>
    %cst_78 = arith.constant 1.57079637 : f32
    %881 = vector.broadcast %cst_78 : f32 to vector<2x256xf32>
    %882 = arith.select %864, %881, %880 : vector<2x256xi1>, vector<2x256xf32>
    %883 = arith.mulf %877, %877 : vector<2x256xf32>
    %cst_79 = arith.constant 0.0805374458 : f32
    %884 = vector.broadcast %cst_79 : f32 to vector<2x256xf32>
    %885 = arith.mulf %884, %883 : vector<2x256xf32>
    %cst_80 = arith.constant 0.138776854 : f32
    %886 = vector.broadcast %cst_80 : f32 to vector<2x256xf32>
    %887 = arith.subf %885, %886 : vector<2x256xf32>
    %888 = arith.mulf %887, %883 : vector<2x256xf32>
    %cst_81 = arith.constant 0.199777111 : f32
    %889 = vector.broadcast %cst_81 : f32 to vector<2x256xf32>
    %890 = arith.addf %888, %889 : vector<2x256xf32>
    %891 = arith.mulf %890, %883 : vector<2x256xf32>
    %cst_82 = arith.constant 0.333329499 : f32
    %892 = vector.broadcast %cst_82 : f32 to vector<2x256xf32>
    %893 = arith.subf %891, %892 : vector<2x256xf32>
    %894 = arith.mulf %893, %883 : vector<2x256xf32>
    %895 = arith.mulf %894, %877 : vector<2x256xf32>
    %896 = arith.addf %882, %895 : vector<2x256xf32>
    %897 = arith.addf %896, %877 : vector<2x256xf32>
    %cst_83 = arith.constant 0.000000e+00 : f32
    %898 = vector.broadcast %cst_83 : f32 to vector<2x256xf32>
    %899 = arith.cmpf olt, %861, %898 : vector<2x256xf32>
    %cst_84 = arith.constant 0.000000e+00 : f32
    %900 = vector.broadcast %cst_84 : f32 to vector<2x256xf32>
    %901 = arith.subf %900, %897 : vector<2x256xf32>
    %902 = arith.select %899, %901, %897 : vector<2x256xi1>, vector<2x256xf32>
    %cst_85 = arith.constant 2.000000e+00 : f32
    %903 = vector.broadcast %cst_85 : f32 to vector<2x256xf32>
    %904 = arith.mulf %903, %902 : vector<2x256xf32>
    %cst_86 = arith.constant 0.159154937 : f32
    %905 = vector.broadcast %cst_86 : f32 to vector<2x256xf32>
    %906 = arith.mulf %904, %905 : vector<2x256xf32>
    %907 = math.floor %906 : vector<2x256xf32>
    %cst_87 = arith.constant 6.28318548 : f32
    %908 = vector.broadcast %cst_87 : f32 to vector<2x256xf32>
    %909 = arith.mulf %908, %907 : vector<2x256xf32>
    %910 = arith.subf %904, %909 : vector<2x256xf32>
    %911 = arith.mulf %860, %855 : vector<2x256xf32>
    %912 = arith.mulf %857, %856 : vector<2x256xf32>
    %913 = arith.addf %911, %912 : vector<2x256xf32>
    %914 = math.log %913 : vector<2x256xf32>
    %cst_88 = arith.constant 0.000000e+00 : f32
    %915 = vector.broadcast %cst_88 : f32 to vector<2x256xf32>
    %916 = arith.subf %915, %914 : vector<2x256xf32>
    %917 = math.exp %845 : vector<2x256xf32>
    %cst_89 = arith.constant 0.000000e+00 : f32
    %918 = vector.broadcast %cst_89 : f32 to vector<2x256xf32>
    %919 = arith.subf %918, %845 : vector<2x256xf32>
    %920 = math.exp %919 : vector<2x256xf32>
    %921 = arith.mulf %917, %854 : vector<2x256xf32>
    %922 = math.absf %921 : vector<2x256xf32>
    %cst_90 = arith.constant 2.41421366 : f32
    %923 = vector.broadcast %cst_90 : f32 to vector<2x256xf32>
    %924 = arith.cmpf ogt, %922, %923 : vector<2x256xf32>
    %cst_91 = arith.constant 0.414213568 : f32
    %925 = vector.broadcast %cst_91 : f32 to vector<2x256xf32>
    %926 = arith.cmpf ogt, %922, %925 : vector<2x256xf32>
    %927 = tpu.reciprocal %922 {approx = true} : vector<2x256xf32> -> vector<2x256xf32>
    %cst_92 = arith.constant 1.000000e+00 : f32
    %928 = vector.broadcast %cst_92 : f32 to vector<2x256xf32>
    %929 = arith.addf %922, %928 : vector<2x256xf32>
    %930 = tpu.reciprocal %929 {approx = true} : vector<2x256xf32> -> vector<2x256xf32>
    %cst_93 = arith.constant 0.000000e+00 : f32
    %931 = vector.broadcast %cst_93 : f32 to vector<2x256xf32>
    %932 = arith.subf %931, %927 : vector<2x256xf32>
    %cst_94 = arith.constant 1.000000e+00 : f32
    %933 = vector.broadcast %cst_94 : f32 to vector<2x256xf32>
    %934 = arith.subf %922, %933 : vector<2x256xf32>
    %935 = arith.mulf %934, %930 : vector<2x256xf32>
    %936 = arith.select %926, %935, %922 : vector<2x256xi1>, vector<2x256xf32>
    %937 = arith.select %924, %932, %936 : vector<2x256xi1>, vector<2x256xf32>
    %cst_95 = arith.constant 0.785398185 : f32
    %cst_96 = arith.constant 0.000000e+00 : f32
    %938 = vector.broadcast %cst_95 : f32 to vector<2x256xf32>
    %939 = vector.broadcast %cst_96 : f32 to vector<2x256xf32>
    %940 = arith.select %926, %938, %939 : vector<2x256xi1>, vector<2x256xf32>
    %cst_97 = arith.constant 1.57079637 : f32
    %941 = vector.broadcast %cst_97 : f32 to vector<2x256xf32>
    %942 = arith.select %924, %941, %940 : vector<2x256xi1>, vector<2x256xf32>
    %943 = arith.mulf %937, %937 : vector<2x256xf32>
    %cst_98 = arith.constant 0.0805374458 : f32
    %944 = vector.broadcast %cst_98 : f32 to vector<2x256xf32>
    %945 = arith.mulf %944, %943 : vector<2x256xf32>
    %cst_99 = arith.constant 0.138776854 : f32
    %946 = vector.broadcast %cst_99 : f32 to vector<2x256xf32>
    %947 = arith.subf %945, %946 : vector<2x256xf32>
    %948 = arith.mulf %947, %943 : vector<2x256xf32>
    %cst_100 = arith.constant 0.199777111 : f32
    %949 = vector.broadcast %cst_100 : f32 to vector<2x256xf32>
    %950 = arith.addf %948, %949 : vector<2x256xf32>
    %951 = arith.mulf %950, %943 : vector<2x256xf32>
    %cst_101 = arith.constant 0.333329499 : f32
    %952 = vector.broadcast %cst_101 : f32 to vector<2x256xf32>
    %953 = arith.subf %951, %952 : vector<2x256xf32>
    %954 = arith.mulf %953, %943 : vector<2x256xf32>
    %955 = arith.mulf %954, %937 : vector<2x256xf32>
    %956 = arith.addf %942, %955 : vector<2x256xf32>
    %957 = arith.addf %956, %937 : vector<2x256xf32>
    %cst_102 = arith.constant 0.000000e+00 : f32
    %958 = vector.broadcast %cst_102 : f32 to vector<2x256xf32>
    %959 = arith.cmpf olt, %921, %958 : vector<2x256xf32>
    %cst_103 = arith.constant 0.000000e+00 : f32
    %960 = vector.broadcast %cst_103 : f32 to vector<2x256xf32>
    %961 = arith.subf %960, %957 : vector<2x256xf32>
    %962 = arith.select %959, %961, %957 : vector<2x256xi1>, vector<2x256xf32>
    %cst_104 = arith.constant 2.000000e+00 : f32
    %963 = vector.broadcast %cst_104 : f32 to vector<2x256xf32>
    %964 = arith.mulf %963, %962 : vector<2x256xf32>
    %cst_105 = arith.constant 0.159154937 : f32
    %965 = vector.broadcast %cst_105 : f32 to vector<2x256xf32>
    %966 = arith.mulf %964, %965 : vector<2x256xf32>
    %967 = math.floor %966 : vector<2x256xf32>
    %cst_106 = arith.constant 6.28318548 : f32
    %968 = vector.broadcast %cst_106 : f32 to vector<2x256xf32>
    %969 = arith.mulf %968, %967 : vector<2x256xf32>
    %970 = arith.subf %964, %969 : vector<2x256xf32>
    %971 = arith.addf %910, %970 : vector<2x256xf32>
    %972 = arith.mulf %920, %855 : vector<2x256xf32>
    %973 = arith.mulf %917, %856 : vector<2x256xf32>
    %974 = arith.addf %972, %973 : vector<2x256xf32>
    %975 = math.log %974 : vector<2x256xf32>
    %cst_107 = arith.constant 0.000000e+00 : f32
    %976 = vector.broadcast %cst_107 : f32 to vector<2x256xf32>
    %977 = arith.subf %976, %975 : vector<2x256xf32>
    %978 = arith.subf %916, %977 : vector<2x256xf32>
    %979 = arith.maximumf %916, %977 : vector<2x256xf32>
    %980 = math.absf %978 : vector<2x256xf32>
    %cst_108 = arith.constant 0.000000e+00 : f32
    %981 = vector.broadcast %cst_108 : f32 to vector<2x256xf32>
    %982 = arith.subf %981, %980 : vector<2x256xf32>
    %983 = math.exp %982 : vector<2x256xf32>
    %cst_109 = arith.constant 1.000000e+00 : f32
    %984 = vector.broadcast %cst_109 : f32 to vector<2x256xf32>
    %985 = arith.addf %984, %983 : vector<2x256xf32>
    %986 = math.log %985 : vector<2x256xf32>
    %987 = arith.addf %979, %986 : vector<2x256xf32>
    %cst_110 = arith.constant 0.693147182 : f32
    %988 = vector.broadcast %cst_110 : f32 to vector<2x256xf32>
    %989 = arith.subf %987, %988 : vector<2x256xf32>
    %cst_111 = arith.constant 0.000000e+00 : f32
    %990 = vector.broadcast %cst_111 : f32 to vector<2x256xf32>
    %991 = arith.select %11, %989, %990 : vector<2x256xi1>, vector<2x256xf32>
    %cst_112 = arith.constant dense<0.000000e+00> : vector<2xf32>
    %992 = vector.multi_reduction <add>, %991, %cst_112 [1] : vector<2x256xf32> to vector<2xf32>
    %993 = vector.shape_cast %992 : vector<2xf32> to vector<2x1xf32>
    %c0_113 = arith.constant 0 : index
    %c0_114 = arith.constant 0 : index
    %994 = vector.load %arg3[%c0_113, %c0_114] : memref<2x1xf32, #tpu.memory_space<vmem>>, vector<2x1xf32>
    tpu.vector_store %arg3[%c0_113, %c0_114], %993 {strides = array<i32>} : memref<2x1xf32, #tpu.memory_space<vmem>>, vector<2x1xf32>,
    %cst_115 = arith.constant 5.000000e-01 : f32
    %995 = vector.broadcast %cst_115 : f32 to vector<2x256xf32>
    %996 = arith.mulf %971, %995 : vector<2x256xf32>
    %997 = arith.addf %996, %848 : vector<2x256xf32>
    %cst_116 = arith.constant 0.159154937 : f32
    %998 = vector.broadcast %cst_116 : f32 to vector<2x256xf32>
    %999 = arith.mulf %997, %998 : vector<2x256xf32>
    %1000 = math.floor %999 : vector<2x256xf32>
    %cst_117 = arith.constant 6.28318548 : f32
    %1001 = vector.broadcast %cst_117 : f32 to vector<2x256xf32>
    %1002 = arith.mulf %1001, %1000 : vector<2x256xf32>
    %1003 = arith.subf %997, %1002 : vector<2x256xf32>
    %1004 = arith.select %11, %1003, %0 : vector<2x256xi1>, vector<2x256xf32>
    %c0_118 = arith.constant 0 : index
    %c0_119 = arith.constant 0 : index
    %1005 = vector.load %arg2[%c0_118, %c0_119] : memref<2x256xf32, #tpu.memory_space<vmem>>, vector<2x256xf32>
    tpu.vector_store %arg2[%c0_118, %c0_119], %1004 {strides = array<i32>} : memref<2x256xf32, #tpu.memory_space<vmem>>, vector<2x256xf32>,
    return
  }
}

</mosaic_0001>

<bundles_post_ra>
// kernel: tpu_custom_call.1
= control target key start
LH: loop header
LB: loop body
LE: loop exit
PB: predicated region body
PF: predicated region fallthrough
CT: control target
= control target key end

     0   :  { %s6120_s0 = inlined_call_operand.hbm [shape: f32[2,256], index: 0, kind: input, shape index: {}]   ;;  %s6121_s1 = inlined_call_operand.vmem [shape: f32[187], index: 1, kind: input, shape index: {}]   ;;  %s6122_s2 = inlined_call_operand.hbm [shape: f32[2,256], index: 2, kind: output, shape index: {0}]   ;;  %s6123_s3 = inlined_call_operand.vmem [shape: f32[2,1], index: 3, kind: output, shape index: {1}]  }
   0x1   :  { %6326 = sst [smem:[#allocation128_spill]] %s6122_s2 }
   0x2   :  { %6327 = sst [smem:[#allocation129_spill]] %s6123_s3 }
   0x3   :  { %9 = vsyncpa [#allocation3], 0 }
   0x4   :  { %10 = vsyncpa [#allocation5], 0 }
   0x5   :  { %11 = vsyncpa [#allocation4], 0  ;;  %s28_s14 = sshll.u32 %s6121_s1, 4  ;;  %s3074_s15 = smov [#allocation2]   ;;  %s29_s14 = int_to_ptr.vmem [resolvable:$true] %s28_s14 }
   0x6   :  { %s18_s16 = sshll.u32 %s3074_s15, 4  ;;  %s3012_s19 = scalar_lea.hbm %s6120_s0, 64  ;;  %s19_s16 = int_to_ptr.vmem [resolvable:$true] %s18_s16 }
   0x7   :  { %p3013_p0 = scmp.ne.s32.totalorder %s6120_s0, %s3012_s19  ;;  %p3016_p1 = scmp.lt.u32.totalorder %s3012_s19, %s6120_s0 }
   0x9   :  { %p3018_p2 = pnand %p3016_p1, %p3013_p0 }
   0xb   :  { %3021 = shalt.err (!%p3018_p2)
}
   0xc   :  { %s3022_s24 = scalar_lea.vmem %s19_s16, 64  ;;  %p3027_p4 = scmp.lt.s32.totalorder %s19_s16, %s19_s16 }
   0xd   :  { %p3023_p3 = scmp.ne.s32.totalorder %s19_s16, %s3022_s24  ;;  %p3028_p5 = scmp.lt.s32.totalorder %s3022_s24, %s3022_s24 }
   0xf   :  { %p3029_p6 = por %p3028_p5, %p3027_p4 }
  0x11   :  { %p3030_p7 = pnand %p3029_p6, %p3023_p3 }
  0x13   :  { %3033 = shalt.err (!%p3030_p7)
}
  0x14   :  { %21 = dma.hbm_to_vmem [thread:$0]  %s6120_s0, 64, %s19_s16, [#allocation3]  }
  0x15   :  { %s3034_s26 = scalar_lea.vmem %s29_s14, 32  ;;  %p3039_p9 = scmp.lt.s32.totalorder %s29_s14, %s29_s14 }
  0x16   :  { %p3035_p8 = scmp.ne.s32.totalorder %s29_s14, %s3034_s26  ;;  %p3040_p10 = scmp.lt.s32.totalorder %s3034_s26, %s3034_s26 }
  0x18   :  { %p3041_p11 = por %p3040_p10, %p3039_p9 }
  0x1a   :  { %p3042_p12 = pnand %p3041_p11, %p3035_p8 }
  0x1c   :  { %3045 = shalt.err (!%p3042_p12)
}
  0x1d   :  { %s3075_s27 = smov [#allocation6]  }
  0x1e   :  { %31 = dma.vmem_to_smem %s29_s14, 32, %s3075_s27, [#allocation5]  }
  0x1f   :  { %3068 = dma.done.wait [#allocation3], 64  }
  0x20   :  { %3069 = vsyncadd [#allocation3], 4294967232 }
  0x21   :  { %3070 = dma.done.wait [#allocation5], 32  }
  0x22   :  { %3071 = vsyncadd [#allocation5], 4294967264 }
  0x23   :  { %38 = sfence }
  0x24   :  { %v40_v0 = vlaneseq  ;;  %v2676_v4 = vld.sshfl [vmem:[#allocation2] sm:$0x33 pattern:$0x76325410]  ;;  %v6167_v28 = vmov 683565275  }
  0x25   :  { %v3138_v6 = vcombine.high %v2676_v4, %v2676_v4  ;;  %v6165_v30 = vmov 2475754826   ;;  %v6161_v32 = vmov 2131351028   ;;  %v6171_v34 = vmov 2102212464  }
  0x26   :  { %v3125_v1 = vand.u32 127, %v40_v0  ;;  %v6169_v36 = vmov 920167782   ;;  %v6159_v43 = vmov 1326507024   ;;  %s6132_s0 = smov 1  }
  0x27   :  { %6330 = vst [vmem:[#allocation13_spill] sm:$0xff] %v3138_v6  ;;  %s6134_s28 = smov 113   ;;  %s6130_s29 = smov 15  }
  0x28   :  { %v3128_v2 = vand.u32 48, %v3125_v1  ;;  %v3131_v3 = vadd.s32 128, %v3125_v1  ;;  %s6128_s30 = smov 127   ;;  %s6126_s4 = smov 16  }
  0x29   :  { %s6124_s5 = smov 112   ;;  %s3423_s6 = sld [smem:[#allocation6 + $0xc]] }
  0x2a   :  { %6328 = vst [vmem:[#allocation11_spill] sm:$0xff] %v3128_v2  ;;  %vm53_vm0 = vcmp.eq.s32.totalorder %v3128_v2, 16  ;;  %vm55_vm1 = vcmp.eq.s32.totalorder %v3128_v2, 32  ;;  %v3136_v5 = vand.u32 48, %v3131_v3  ;;  %s3425_s7 = sld [smem:[#allocation6 + $0xd]]  ;;  %s3427_s8 = sld [smem:[#allocation6 + $0xe]] }
  0x2b   :  { %vm57_vm2 = vmor %vm53_vm0, %vm55_vm1  ;;  %s3429_s9 = sld [smem:[#allocation6 + $0xf]]  ;;  %s3431_s10 = sld [smem:[#allocation6 + $0x14]] }
  0x2c   :  { %6329 = vst [vmem:[#allocation12_spill] sm:$0xff] %v3136_v5  ;;  %v3140_v7 = vsel %vm57_vm2, %v2676_v4, 0.0  ;;  %vm54_vm3 = vcmp.eq.s32.totalorder %v3136_v5, 16  ;;  %vm56_vm4 = vcmp.eq.s32.totalorder %v3136_v5, 32  ;;  %s3433_s11 = sld [smem:[#allocation6 + $0x15]]  ;;  %s3435_s12 = sld [smem:[#allocation6 + $0x16]] }
  0x2d   :  { %v74_v8 = vand.u32 2147483647, %v3140_v7  ;;  %v77_v9 = vand.u32 2139095040, %v3140_v7  ;;  %vm58_vm5 = vmor %vm54_vm3, %vm56_vm4  ;;  %vm76_vm4 = vcmp.lt.s32.totalorder %v3140_v7, 0  ;;  %s3437_s13 = sld [smem:[#allocation6 + $0x17]]  ;;  %s3439_s14 = sld [smem:[#allocation6 + $0x30]] }
  0x2e   :  { %v3147_v10 = vsel %vm58_vm5, %v3138_v6, 0.0  ;;  %s3441_s15 = sld [smem:[#allocation6 + $0x31]]  ;;  %s3443_s16 = sld [smem:[#allocation6 + $0x32]] }
  0x2f   :  { %v78_v11 = vshrl.u32 %v77_v9, 23  ;;  %v81_v12 = vand.u32 8388607, %v74_v8  ;;  %v177_v13 = vand.u32 2147483647, %v3147_v10  ;;  %v180_v14 = vand.u32 2139095040, %v3147_v10 }
  0x30   :  { %vm75_vm5 = vcmp.le.f32.partialorder %v74_v8, 0.7853982  ;;  %v6342_v8 = vmov 0  ;;  %s3445_s17 = sld [smem:[#allocation6 + $0x33]]  ;;  %s3447_s18 = sld [smem:[#allocation6 + $0x38]] }
  0x31   :  { %v2677_v15 = vadd.s32 4294967169, %v78_v11  ;;  %v181_v16 = vshrl.u32 %v180_v14, 23  ;;  %v82_v18 = vor.u32 8388608, %v81_v12  ;;  %v3155_v20 = vand.u32 8388607, %v177_v13  ;;  %s3449_s19 = sld [smem:[#allocation6 + $0x39]] }
  0x32   :  { %6347 = sst [smem:[#allocation20_spill]] %s3433_s11  ;;  %s3451_s20 = sld [smem:[#allocation6 + $0x3a]] }
  0x33   :  { %v84_v17 = vadd.s32 1, %v2677_v15  ;;  %v2681_v19 = vadd.s32 4294967169, %v181_v16  ;;  %v3157_v25 = vshll.u32 %v82_v18, 8  ;;  %v185_v26 = vor.u32 8388608, %v3155_v20  ;;  %6348 = sst [smem:[#allocation21_spill]] %s3435_s12  ;;  %s3453_s21 = sld [smem:[#allocation6 + $0x4]] }
  0x34   :  { %6349 = sst [smem:[#allocation22_spill]] %s3437_s13  ;;  %s3455_s22 = sld [smem:[#allocation6 + $0x3b]] }
  0x35   :  { %vm85_vm6 = vcmp.gt.s32.totalorder %v84_v17, 0  ;;  %v187_v22 = vadd.s32 1, %v2681_v19  ;;  %6350 = sst [smem:[#allocation23_spill]] %s3439_s14  ;;  %s3457_s23 = sld [smem:[#allocation6 + $0x5]] }
  0x36   :  { %v86_v21 = vsel %vm85_vm6, %v84_v17, 0  ;;  %vm179_vm6 = vcmp.lt.s32.totalorder %v3147_v10, 0  ;;  %6351 = sst [smem:[#allocation24_spill]] %s3441_s15  ;;  %s3459_s24 = sld [smem:[#allocation6 + $0x6]] }
  0x37   :  { %v87_v23 = vshrl.u32 %v86_v21, 5  ;;  %v88_v24 = vand.u32 31, %v86_v21  ;;  %vm188_vm7 = vcmp.gt.s32.totalorder %v187_v22, 0  ;;  %6352 = sst [smem:[#allocation25_spill]] %s3449_s19  ;;  %s3461_s1 = sld [smem:[#allocation6 + $0x7]] }
  0x38   :  { %v189_v48 = vsel %vm188_vm7, %v187_v22, 0  ;;  %vm3230_vm7 = vcmp.le.f32.partialorder %v177_v13, 0.7853982  ;;  %6353 = sst [smem:[#allocation26_spill]] %s3451_s20  ;;  %s3463_s25 = sld [smem:[#allocation6 + $0x1c]] }
  0x39   :  { %v89_v27 = vsub.s32 32, %v88_v24  ;;  %v91_v29 = vshll.u32 %v6167_v28, %v88_v24  ;;  %v94_v31 = vshll.u32 %v6165_v30, %v88_v24  ;;  %v97_v33 = vshll.u32 %v6161_v32, %v88_v24  ;;  %s3465_s26 = sld [smem:[#allocation6 + $0x1d]]  ;;  %s3467_s27 = sld [smem:[#allocation6 + $0x1e]] }
  0x3a   :  { %v100_v35 = vshll.u32 %v6171_v34, %v88_v24  ;;  %v103_v37 = vshll.u32 %v6169_v36, %v88_v24  ;;  %vm106_vm8 = vcmp.lt.s32.totalorder %v87_v23, 1  ;;  %vm107_vm9 = vcmp.lt.s32.totalorder %v87_v23, 2  ;;  %6354 = sst [smem:[#allocation27_spill]] %s3455_s22  ;;  %s3481_s3 = sld [smem:[#allocation6 + $0x9]] }
  0x3b   :  { %v90_v38 = vshrl.u32 %v6167_v28, %v89_v27  ;;  %v92_v39 = vshrl.u32 %v6165_v30, %v89_v27  ;;  %v95_v40 = vshrl.u32 %v6161_v32, %v89_v27  ;;  %v98_v41 = vshrl.u32 %v6171_v34, %v89_v27  ;;  %s3483_s2 = sld [smem:[#allocation6 + $0xa]]  ;;  %s3531_s20 = sld [smem:[#allocation6 + $0x18]] }
  0x3c   :  { %v101_v42 = vshrl.u32 %v6169_v36, %v89_v27  ;;  %v104_v44 = vshrl.u32 %v6159_v43, %v89_v27  ;;  %vm108_vm10 = vcmp.lt.s32.totalorder %v87_v23, 3  ;;  %vm109_vm11 = vcmp.lt.s32.totalorder %v87_v23, 4  ;;  %s3533_s22 = sld [smem:[#allocation6 + $0x19]]  ;;  %s3539_s19 = sld [smem:[#allocation6 + $0x1a]] }
  0x3d   :  { %v93_v45 = vor.u32 %v92_v39, %v91_v29  ;;  %v96_v46 = vor.u32 %v95_v40, %v94_v31  ;;  %v99_v47 = vor.u32 %v98_v41, %v97_v33  ;;  %v190_v51 = vshrl.u32 %v189_v48, 5 }
  0x3e   :  { %v102_v49 = vor.u32 %v101_v42, %v100_v35  ;;  %v105_v50 = vor.u32 %v104_v44, %v103_v37  ;;  %v191_v52 = vand.u32 31, %v189_v48 }
  0x3f   :  { %v110_v53 = vsel %vm106_vm8, %v90_v38, %v93_v45  ;;  %v111_v54 = vsel %vm109_vm11, %v99_v47, 2102212464  ;;  %v114_v55 = vsel %vm106_vm8, %v93_v45, %v96_v46  ;;  %v118_v56 = vsel %vm106_vm8, %v96_v46, %v99_v47 }
  0x40   :  { %v112_v57 = vsel %vm108_vm10, %v96_v46, %v111_v54  ;;  %v115_v58 = vsel %vm109_vm11, %v102_v49, 920167782  ;;  %v119_v59 = vsel %vm109_vm11, %v105_v50, 1326507024  ;;  %v192_v60 = vsub.s32 32, %v191_v52  ;;  %6361 = sst [smem:[#allocation34_spill]] %s3481_s3 }
  0x41   :  { %v113_v61 = vsel %vm107_vm9, %v110_v53, %v112_v57  ;;  %v116_v62 = vsel %vm108_vm10, %v99_v47, %v115_v58  ;;  %v120_v63 = vsel %vm108_vm10, %v102_v49, %v119_v59  ;;  %v194_v0 = vshll.u32 %v6167_v28, %v191_v52  ;;  %6362 = sst [smem:[#allocation35_spill]] %s3483_s2  ;;  %s3497_s2 = sld [smem:[#allocation6 + $0x12]] }
  0x42   :  { %v117_v4 = vsel %vm107_vm9, %v114_v55, %v116_v62  ;;  %v121_v9 = vsel %vm107_vm9, %v118_v56, %v120_v63  ;;  %v129_v11 = vmul.u32 %v3157_v25, %v113_v61  ;;  %v193_v12 = vshrl.u32 %v6167_v28, %v192_v60  ;;  %6374 = sst [smem:[#allocation40_spill]] %s3533_s22  ;;  %s3564_s3 = sld [smem:[#allocation6 + $0x23]] }
  0x43   :  { %v3185_v14 = vmul.u32.u64.low %v3157_v25, %v121_v9  ;;  %v3186_v15 = vmul.u32.u64.high %v3157_v25, %v121_v9, %v3185_v14  ;;  %v3189_v16 = vmul.u32.u64.low %v3157_v25, %v117_v4  ;;  %v3190_v17 = vmul.u32.u64.high %v3157_v25, %v117_v4, %v3189_v16  ;;  %s3651_s22 = sld [smem:[#allocation6 + $0x2f]] }
  0x44   :  { %v195_v18 = vshrl.u32 %v6165_v30, %v192_v60  ;;  %v197_v19 = vshll.u32 %v6165_v30, %v191_v52  ;;  %v198_v21 = vshrl.u32 %v6161_v32, %v192_v60  ;;  %v200_v22 = vshll.u32 %v6161_v32, %v191_v52 }
  0x45   :  { %v201_v23 = vshrl.u32 %v6171_v34, %v192_v60  ;;  %v203_v24 = vshll.u32 %v6171_v34, %v191_v52  ;;  %v204_v27 = vshrl.u32 %v6169_v36, %v192_v60  ;;  %v206_v29 = vshll.u32 %v6169_v36, %v191_v52 }
  0x46   :  { %v196_v31 = vor.u32 %v195_v18, %v194_v0  ;;  %v199_v33 = vor.u32 %v198_v21, %v197_v19  ;;  %v207_v25 = vshrl.u32 %v6159_v43, %v192_v60  ;;  %vm209_vm12 = vcmp.lt.s32.totalorder %v190_v51, 1 }
  0x47   :  { %vm131_vm13 = vc.u32 %v3186_v15, %v3189_v16  ;;  %v132_v35 = vadd.s32 1, %v3190_v17  ;;  %v202_v37 = vor.u32 %v201_v23, %v200_v22  ;;  %v225_v38 = vshll.u32 %v185_v26, 8 }
  0x48   :  { %v205_v39 = vor.u32 %v204_v27, %v203_v24  ;;  %v208_v40 = vor.u32 %v207_v25, %v206_v29  ;;  %vm210_vm14 = vcmp.lt.s32.totalorder %v190_v51, 2  ;;  %vm211_vm15 = vcmp.lt.s32.totalorder %v190_v51, 3 }
  0x49   :  { %v133_v41 = vsel %vm131_vm13, %v132_v35, %v3190_v17  ;;  %vm212_vm0 = vcmp.lt.s32.totalorder %v190_v51, 4  ;;  %v213_v42 = vsel %vm209_vm12, %v193_v12, %v196_v31  ;;  %v217_v44 = vsel %vm209_vm12, %v196_v31, %v199_v33 }
  0x4a   :  { %v134_v45 = vadd.s32 %v133_v41, %v129_v11  ;;  %v214_v46 = vsel %vm212_vm0, %v202_v37, 2102212464  ;;  %v218_v47 = vsel %vm212_vm0, %v205_v39, 920167782  ;;  %v221_v48 = vsel %vm209_vm12, %v199_v33, %v202_v37 }
  0x4b   :  { %v215_v49 = vsel %vm211_vm15, %v199_v33, %v214_v46  ;;  %v219_v50 = vsel %vm211_vm15, %v202_v37, %v218_v47  ;;  %v222_v20 = vsel %vm212_vm0, %v208_v40, 1326507024  ;;  %v130_v21 = vadd.s32 %v3189_v16, %v3186_v15 }
  0x4c   :  { %v135_v26 = vadd.s32 536870912, %v134_v45  ;;  %v220_v52 = vsel %vm210_vm14, %v217_v44, %v219_v50  ;;  %v223_v53 = vsel %vm211_vm15, %v205_v39, %v222_v20  ;;  %v216_v54 = vsel %vm210_vm14, %v213_v42, %v215_v49 }
  0x4d   :  { %v224_v55 = vsel %vm210_vm14, %v221_v48, %v223_v53  ;;  %v3212_v56 = vmul.u32.u64.low %v225_v38, %v220_v52  ;;  %v3213_v57 = vmul.u32.u64.high %v225_v38, %v220_v52, %v3212_v56  ;;  %v232_v62 = vmul.u32 %v225_v38, %v216_v54 }
  0x4e   :  { %v136_v58 = vshrl.u32 %v135_v26, 30  ;;  %v3215_v59 = vmul.u32.u64.low %v225_v38, %v224_v55  ;;  %v3216_v60 = vmul.u32.u64.high %v225_v38, %v224_v55, %v3215_v59  ;;  %vm166_vm11 = vweird.f32 %v3140_v7 }
  0x4f   :  { %v235_v63 = vadd.s32 1, %v3213_v57  ;;  %vm269_vm14 = vweird.f32 %v3147_v10  ;;  %v640_v43 = vstv %s3497_s2  ;;  %s3585_s2 = sld [smem:[#allocation6 + $0x24]]  ;;  %v6393_v5 = vstv %s3465_s26 }
  0x50   :  { %v137_v61 = vshll.u32 %v136_v58, 30  ;;  %vm234_vm1 = vc.u32 %v3216_v60, %v3212_v56  ;;  %v160_v50 = vsub.s32 4, %v136_v58 }
  0x51   :  { %v236_v4 = vsel %vm234_vm1, %v235_v63, %v3213_v57 }
  0x52   :  { %v138_v0 = vsub.s32 %v134_v45, %v137_v61  ;;  %v237_v11 = vadd.s32 %v236_v4, %v232_v62  ;;  %v233_v45 = vadd.s32 %v3212_v56, %v3216_v60  ;;  %v161_v56 = vsel %vm76_vm4, %v160_v50, %v136_v58 }
  0x53   :  { %v163_v60 = vsel %vm75_vm5, 0, %v161_v56  ;;  %v43_v50 = vand.u32 15, %v3125_v1 }
  0x54   :  { %v140_v9 = vsub.s32 0, %v138_v0  ;;  %v238_v12 = vadd.s32 536870912, %v237_v11  ;;  %v167_v63 = vand.u32 3, %v163_v60 }
  0x56   :  { %v2678_v51 = vmin.u32 %v140_v9, %v138_v0  ;;  %v239_v17 = vshrl.u32 %v238_v12, 30  ;;  %vm172_vm8 = vcmp.eq.s32.totalorder %v167_v63, 2  ;;  %vm169_vm9 = vcmp.eq.s32.totalorder %v167_v63, 0 }
  0x57   :  { %vm168_vm10 = vcmp.lt.s32.totalorder %v167_v63, 2  ;;  %v6339_v63 = vmov 0 }
  0x58   :  { %v142_v14 = vclz %v2678_v51  ;;  %v240_v19 = vshll.u32 %v239_v17, 30  ;;  %v263_v4 = vsub.s32 4, %v239_v17 }
  0x5a   :  { %v2679_v18 = vadd.s32 4294967294, %v142_v14  ;;  %v241_v23 = vsub.s32 %v237_v11, %v240_v19  ;;  %v264_v14 = vsel %vm179_vm6, %v263_v4, %v239_v17 }
  0x5c   :  { %vm2680_vm2 = vcmp.lt.s32.totalorder %v2679_v18, 0  ;;  %v243_v31 = vsub.s32 0, %v241_v23 }
  0x5d   :  { %v145_v22 = vsel %vm2680_vm2, 0, %v2679_v18 }
  0x5e   :  { %v146_v24 = vsub.s32 32, %v145_v22  ;;  %v147_v27 = vshll.u32 %v138_v0, %v145_v22  ;;  %v150_v29 = vsub.s32 4294967266, %v145_v22  ;;  %v2682_v35 = vmin.u32 %v243_v31, %v241_v23 }
  0x60   :  { %v148_v33 = vshrl.u32 %v130_v21, %v146_v24  ;;  %v151_v25 = vadd.s32 127, %v150_v29  ;;  %v245_v39 = vclz %v2682_v35  ;;  %v266_v21 = vsel %vm3230_vm7, 0, %v264_v14 }
  0x61   :  { %v373_v24 = vadd.s32 3, %v163_v60  ;;  %v270_v17 = vand.u32 3, %v266_v21 }
  0x62   :  { %v149_v37 = vor.u32 %v148_v33, %v147_v27  ;;  %v152_v38 = vshll.u32 %v151_v25, 23  ;;  %v2683_v42 = vadd.s32 4294967294, %v245_v39  ;;  %v477_v27 = vadd.s32 3, %v266_v21 }
  0x63   :  { %v374_v29 = vand.u32 3, %v373_v24  ;;  %vm275_vm12 = vcmp.eq.s32.totalorder %v270_v17, 2  ;;  %vm272_vm13 = vcmp.eq.s32.totalorder %v270_v17, 0  ;;  %vm271_vm15 = vcmp.lt.s32.totalorder %v270_v17, 2 }
  0x64   :  { %v153_v40 = vor.u32 4788187, %v152_v38  ;;  %v156_v41 = vcvt.s32.f32 %v149_v37  ;;  %vm2684_vm3 = vcmp.lt.s32.totalorder %v2683_v42, 0  ;;  %v478_v38 = vand.u32 3, %v477_v27 }
  0x65   :  { %v248_v16 = vsel %vm2684_vm3, 0, %v2683_v42  ;;  %vm376_vm0 = vcmp.eq.s32.totalorder %v374_v29, 0  ;;  %vm379_vm1 = vcmp.eq.s32.totalorder %v374_v29, 2  ;;  %vm375_vm2 = vcmp.lt.s32.totalorder %v374_v29, 2 }
  0x66   :  { %v154_v44 = vand.u32 2147483647, %v153_v40  ;;  %v249_v46 = vsub.s32 32, %v248_v16  ;;  %v250_v47 = vshll.u32 %v241_v23, %v248_v16  ;;  %v253_v48 = vsub.s32 4294967266, %v248_v16 }
  0x67   :  { %vm480_vm3 = vcmp.eq.s32.totalorder %v478_v38, 0 }
  0x68   :  { %v157_v15 = vmul.f32 %v156_v41, %v154_v44  ;;  %v251_v20 = vshrl.u32 %v233_v45, %v249_v46  ;;  %v254_v26 = vadd.s32 127, %v253_v48 }
  0x6a   :  { %v158_v49 = vxor.u32 2147483648, %v157_v15  ;;  %v252_v54 = vor.u32 %v251_v20, %v250_v47  ;;  %v255_v55 = vshll.u32 %v254_v26, 23  ;;  %v44_v20 = vand.u32 15, %v3131_v3 }
  0x6b   :  { %v6333_v26 = vmov 0 }
  0x6c   :  { %v159_v52 = vsel %vm76_vm4, %v158_v49, %v157_v15  ;;  %v256_v57 = vor.u32 4788187, %v255_v55  ;;  %v259_v59 = vcvt.s32.f32 %v252_v54  ;;  %vm483_vm4 = vcmp.eq.s32.totalorder %v478_v38, 2 }
  0x6d   :  { %v162_v53 = vsel %vm75_vm5, %v3140_v7, %v159_v52  ;;  %vm479_vm5 = vcmp.lt.s32.totalorder %v478_v38, 2  ;;  %v6336_v52 = vmov 0 }
  0x6e   :  { %2942 = vcosq.f32 %v162_v53  ;;  %v257_v61 = vand.u32 2147483647, %v256_v57 }
  0x6f   :  { %2944 = vsinq.f32 %v162_v53 }
  0x70   :  { %v260_v62 = vmul.f32 %v259_v59, %v257_v61 }
  0x72   :  { %v261_v0 = vxor.u32 2147483648, %v260_v62 }
  0x74   :  { %v262_v9 = vsel %vm179_vm6, %v261_v0, %v260_v62  ;;  %vm499_vm6 = vcmp.lt.s32.totalorder %v3125_v1, 1 }
  0x75   :  { %v265_v11 = vsel %vm3230_vm7, %v3147_v10, %v262_v9  ;;  %vm492_vm7 = vcmp.lt.s32.totalorder %v3125_v1, 113 }
  0x76   :  { %2946 = vcosq.f32 %v265_v11 }
  0x77   :  { %2948 = vsinq.f32 %v265_v11 }
  0x78   :  { %v2943_v58 = vpop.eup %2942 }
  0x79   :  { %v2945_v51 = vpop.eup %2944  ;;  %v173_v12 = vxor.u32 2147483648, %v2943_v58 }
  0x7a   :  { %v170_v18 = vxor.u32 2147483648, %v2945_v51 }
  0x7b   :  { %v174_v13 = vsel %vm172_vm8, %v173_v12, %v2945_v51  ;;  %v381_v44 = vsel %vm379_vm1, %v173_v12, %v2945_v51  ;;  %vm3301_vm8 = vcmp.eq.s32.totalorder %v43_v50, 0 }
  0x7c   :  { %v171_v19 = vsel %vm169_vm9, %v2943_v58, %v170_v18  ;;  %v378_v42 = vsel %vm376_vm0, %v2943_v58, %v170_v18  ;;  %v6334_v26 = vsel %vm3301_vm8, 4294967295, %v6333_v26  ;;  %vm3305_vm9 = vcmp.eq.s32.totalorder %v44_v20, 0 }
  0x7d   :  { %v175_v22 = vsel %vm168_vm10, %v171_v19, %v174_v13  ;;  %v382_v45 = vsel %vm375_vm2, %v378_v42, %v381_v44  ;;  %6335 = vst [vmem:[#allocation14_spill] sm:$0xff] %v6334_v26  ;;  %v6337_v52 = vsel %vm3305_vm9, 4294967295, %v6336_v52  ;;  %vm508_vm10 = vcmp.lt.s32.totalorder %v3125_v1, 15 }
  0x7e   :  { %v3242_v23 = vsel %vm166_vm11, nan, %v175_v22  ;;  %v3265_v46 = vsel %vm166_vm11, nan, %v382_v45  ;;  %6338 = vst [vmem:[#allocation15_spill] sm:$0xff] %v6337_v52  ;;  %vm515_vm11 = vcmp.lt.s32.totalorder %v3125_v1, 127  ;;  %v604_v45 = vstv %s3423_s6  ;;  %s3505_s6 = sld [smem:[#allocation6 + $0x29]] }
  0x7f   :  { %495 = vrot.lane.b32.xlu1 %v3242_v23, %s6132_s0  ;;  %488 = vrot.lane.b32.xlu0 %v3242_v23, %s6134_s28 }
  0x80   :  { %v2947_v31 = vpop.eup %2946 }
  0x81   :  { %v2949_v33 = vpop.eup %2948  ;;  %v276_v25 = vxor.u32 2147483648, %v2947_v31 }
  0x82   :  { %v273_v35 = vxor.u32 2147483648, %v2949_v33 }
  0x83   :  { %504 = vrot.lane.b32.xlu0 %v3242_v23, %s6130_s29  ;;  %v277_v37 = vsel %vm275_vm12, %v276_v25, %v2949_v33  ;;  %v485_v16 = vsel %vm483_vm4, %v276_v25, %v2949_v33  ;;  %vm3331_vm12 = vcmp.eq.s32.totalorder %v43_v50, 15  ;;  %v670_v50 = vstv %s3437_s13  ;;  %s3553_s13 = sld [smem:[#allocation6 + $0x20]] }
  0x84   :  { %v274_v39 = vsel %vm272_vm13, %v2947_v31, %v273_v35  ;;  %v482_v15 = vsel %vm480_vm3, %v2947_v31, %v273_v35  ;;  %v6340_v63 = vsel %vm3331_vm12, 4294967295, %v6339_v63  ;;  %vm3335_vm13 = vcmp.eq.s32.totalorder %v44_v20, 15  ;;  %6365 = sst [smem:[#allocation38_spill]] %s3505_s6 }
  0x85   :  { %v278_v40 = vsel %vm271_vm15, %v274_v39, %v277_v37  ;;  %v486_v47 = vsel %vm479_vm5, %v482_v15, %v485_v16  ;;  %6341 = vst [vmem:[#allocation16_spill] sm:$0xff] %v6340_v63  ;;  %v6343_v8 = vsel %vm3335_vm13, 4294967295, %v6342_v8  ;;  %v610_v15 = vstv %s3425_s7  ;;  %s3541_s7 = sld [smem:[#allocation6 + $0x1b]]  ;;  %s6432_s6 = sld [smem:[#allocation38_spill]] }
  0x86   :  { %v3253_v41 = vsel %vm269_vm14, nan, %v278_v40  ;;  %v3273_v48 = vsel %vm269_vm14, nan, %v486_v47  ;;  %6344 = vst [vmem:[#allocation17_spill] sm:$0xff] %v6343_v8  ;;  %v616_v16 = vstv %s3427_s8  ;;  %v622_v47 = vstv %s3429_s9  ;;  %s3511_s9 = sld [smem:[#allocation6 + $0x2a]] }
  0x87   :  { %497 = vrot.lane.b32.xlu1 %v3253_v41, %s6132_s0  ;;  %490 = vrot.lane.b32.xlu0 %v3253_v41, %s6134_s28  ;;  %v885_v20 = vstv %s3439_s14  ;;  %s3555_s14 = sld [smem:[#allocation6 + $0x21]]  ;;  %vm524_vm14 = vcmp.lt.s32.totalorder %v3125_v1, 16  ;;  %vm679_vm15 = vcmp.lt.s32.totalorder %v3125_v1, 112 }
  0x8b   :  { %506 = vrot.lane.b32.xlu1 %v3253_v41, %s6130_s29  ;;  %511 = vrot.lane.b32.xlu0 %v3242_v23, %s6128_s30 }
  0x8f   :  { %513 = vrot.lane.b32.xlu1 %v3253_v41, %s6128_s30  ;;  %766 = vrot.lane.b32.xlu0 %v3265_v46, %s6134_s28 }
  0x93   :  { %768 = vrot.lane.b32.xlu1 %v3273_v48, %s6134_s28  ;;  %772 = vrot.lane.b32.xlu0 %v3265_v46, %s6132_s0  ;;  %s3479_s28 = sld [smem:[#allocation6 + $0x8]] }
  0x97   :  { %774 = vrot.lane.b32.xlu1 %v3273_v48, %s6132_s0  ;;  %780 = vrot.lane.b32.xlu0 %v3265_v46, %s6130_s29  ;;  %s3477_s0 = sld [smem:[#allocation6 + $0x3]] }
  0x99   :  { %6360 = sst [smem:[#allocation33_spill]] %s3479_s28  ;;  %s3495_s28 = sld [smem:[#allocation6 + $0x11]] }
  0x9b   :  { %782 = vrot.lane.b32.xlu1 %v3273_v48, %s6130_s29  ;;  %786 = vrot.lane.b32.xlu0 %v3265_v46, %s6128_s30  ;;  %s3475_s29 = sld [smem:[#allocation6 + $0x2]] }
  0x9d   :  { %6359 = sst [smem:[#allocation32_spill]] %s3477_s0  ;;  %s3493_s0 = sld [smem:[#allocation6 + $0x10]] }
  0x9f   :  { %788 = vrot.lane.b32.xlu1 %v3273_v48, %s6128_s30  ;;  %543 = vrot.lane.b32.xlu0 %v3242_v23, %s6126_s4  ;;  %s3473_s30 = sld [smem:[#allocation6 + $0x1]] }
  0xa1   :  { %6358 = sst [smem:[#allocation31_spill]] %s3475_s29  ;;  %s3713_s29 = sld [smem:[#allocation6 + $0x34]] }
  0xa3   :  { %545 = vrot.lane.b32.xlu1 %v3253_v41, %s6126_s4  ;;  %706 = vrot.lane.b32.xlu0 %v3242_v23, %s6124_s5 }
  0xa5   :  { %6357 = sst [smem:[#allocation30_spill]] %s3473_s30  ;;  %s3721_s30 = sld [smem:[#allocation6 + $0x35]] }
  0xa7   :  { %708 = vrot.lane.b32.xlu1 %v3253_v41, %s6124_s5 }
  0xf1   :  { %v489_v7 = vpop.permute.xlu0 %488  ;;  %v496_v10 = vpop.permute.xlu1 %495 }
  0xf5   :  { %v505_v49 = vpop.permute.xlu0 %504 }
  0xf9   :  { %v498_v53 = vpop.permute.xlu1 %497  ;;  %v491_v54 = vpop.permute.xlu0 %490 }
  0xfa   :  { %v500_v55 = vsel %vm499_vm6, %v496_v10, %v498_v53  ;;  %v501_v3 = vsel %vm499_vm6, %v498_v53, %v496_v10  ;;  %v493_v56 = vsel %vm492_vm7, %v489_v7, %v491_v54  ;;  %v494_v57 = vsel %vm492_vm7, %v491_v54, %v489_v7 }
  0xfb   :  { %v3319_v59 = vsel %vm3301_vm8, %v493_v56, %v501_v3  ;;  %v3323_v60 = vsel %vm3305_vm9, %v494_v57, %v500_v55  ;;  %v652_v7 = vstv %s3431_s10  ;;  %v658_v10 = vstv %s3433_s11  ;;  %s3513_s11 = sld [smem:[#allocation6 + $0x2b]]  ;;  %s3649_s10 = sld [smem:[#allocation6 + $0x2e]] }
  0xfc   :  { %522 = vrot.lane.b32.xlu1 %v3323_v60, %s6126_s4  ;;  %520 = vrot.lane.b32.xlu0 %v3319_v59, %s6126_s4  ;;  %v891_v53 = vstv %s3441_s15  ;;  %v897_v54 = vstv %s3443_s16  ;;  %s3562_s15 = sld [smem:[#allocation6 + $0x22]]  ;;  %v3570_v30 = vmul.f32 %v616_v16, %v3319_v59  ;;  %v3573_v28 = vmul.f32 %v616_v16, %v3323_v60  ;;  %s3733_s16 = sld [smem:[#allocation6 + $0x37]] }
  0xfd   :  { %v507_v61 = vpop.permute.xlu1 %506  ;;  %v512_v62 = vpop.permute.xlu0 %511  ;;  %v903_v55 = vstv %s3445_s17  ;;  %v933_v3 = vstv %s3447_s18  ;;  %v3576_v36 = vmul.f32 %v622_v47, %v3319_v59  ;;  %v3580_v34 = vmul.f32 %v622_v47, %v3323_v60  ;;  %s6391_s18 = sld [smem:[#allocation30_spill]] }
  0xfe   :  { %v509_v9 = vsel %vm508_vm10, %v505_v49, %v507_v61  ;;  %v510_v58 = vsel %vm508_vm10, %v507_v61, %v505_v49  ;;  %v664_v49 = vstv %s3435_s12  ;;  %s3619_s12 = sld [smem:[#allocation6 + $0x2d]] }
 0x101   :  { %v514_v0 = vpop.permute.xlu1 %513  ;;  %v767_v4 = vpop.permute.xlu0 %766  ;;  %6369 = sst [smem:[#allocation39_spill]] %s3513_s11  ;;  %s3723_s11 = sld [smem:[#allocation6 + $0x36]] }
 0x102   :  { %v516_v11 = vsel %vm515_vm11, %v512_v62, %v514_v0  ;;  %v517_v51 = vsel %vm515_vm11, %v514_v0, %v512_v62  ;;  %v550_v62 = vstv %s3453_s21  ;;  %v556_v0 = vstv %s3457_s23  ;;  %s6392_s21 = sld [smem:[#allocation31_spill]]  ;;  %s6396_s23 = sld [smem:[#allocation32_spill]] }
 0x103   :  { %v3349_v12 = vsel %vm3331_vm12, %v510_v58, %v516_v11  ;;  %v3353_v14 = vsel %vm3335_vm13, %v509_v9, %v517_v51  ;;  %v568_v9 = vstv %s3461_s1  ;;  %v713_v58 = vstv %s3463_s25  ;;  %s6418_s1 = sld [smem:[#allocation34_spill]]  ;;  %s6420_s25 = sld [smem:[#allocation35_spill]] }
 0x104   :  { %575 = vrot.lane.b32.xlu1 %v3353_v14, %s6126_s4  ;;  %573 = vrot.lane.b32.xlu0 %v3349_v12, %s6126_s4 }
 0x105   :  { %v769_v18 = vpop.permute.xlu1 %768  ;;  %v773_v13 = vpop.permute.xlu0 %772 }
 0x106   :  { %v770_v24 = vsel %vm492_vm7, %v767_v4, %v769_v18  ;;  %v771_v17 = vsel %vm492_vm7, %v769_v18, %v767_v4  ;;  %v562_v4 = vstv %s3459_s24  ;;  %s6416_s24 = sld [smem:[#allocation33_spill]] }
 0x108   :  { %826 = vrot.lane.b32.xlu1 %v3273_v48, %s6126_s4  ;;  %824 = vrot.lane.b32.xlu0 %v3265_v46, %s6126_s4 }
 0x109   :  { %v775_v19 = vpop.permute.xlu1 %774  ;;  %v781_v21 = vpop.permute.xlu0 %780 }
 0x10a   :  { %v776_v27 = vsel %vm499_vm6, %v773_v13, %v775_v19  ;;  %v777_v29 = vsel %vm499_vm6, %v775_v19, %v773_v13 }
 0x10b   :  { %v3381_v25 = vsel %vm3301_vm8, %v770_v24, %v777_v29  ;;  %v3385_v35 = vsel %vm3305_vm9, %v771_v17, %v776_v27  ;;  %v3641_v29 = vmul.f32 %v658_v10, %v3353_v14  ;;  %v3646_v27 = vmul.f32 %v664_v49, %v3349_v12 }
 0x10c   :  { %677 = vrot.lane.b32.xlu1 %v3323_v60, %s6124_s5  ;;  %675 = vrot.lane.b32.xlu0 %v3319_v59, %s6124_s5  ;;  %v3696_v24 = vmul.f32 %v897_v54, %v3381_v25  ;;  %v3706_v17 = vmul.f32 %v903_v55, %v3381_v25 }
 0x10d   :  { %v783_v22 = vpop.permute.xlu1 %782  ;;  %v787_v33 = vpop.permute.xlu0 %786 }
 0x10e   :  { %v784_v37 = vsel %vm508_vm10, %v781_v21, %v783_v22  ;;  %v785_v38 = vsel %vm508_vm10, %v783_v22, %v781_v21  ;;  %6384 = vst [vmem:[#allocation45_spill] sm:$0xff] %v3696_v24  ;;  %6386 = vst [vmem:[#allocation47_spill] sm:$0xff] %v3706_v17  ;;  %v921_v17 = vstv %s3723_s11  ;;  %s6510_s11 = smov 15  }
 0x110   :  { %738 = vrot.lane.b32.xlu1 %v3353_v14, %s6124_s5  ;;  %736 = vrot.lane.b32.xlu0 %v3349_v12, %s6124_s5 }
 0x111   :  { %v789_v31 = vpop.permute.xlu1 %788  ;;  %v544_v56 = vpop.permute.xlu0 %543 }
 0x112   :  { %v790_v39 = vsel %vm515_vm11, %v787_v33, %v789_v31  ;;  %v791_v40 = vsel %vm515_vm11, %v789_v31, %v787_v33  ;;  %v3544_v31 = vmul.f32 %v604_v45, %v3319_v59  ;;  %v3547_v33 = vmul.f32 %v604_v45, %v3323_v60 }
 0x113   :  { %v3401_v42 = vsel %vm3331_vm12, %v785_v38, %v790_v39  ;;  %v3405_v44 = vsel %vm3335_vm13, %v784_v37, %v791_v40  ;;  %v3550_v37 = vmul.f32 %v610_v15, %v3319_v59  ;;  %v628_v39 = vstv %s3493_s0  ;;  %s3587_s0 = sld [smem:[#allocation6 + $0x25]] }
 0x114   :  { %794 = vrot.lane.b32.xlu0 %v3381_v25, %s6126_s4  ;;  %796 = vrot.lane.b32.xlu1 %v3385_v35, %s6126_s4  ;;  %6345 = vst [vmem:[#allocation18_spill] sm:$0xff] %v3401_v42  ;;  %6346 = vst [vmem:[#allocation19_spill] sm:$0xff] %v3405_v44  ;;  %v634_v40 = vstv %s3495_s28  ;;  %v3567_v45 = vmul.f32 %v610_v15, %v3323_v60  ;;  %v3590_v15 = vmul.f32 %v628_v39, %v3242_v23  ;;  %s6434_s28 = sld [smem:[#allocation39_spill]] }
 0x115   :  { %v3593_v59 = vmul.f32 %v634_v40, %v3242_v23  ;;  %v3596_v60 = vmul.f32 %v640_v43, %v3242_v23  ;;  %v546_v47 = vpop.permute.xlu1 %545  ;;  %v3606_v57 = vmul.f32 %v628_v39, %v3253_v41  ;;  %v3609_v61 = vmul.f32 %v634_v40, %v3253_v41  ;;  %v707_v22 = vpop.permute.xlu0 %706 }
 0x116   :  { %v3624_v39 = vmul.f32 %v652_v7, %v3349_v12  ;;  %v3666_v40 = vmul.f32 %v670_v50, %v3353_v14  ;;  %v3743_v13 = vmul.f32 %v933_v3, %v3405_v44 }
 0x118   :  { %856 = vrot.lane.b32.xlu1 %v3405_v44, %s6126_s4  ;;  %854 = vrot.lane.b32.xlu0 %v3401_v42, %s6126_s4  ;;  %s3471_s4 = sld [smem:[#allocation6]]  ;;  %6389 = vst [vmem:[#allocation50_spill] sm:$0xff] %v3743_v13 }
 0x119   :  { %v709_v21 = vpop.permute.xlu1 %708 }
 0x11c   :  { %988 = vrot.lane.b32.xlu1 %v3273_v48, %s6124_s5  ;;  %986 = vrot.lane.b32.xlu0 %v3265_v46, %s6124_s5 }
 0x11e   :  { %6356 = sst [smem:[#allocation29_spill]] %s3471_s4  ;;  %s3487_s4 = sld [smem:[#allocation6 + $0x28]] }
 0x11f   :  { %s6367_s8 = sld [smem:[#allocation29_spill]] }
 0x120   :  { %958 = vrot.lane.b32.xlu1 %v3385_v35, %s6124_s5  ;;  %956 = vrot.lane.b32.xlu0 %v3381_v25, %s6124_s5  ;;  %6368 = sst [smem:[#allocation29_spill]] %s3511_s9  ;;  %s3603_s9 = sld [smem:[#allocation6 + $0x27]] }
 0x124   :  { %1018 = vrot.lane.b32.xlu1 %v3405_v44, %s6124_s5  ;;  %1016 = vrot.lane.b32.xlu0 %v3401_v42, %s6124_s5  ;;  %s3469_s5 = sld [smem:[#allocation6 + $0x1f]]  ;;  %6364 = sst [smem:[#allocation37_spill]] %s3487_s4 }
 0x125   :  { %s3617_s4 = sld [smem:[#allocation6 + $0x2c]]  ;;  %v6403_v13 = vstv %s6367_s8  ;;  %s6433_s8 = sld [smem:[#allocation29_spill]] }
 0x126   :  { %v6404_v44 = vmov %v6403_v13 }
 0x12a   :  { %6355 = sst [smem:[#allocation28_spill]] %s3469_s5  ;;  %s3485_s5 = sld [smem:[#allocation6 + $0xb]] }
 0x12b   :  { %s6390_s17 = sld [smem:[#allocation28_spill]] }
 0x130   :  { %6363 = sst [smem:[#allocation36_spill]] %s3485_s5  ;;  %s3499_s5 = sld [smem:[#allocation6 + $0x13]] }
 0x131   :  { %s6422_s26 = sld [smem:[#allocation36_spill]] }
 0x136   :  { %v646_v32 = vstv %s3499_s5  ;;  %s3601_s5 = sld [smem:[#allocation6 + $0x26]] }
 0x137   :  { %v3599_v16 = vmul.f32 %v646_v32, %v3242_v23  ;;  %v3612_v23 = vmul.f32 %v640_v43, %v3253_v41  ;;  %v3615_v38 = vmul.f32 %v646_v32, %v3253_v41  ;;  %v3629_v43 = vmul.f32 %v652_v7, %v3353_v14 }
 0x138   :  { %v3636_v41 = vmul.f32 %v658_v10, %v3349_v12  ;;  %v3656_v32 = vmul.f32 %v664_v49, %v3353_v14  ;;  %v3661_v10 = vmul.f32 %v670_v50, %v3349_v12  ;;  %v3676_v49 = vmul.f32 %v885_v20, %v3381_v25 }
 0x139   :  { %v3681_v12 = vmul.f32 %v885_v20, %v3385_v35  ;;  %v3686_v14 = vmul.f32 %v891_v53, %v3381_v25  ;;  %v3691_v50 = vmul.f32 %v891_v53, %v3385_v35  ;;  %v3701_v20 = vmul.f32 %v897_v54, %v3385_v35 }
 0x13a   :  { %6380 = vst [vmem:[#allocation41_spill] sm:$0xff] %v3676_v49  ;;  %v3711_v53 = vmul.f32 %v903_v55, %v3385_v35  ;;  %v547_v7 = vsel %vm524_vm14, %v544_v56, %v546_v47  ;;  %v548_v54 = vsel %vm524_vm14, %v546_v47, %v544_v56  ;;  %v710_v56 = vsel %vm679_vm15, %v707_v22, %v709_v21 }
 0x13b   :  { %6381 = vst [vmem:[#allocation42_spill] sm:$0xff] %v3681_v12  ;;  %6382 = vst [vmem:[#allocation43_spill] sm:$0xff] %v3686_v14  ;;  %v711_v47 = vsel %vm679_vm15, %v709_v21, %v707_v22  ;;  %v3738_v25 = vmul.f32 %v933_v3, %v3401_v42  ;;  %v551_v18 = vmul.f32 %v550_v62, %v548_v54 }
 0x13c   :  { %6383 = vst [vmem:[#allocation44_spill] sm:$0xff] %v3691_v50  ;;  %6385 = vst [vmem:[#allocation46_spill] sm:$0xff] %v3701_v20  ;;  %v552_v55 = vmul.f32 %v550_v62, %v547_v7  ;;  %v557_v21 = vmul.f32 %v556_v0, %v548_v54  ;;  %v558_v22 = vmul.f32 %v556_v0, %v547_v7  ;;  %v6405_v20 = vstv %s6391_s18  ;;  %s6511_s18 = smov 127  }
 0x13d   :  { %6387 = vst [vmem:[#allocation48_spill] sm:$0xff] %v3711_v53  ;;  %6388 = vst [vmem:[#allocation49_spill] sm:$0xff] %v3738_v25  ;;  %v563_v51 = vmul.f32 %v562_v4, %v548_v54  ;;  %v564_v3 = vmul.f32 %v562_v4, %v547_v7  ;;  %v569_v11 = vmul.f32 %v568_v9, %v548_v54  ;;  %v6394_v54 = vmov %v6393_v5 }
 0x13e   :  { %v570_v62 = vmul.f32 %v568_v9, %v547_v7  ;;  %v3765_v19 = vmul.f32 %v713_v58, %v710_v56  ;;  %v3769_v35 = vmul.f32 %v713_v58, %v711_v47  ;;  %v3773_v4 = vmul.f32 %v6393_v5, %v710_v56 }
 0x13f   :  { %v3777_v8 = vmul.f32 %v6394_v54, %v711_v47  ;;  %v6397_v7 = vstv %s3467_s27  ;;  %v6401_v5 = vstv %s6390_s17  ;;  %v909_v54 = vstv %s3713_s29  ;;  %s6431_s27 = sld [smem:[#allocation37_spill]]  ;;  %s6441_s29 = sld [smem:[#allocation40_spill]] }
 0x140   :  { %v3785_v63 = vmul.f32 %v6397_v7, %v710_v56  ;;  %v6399_v2 = vmov %v6397_v7  ;;  %v3793_v26 = vmul.f32 %v6401_v5, %v710_v56  ;;  %v915_v53 = vstv %s3721_s30  ;;  %s6509_s30 = smov 1   ;;  %s2766_s17 = sld [smem:[#allocation6 + $0x4a]] }
 0x141   :  { %6395 = vst [vmem:[#allocation51_spill] sm:$0xff] %v3777_v8  ;;  %v3789_v52 = vmul.f32 %v6399_v2, %v711_v47  ;;  %v6407_v50 = vstv %s6392_s21  ;;  %v6409_v2 = vmov %v6401_v5  ;;  %v6411_v56 = vstv %s6396_s23  ;;  %s2759_s21 = sld [smem:[#allocation6 + $0x43]]  ;;  %s2763_s23 = sld [smem:[#allocation6 + $0x47]] }
 0x142   :  { %6398 = vst [vmem:[#allocation52_spill] sm:$0xff] %v3785_v63  ;;  %6402 = vst [vmem:[#allocation54_spill] sm:$0xff] %v3793_v26  ;;  %v6408_v14 = vmov %v6407_v50  ;;  %v3812_v49 = vmul.f32 %v6409_v2, %v711_v47  ;;  %v3823_v63 = vmul.f32 %v909_v54, %v3273_v48 }
 0x143   :  { %6400 = vst [vmem:[#allocation53_spill] sm:$0xff] %v3789_v52  ;;  %v6412_v52 = vmov %v6411_v56 }
 0x144   :  { %6410 = vst [vmem:[#allocation55_spill] sm:$0xff] %v3812_v49  ;;  %6414 = vst [vmem:[#allocation57_spill] sm:$0xff] %v3823_v63 }
 0x16e   :  { %v523_v0 = vpop.permute.xlu1 %522  ;;  %v521_v6 = vpop.permute.xlu0 %520 }
 0x16f   :  { %v525_v9 = vsel %vm524_vm14, %v521_v6, %v523_v0  ;;  %v526_v58 = vsel %vm524_vm14, %v523_v0, %v521_v6  ;;  %v6406_v6 = vmov %v6405_v20 }
 0x170   :  { %v529_v25 = vmul.f32 %v6403_v13, %v526_v58  ;;  %v530_v42 = vmul.f32 %v6404_v44, %v525_v9  ;;  %v533_v24 = vmul.f32 %v6405_v20, %v526_v58  ;;  %v534_v0 = vmul.f32 %v6406_v6, %v525_v9 }
 0x171   :  { %v537_v7 = vmul.f32 %v6407_v50, %v526_v58  ;;  %v538_v12 = vmul.f32 %v6408_v14, %v525_v9  ;;  %v541_v5 = vmul.f32 %v6411_v56, %v526_v58  ;;  %v542_v26 = vmul.f32 %v6412_v52, %v525_v9 }
 0x172   :  { %v927_v13 = vstv %s3733_s16  ;;  %v3820_v44 = vmul.f32 %v909_v54, %v3265_v46  ;;  %v3826_v20 = vmul.f32 %v915_v53, %v3265_v46  ;;  %v3829_v14 = vmul.f32 %v915_v53, %v3273_v48  ;;  %s2755_s16 = sld [smem:[#allocation6 + $0x3f]] }
 0x173   :  { %v553_v50 = vadd.f32 %v551_v18, %v529_v25  ;;  %v554_v47 = vadd.f32 %v552_v55, %v530_v42  ;;  %v3832_v52 = vmul.f32 %v921_v17, %v3265_v46  ;;  %v3835_v9 = vmul.f32 %v921_v17, %v3273_v48 }
 0x174   :  { %6413 = vst [vmem:[#allocation56_spill] sm:$0xff] %v3820_v44  ;;  %6415 = vst [vmem:[#allocation58_spill] sm:$0xff] %v3826_v20  ;;  %v559_v58 = vadd.f32 %v557_v21, %v533_v24  ;;  %v560_v54 = vadd.f32 %v558_v22, %v534_v0  ;;  %v565_v6 = vadd.f32 %v563_v51, %v537_v7  ;;  %v6425_v24 = vstv %s6418_s1  ;;  %s6512_s1 = smov 16  }
 0x175   :  { %6417 = vst [vmem:[#allocation59_spill] sm:$0xff] %v3829_v14  ;;  %6419 = vst [vmem:[#allocation60_spill] sm:$0xff] %v3832_v52  ;;  %v566_v53 = vadd.f32 %v564_v3, %v538_v12  ;;  %v571_v18 = vadd.f32 %v569_v11, %v541_v5  ;;  %v572_v25 = vadd.f32 %v570_v62, %v542_v26  ;;  %v6423_v14 = vstv %s6416_s24  ;;  %s2767_s24 = sld [smem:[#allocation6 + $0x4b]] }
 0x176   :  { %6421 = vst [vmem:[#allocation61_spill] sm:$0xff] %v3835_v9  ;;  %v576_v2 = vpop.permute.xlu1 %575  ;;  %v574_v56 = vpop.permute.xlu0 %573  ;;  %v6424_v9 = vmov %v6423_v14  ;;  %v6426_v22 = vmov %v6425_v24  ;;  %v6427_v51 = vstv %s6420_s25  ;;  %v6429_v11 = vstv %s6422_s26  ;;  %s6513_s25 = smov 112   ;;  %s4247_s26 = sld [smem:[#allocation6 + $0x58]] }
 0x177   :  { %v577_v42 = vsel %vm524_vm14, %v574_v56, %v576_v2  ;;  %v578_v55 = vsel %vm524_vm14, %v576_v2, %v574_v56  ;;  %v6428_v3 = vmov %v6427_v51  ;;  %v6430_v62 = vmov %v6429_v11 }
 0x178   :  { %v581_v17 = vmul.f32 %v6423_v14, %v578_v55  ;;  %v582_v63 = vmul.f32 %v6424_v9, %v577_v42  ;;  %v587_v21 = vmul.f32 %v6425_v24, %v578_v55  ;;  %v588_v0 = vmul.f32 %v6426_v22, %v577_v42 }
 0x179   :  { %v593_v12 = vmul.f32 %v6427_v51, %v578_v55  ;;  %v594_v7 = vmul.f32 %v6428_v3, %v577_v42  ;;  %v599_v26 = vmul.f32 %v6429_v11, %v578_v55  ;;  %v600_v5 = vmul.f32 %v6430_v62, %v577_v42 }
 0x17a   :  { %v583_v52 = vadd.f32 %v581_v17, %v553_v50  ;;  %v584_v20 = vadd.f32 %v582_v63, %v554_v47  ;;  %v589_v44 = vadd.f32 %v587_v21, %v559_v58  ;;  %v590_v2 = vadd.f32 %v588_v0, %v560_v54  ;;  %v827_v56 = vpop.permute.xlu1 %826  ;;  %v825_v14 = vpop.permute.xlu0 %824 }
 0x17b   :  { %v595_v49 = vadd.f32 %v593_v12, %v565_v6  ;;  %v596_v9 = vadd.f32 %v594_v7, %v566_v53  ;;  %v601_v8 = vadd.f32 %v599_v26, %v571_v18  ;;  %v602_v24 = vadd.f32 %v600_v5, %v572_v25 }
 0x17c   :  { %v607_v22 = vadd.f32 %v3544_v31, %v583_v52  ;;  %v608_v51 = vadd.f32 %v3547_v33, %v584_v20  ;;  %v613_v55 = vadd.f32 %v3550_v37, %v589_v44  ;;  %v614_v50 = vadd.f32 %v3567_v45, %v590_v2 }
 0x17d   :  { %v619_v63 = vadd.f32 %v3570_v30, %v595_v49  ;;  %v620_v47 = vadd.f32 %v3573_v28, %v596_v9  ;;  %v625_v58 = vadd.f32 %v3576_v36, %v601_v8  ;;  %v626_v54 = vadd.f32 %v3580_v34, %v602_v24 }
 0x17e   :  { %v3867_v31 = vsel %vm524_vm14, %v825_v14, %v827_v56  ;;  %v829_v33 = vsel %vm524_vm14, %v827_v56, %v825_v14  ;;  %v678_v37 = vpop.permute.xlu1 %677  ;;  %v631_v45 = vadd.f32 %v3590_v15, %v607_v22  ;;  %v637_v30 = vadd.f32 %v3593_v59, %v613_v55  ;;  %v676_v49 = vpop.permute.xlu0 %675 }
 0x17f   :  { %v6435_v44 = vstv %s6431_s27  ;;  %v3883_v34 = vmul.f32 %v927_v13, %v3265_v46  ;;  %v3886_v20 = vmul.f32 %v927_v13, %v3273_v48  ;;  %v6437_v52 = vstv %s6432_s6  ;;  %s4249_s27 = sld [smem:[#allocation6 + $0x59]]  ;;  %s4251_s6 = sld [smem:[#allocation6 + $0x5a]] }
 0x180   :  { %v3875_v28 = vmul.f32 %v6435_v44, %v829_v33  ;;  %v6436_v36 = vmov %v6435_v44  ;;  %v3890_v6 = vmul.f32 %v6437_v52, %v829_v33  ;;  %v6438_v15 = vmov %v6437_v52  ;;  %v6450_v52 = vld [vmem:[#allocation51_spill] sm:$0xff] }
 0x181   :  { %v3880_v8 = vmul.f32 %v6436_v36, %v3867_v31  ;;  %v3895_v59 = vmul.f32 %v6438_v15, %v3867_v31  ;;  %v6439_v53 = vstv %s6433_s8  ;;  %v6440_v25 = vstv %s6434_s28 }
 0x182   :  { %v3899_v18 = vmul.f32 %v6439_v53, %v829_v33  ;;  %v3903_v42 = vmul.f32 %v6440_v25, %v829_v33  ;;  %v643_v17 = vadd.f32 %v3596_v60, %v619_v63  ;;  %v649_v46 = vadd.f32 %v3599_v16, %v625_v58  ;;  %v739_v60 = vpop.permute.xlu1 %738  ;;  %v737_v16 = vpop.permute.xlu0 %736  ;;  %v6451_v53 = vld [vmem:[#allocation52_spill] sm:$0xff] }
 0x183   :  { %v655_v48 = vadd.f32 %v3624_v39, %v631_v45  ;;  %v661_v13 = vadd.f32 %v3636_v41, %v637_v30  ;;  %v632_v21 = vadd.f32 %v3606_v57, %v608_v51  ;;  %v638_v0 = vadd.f32 %v3609_v61, %v614_v50 }
 0x184   :  { %v644_v12 = vadd.f32 %v3612_v23, %v620_v47  ;;  %v650_v3 = vadd.f32 %v3615_v38, %v626_v54  ;;  %v667_v39 = vadd.f32 %v3646_v27, %v643_v17  ;;  %v673_v41 = vadd.f32 %v3661_v10, %v649_v46  ;;  %v6452_v17 = vld [vmem:[#allocation54_spill] sm:$0xff] }
 0x185   :  { %v680_v57 = vsel %vm679_vm15, %v676_v49, %v678_v37  ;;  %v681_v61 = vsel %vm679_vm15, %v678_v37, %v676_v49  ;;  %v656_v23 = vadd.f32 %v3629_v43, %v632_v21  ;;  %v662_v7 = vadd.f32 %v3641_v29, %v638_v0  ;;  %v6454_v21 = vld [vmem:[#allocation55_spill] sm:$0xff] }
 0x186   :  { %v668_v38 = vadd.f32 %v3656_v32, %v644_v12  ;;  %v674_v11 = vadd.f32 %v3666_v40, %v650_v3  ;;  %v6442_v26 = vstv %s3531_s20  ;;  %v6444_v2 = vstv %s6441_s29  ;;  %v797_v45 = vpop.permute.xlu1 %796  ;;  %v795_v30 = vpop.permute.xlu0 %794  ;;  %s2764_s20 = sld [smem:[#allocation6 + $0x48]]  ;;  %s4257_s29 = sld [smem:[#allocation6 + $0x75]] }
 0x187   :  { %v684_v62 = vmul.f32 %v6442_v26, %v680_v57  ;;  %v6443_v5 = vmov %v6442_v26  ;;  %v690_v10 = vmul.f32 %v6444_v2, %v680_v57  ;;  %v6445_v56 = vmov %v6444_v2 }
 0x188   :  { %v685_v27 = vmul.f32 %v6443_v5, %v681_v61  ;;  %v691_v14 = vmul.f32 %v6445_v56, %v681_v61  ;;  %v6446_v9 = vstv %s3539_s19  ;;  %v6448_v55 = vstv %s3541_s7  ;;  %s4057_s19 = sld [smem:[#allocation6 + $0x44]]  ;;  %s2761_s7 = sld [smem:[#allocation6 + $0x45]] }
 0x189   :  { %v696_v24 = vmul.f32 %v6446_v9, %v680_v57  ;;  %v6447_v22 = vmov %v6446_v9  ;;  %v702_v43 = vmul.f32 %v6448_v55, %v680_v57  ;;  %v6449_v50 = vmov %v6448_v55 }
 0x18a   :  { %v697_v51 = vmul.f32 %v6447_v22, %v681_v61  ;;  %v703_v29 = vmul.f32 %v6449_v50, %v681_v61  ;;  %v686_v63 = vadd.f32 %v684_v62, %v655_v48  ;;  %v687_v32 = vadd.f32 %v685_v27, %v656_v23  ;;  %v6453_v48 = vld [vmem:[#allocation53_spill] sm:$0xff] }
 0x18b   :  { %v692_v47 = vadd.f32 %v690_v10, %v661_v13  ;;  %v693_v40 = vadd.f32 %v691_v14, %v662_v7  ;;  %v698_v58 = vadd.f32 %v696_v24, %v667_v39  ;;  %v704_v33 = vadd.f32 %v702_v43, %v673_v41 }
 0x18c   :  { %v699_v54 = vadd.f32 %v697_v51, %v668_v38  ;;  %v705_v37 = vadd.f32 %v703_v29, %v674_v11  ;;  %v716_v49 = vadd.f32 %v3765_v19, %v686_v63  ;;  %v717_v36 = vadd.f32 %v3769_v35, %v687_v32 }
 0x18d   :  { %v722_v44 = vadd.f32 %v3773_v4, %v692_v47  ;;  %v723_v15 = vadd.f32 %v6450_v52, %v693_v40  ;;  %v728_v25 = vadd.f32 %v6451_v53, %v698_v58  ;;  %v734_v46 = vadd.f32 %v6452_v17, %v704_v33  ;;  %v857_v17 = vpop.permute.xlu1 %856 }
 0x18e   :  { %v729_v13 = vadd.f32 %v6453_v48, %v699_v54  ;;  %v735_v0 = vadd.f32 %v6454_v21, %v705_v37  ;;  %v740_v19 = vsel %vm679_vm15, %v737_v16, %v739_v60  ;;  %v741_v4 = vsel %vm679_vm15, %v739_v60, %v737_v16 }
 0x18f   :  { %v798_v35 = vsel %vm524_vm14, %v795_v30, %v797_v45  ;;  %v799_v12 = vsel %vm524_vm14, %v797_v45, %v795_v30  ;;  %v6455_v3 = vstv %s3553_s13  ;;  %v6457_v61 = vstv %s3555_s14  ;;  %s4005_s13 = sld [smem:[#allocation6 + $0x3c]]  ;;  %s6481_s14 = sld [smem:[#allocation25_spill]] }
 0x190   :  { %v744_v39 = vmul.f32 %v6455_v3, %v740_v19  ;;  %v6456_v41 = vmov %v6455_v3  ;;  %v750_v23 = vmul.f32 %v6457_v61, %v740_v19  ;;  %v6458_v7 = vmov %v6457_v61 }
 0x191   :  { %v745_v57 = vmul.f32 %v6456_v41, %v741_v4  ;;  %v751_v38 = vmul.f32 %v6458_v7, %v741_v4  ;;  %v6459_v11 = vstv %s3562_s15  ;;  %v6461_v62 = vstv %s3564_s3  ;;  %s4003_s3 = sld [smem:[#allocation6 + $0x40]]  ;;  %s4043_s15 = sld [smem:[#allocation6 + $0x3d]] }
 0x192   :  { %v756_v60 = vmul.f32 %v6459_v11, %v740_v19  ;;  %v6460_v16 = vmov %v6459_v11  ;;  %v762_v5 = vmul.f32 %v6461_v62, %v740_v19  ;;  %v6462_v27 = vmov %v6461_v62 }
 0x193   :  { %v757_v26 = vmul.f32 %v6460_v16, %v741_v4  ;;  %v763_v2 = vmul.f32 %v6462_v27, %v741_v4  ;;  %v746_v10 = vadd.f32 %v744_v39, %v716_v49  ;;  %v747_v56 = vadd.f32 %v745_v57, %v717_v36 }
 0x194   :  { %v752_v14 = vadd.f32 %v750_v23, %v722_v44  ;;  %v753_v9 = vadd.f32 %v751_v38, %v723_v15  ;;  %v758_v24 = vadd.f32 %v756_v60, %v728_v25  ;;  %v764_v51 = vadd.f32 %v762_v5, %v734_v46  ;;  %v855_v46 = vpop.permute.xlu0 %854 }
 0x195   :  { %v759_v22 = vadd.f32 %v757_v26, %v729_v13  ;;  %v765_v55 = vadd.f32 %v763_v2, %v735_v0  ;;  %v6463_v43 = vstv %s3585_s2  ;;  %v6465_v32 = vstv %s3587_s0  ;;  %s2765_s2 = sld [smem:[#allocation6 + $0x49]]  ;;  %s6508_s0 = smov 113  }
 0x196   :  { %v802_v50 = vmul.f32 %v6463_v43, %v799_v12  ;;  %v6464_v29 = vmov %v6463_v43  ;;  %v808_v47 = vmul.f32 %v6465_v32, %v799_v12  ;;  %v6466_v40 = vmov %v6465_v32 }
 0x197   :  { %v803_v63 = vmul.f32 %v6464_v29, %v798_v35  ;;  %v809_v58 = vmul.f32 %v6466_v40, %v798_v35  ;;  %v6467_v54 = vstv %s3601_s5  ;;  %v6469_v30 = vstv %s3603_s9  ;;  %s2754_s9 = sld [smem:[#allocation6 + $0x3e]]  ;;  %s2758_s5 = sld [smem:[#allocation6 + $0x42]] }
 0x198   :  { %v814_v33 = vmul.f32 %v6467_v54, %v799_v12  ;;  %v6468_v37 = vmov %v6467_v54  ;;  %v820_v49 = vmul.f32 %v6469_v30, %v799_v12  ;;  %v6470_v44 = vmov %v6469_v30 }
 0x199   :  { %v815_v45 = vmul.f32 %v6468_v37, %v798_v35  ;;  %v821_v36 = vmul.f32 %v6470_v44, %v798_v35  ;;  %v804_v52 = vadd.f32 %v802_v50, %v746_v10  ;;  %v805_v15 = vadd.f32 %v803_v63, %v747_v56 }
 0x19a   :  { %v810_v53 = vadd.f32 %v808_v47, %v752_v14  ;;  %v811_v25 = vadd.f32 %v809_v58, %v753_v9  ;;  %v816_v48 = vadd.f32 %v814_v33, %v758_v24  ;;  %v822_v21 = vadd.f32 %v820_v49, %v764_v51  ;;  %v989_v9 = vpop.permute.xlu1 %988  ;;  %v987_v24 = vpop.permute.xlu0 %986  ;;  %v6483_v47 = vld [vmem:[#allocation41_spill] sm:$0xff]  ;;  %v6485_v58 = vld [vmem:[#allocation42_spill] sm:$0xff]  ;;  %v6486_v33 = vld [vmem:[#allocation43_spill] sm:$0xff] }
 0x19b   :  { %v817_v13 = vadd.f32 %v815_v45, %v759_v22  ;;  %v823_v0 = vadd.f32 %v821_v36, %v765_v55  ;;  %v6471_v19 = vstv %s6433_s8  ;;  %v6472_v3 = vstv %s6434_s28  ;;  %v6487_v45 = vld [vmem:[#allocation44_spill] sm:$0xff]  ;;  %v6488_v49 = vld [vmem:[#allocation45_spill] sm:$0xff]  ;;  %v6489_v36 = vld [vmem:[#allocation46_spill] sm:$0xff]  ;;  %s4253_s8 = sld [smem:[#allocation6 + $0x73]]  ;;  %s4255_s28 = sld [smem:[#allocation6 + $0x74]] }
 0x19c   :  { %v845_v4 = vmul.f32 %v6471_v19, %v3867_v31  ;;  %v851_v12 = vmul.f32 %v6472_v3, %v3867_v31  ;;  %v834_v35 = vadd.f32 %v3875_v28, %v804_v52  ;;  %v840_v39 = vadd.f32 %v3890_v6, %v810_v53 }
 0x19d   :  { %v846_v41 = vadd.f32 %v3899_v18, %v816_v48  ;;  %v852_v57 = vadd.f32 %v3903_v42, %v822_v21  ;;  %v835_v61 = vadd.f32 %v3880_v8, %v805_v15  ;;  %v841_v23 = vadd.f32 %v3895_v59, %v811_v25  ;;  %v6490_v15 = vld [vmem:[#allocation47_spill] sm:$0xff]  ;;  %v6491_v25 = vld [vmem:[#allocation48_spill] sm:$0xff] }
 0x19e   :  { %v847_v7 = vadd.f32 %v845_v4, %v817_v13  ;;  %v853_v38 = vadd.f32 %v851_v12, %v823_v0  ;;  %v858_v31 = vsel %vm524_vm14, %v855_v46, %v857_v17  ;;  %v859_v28 = vsel %vm524_vm14, %v857_v17, %v855_v46  ;;  %v6492_v46 = vld [vmem:[#allocation18_spill] sm:$0xff]  ;;  %v6494_v21 = vld [vmem:[#allocation19_spill] sm:$0xff] }
 0x19f   :  { %v6473_v6 = vstv %s3617_s4  ;;  %v6475_v60 = vstv %s3619_s12  ;;  %v6477_v26 = vstv %s3649_s10  ;;  %v6479_v2 = vstv %s3651_s22  ;;  %s6482_s4 = sld [smem:[#allocation26_spill]]  ;;  %s6484_s12 = sld [smem:[#allocation27_spill]] }
 0x1a0   :  { %v862_v18 = vmul.f32 %v6473_v6, %v859_v28  ;;  %v6474_v42 = vmov %v6473_v6  ;;  %v868_v8 = vmul.f32 %v6475_v60, %v859_v28  ;;  %v6476_v16 = vmov %v6475_v60  ;;  %s2757_s22 = sld [smem:[#allocation6 + $0x41]]  ;;  %s2762_s10 = sld [smem:[#allocation6 + $0x46]] }
 0x1a1   :  { %v863_v11 = vmul.f32 %v6474_v42, %v858_v31  ;;  %v869_v59 = vmul.f32 %v6476_v16, %v858_v31  ;;  %v874_v62 = vmul.f32 %v6477_v26, %v859_v28  ;;  %v6478_v5 = vmov %v6477_v26  ;;  %v6503_v16 = vld [vmem:[#allocation57_spill] sm:$0xff]  ;;  %v6504_v26 = vld [vmem:[#allocation59_spill] sm:$0xff] }
 0x1a2   :  { %v875_v27 = vmul.f32 %v6478_v5, %v858_v31  ;;  %v880_v10 = vmul.f32 %v6479_v2, %v859_v28  ;;  %v6480_v56 = vmov %v6479_v2  ;;  %v864_v22 = vadd.f32 %v862_v18, %v834_v35  ;;  %v6500_v28 = vld [vmem:[#allocation56_spill] sm:$0xff]  ;;  %v6501_v18 = vld [vmem:[#allocation58_spill] sm:$0xff]  ;;  %v6505_v5 = vld [vmem:[#allocation61_spill] sm:$0xff] }
 0x1a3   :  { %v881_v14 = vmul.f32 %v6480_v56, %v858_v31  ;;  %v865_v51 = vadd.f32 %v863_v11, %v835_v61  ;;  %v870_v55 = vadd.f32 %v868_v8, %v840_v39  ;;  %v871_v43 = vadd.f32 %v869_v59, %v841_v23  ;;  %v957_v31 = vpop.permute.xlu0 %956  ;;  %v6502_v11 = vld [vmem:[#allocation60_spill] sm:$0xff] }
 0x1a4   :  { %v876_v50 = vadd.f32 %v874_v62, %v846_v41  ;;  %v877_v29 = vadd.f32 %v875_v27, %v847_v7  ;;  %v882_v63 = vadd.f32 %v880_v10, %v852_v57  ;;  %v888_v40 = vadd.f32 %v6483_v47, %v864_v22  ;;  %v959_v41 = vpop.permute.xlu1 %958  ;;  %v6506_v10 = vld [vmem:[#allocation49_spill] sm:$0xff] }
 0x1a5   :  { %v883_v32 = vadd.f32 %v881_v14, %v853_v38  ;;  %v889_v54 = vadd.f32 %v6485_v58, %v865_v51  ;;  %v894_v37 = vadd.f32 %v6486_v33, %v870_v55  ;;  %v895_v30 = vadd.f32 %v6487_v45, %v871_v43  ;;  %v6507_v55 = vld [vmem:[#allocation50_spill] sm:$0xff] }
 0x1a6   :  { %v900_v44 = vadd.f32 %v6488_v49, %v876_v50  ;;  %v901_v52 = vadd.f32 %v6489_v36, %v877_v29  ;;  %v906_v53 = vadd.f32 %v6490_v15, %v882_v63  ;;  %v6493_v48 = vstv %s6481_s14  ;;  %s4265_s14 = sld [smem:[#allocation6 + $0x90]] }
 0x1a7   :  { %v907_v17 = vadd.f32 %v6491_v25, %v883_v32  ;;  %v940_v13 = vmul.f32 %v6493_v48, %v6492_v46  ;;  %v6495_v0 = vmov %v6493_v48  ;;  %v6496_v4 = vstv %s6482_s4  ;;  %v1017_v33 = vpop.permute.xlu0 %1016  ;;  %s4273_s4 = sld [smem:[#allocation6 + $0xa9]] }
 0x1a8   :  { %v941_v19 = vmul.f32 %v6495_v0, %v6494_v21  ;;  %v946_v3 = vmul.f32 %v6496_v4, %v6492_v46  ;;  %v6497_v12 = vmov %v6496_v4  ;;  %v993_v39 = vstv %s4003_s3  ;;  %s4259_s3 = sld [smem:[#allocation6 + $0x8e]] }
 0x1a9   :  { %v947_v35 = vmul.f32 %v6497_v12, %v6494_v21  ;;  %v6498_v57 = vstv %s6484_s12  ;;  %v963_v38 = vstv %s4005_s13  ;;  %v912_v6 = vadd.f32 %v6500_v28, %v888_v40  ;;  %s4263_s13 = sld [smem:[#allocation6 + $0x8f]]  ;;  %s4275_s12 = sld [smem:[#allocation6 + $0xaa]] }
 0x1aa   :  { %v952_v61 = vmul.f32 %v6498_v57, %v6492_v46  ;;  %v6499_v23 = vmov %v6498_v57  ;;  %v918_v42 = vadd.f32 %v6501_v18, %v894_v37  ;;  %v924_v60 = vadd.f32 %v6502_v11, %v900_v44 }
 0x1ab   :  { %v953_v7 = vmul.f32 %v6499_v23, %v6494_v21  ;;  %v930_v8 = vadd.f32 %v3883_v34, %v906_v53  ;;  %v913_v59 = vadd.f32 %v6503_v16, %v889_v54  ;;  %v919_v62 = vadd.f32 %v6504_v26, %v895_v30  ;;  %v1019_v54 = vpop.permute.xlu1 %1018 }
 0x1ac   :  { %v925_v27 = vadd.f32 %v6505_v5, %v901_v52  ;;  %v931_v2 = vadd.f32 %v3886_v20, %v907_v17  ;;  %v936_v56 = vadd.f32 %v6506_v10, %v912_v6  ;;  %v942_v14 = vadd.f32 %v940_v13, %v918_v42 }
 0x1ad   :  { %v4064_v22 = vadd.f32 %v946_v3, %v924_v60  ;;  %v4066_v51 = vadd.f32 %v952_v61, %v930_v8  ;;  %v937_v34 = vadd.f32 %v6507_v55, %v913_v59  ;;  %v943_v43 = vadd.f32 %v941_v19, %v919_v62 }
 0x1ae   :  { %v4069_v50 = vadd.f32 %v947_v35, %v925_v27  ;;  %v4071_v29 = vadd.f32 %v953_v7, %v931_v2  ;;  %v4075_v63 = vsel %vm679_vm15, %v987_v24, %v989_v9  ;;  %v4079_v20 = vsel %vm679_vm15, %v989_v9, %v987_v24 }
 0x1af   :  { %v4083_v32 = vsel %vm679_vm15, %v957_v31, %v959_v41  ;;  %v4087_v47 = vsel %vm679_vm15, %v959_v41, %v957_v31  ;;  %v969_v37 = vstv %s4043_s15  ;;  %v994_v9 = vmul.f32 %v993_v39, %v4075_v63  ;;  %s4286_s15 = sld [smem:[#allocation6 + $0x55]] }
 0x1b0   :  { %v964_v40 = vmul.f32 %v963_v38, %v4083_v32  ;;  %v965_v58 = vmul.f32 %v963_v38, %v4087_v47  ;;  %v995_v24 = vmul.f32 %v993_v39, %v4079_v20  ;;  %v1023_v49 = vstv %s4057_s19  ;;  %s4288_s19 = sld [smem:[#allocation6 + $0xab]] }
 0x1b1   :  { %v4097_v44 = vsel %vm679_vm15, %v1017_v33, %v1019_v54  ;;  %v4101_v36 = vsel %vm679_vm15, %v1019_v54, %v1017_v33  ;;  %v970_v53 = vmul.f32 %v969_v37, %v4083_v32  ;;  %v971_v25 = vmul.f32 %v969_v37, %v4087_v47 }
 0x1b2   :  { %v966_v45 = vadd.f32 %v964_v40, %v936_v56  ;;  %v967_v30 = vadd.f32 %v965_v58, %v937_v34  ;;  %v1024_v17 = vmul.f32 %v1023_v49, %v4097_v44  ;;  %v1025_v46 = vmul.f32 %v1023_v49, %v4101_v36 }
 0x1b3   :  { %v1047_v48 = vstv %s2764_s20  ;;  %v999_v13 = vstv %s2757_s22  ;;  %v972_v19 = vadd.f32 %v970_v53, %v942_v14  ;;  %v973_v4 = vadd.f32 %v971_v25, %v943_v43  ;;  %s4294_s20 = sld [smem:[#allocation6 + $0x56]]  ;;  %s4296_s22 = sld [smem:[#allocation6 + $0x57]] }
 0x1b4   :  { %v996_v52 = vadd.f32 %v994_v9, %v966_v45  ;;  %v997_v15 = vadd.f32 %v995_v24, %v967_v30  ;;  %v1000_v35 = vmul.f32 %v999_v13, %v4075_v63  ;;  %v1001_v39 = vmul.f32 %v999_v13, %v4079_v20 }
 0x1b5   :  { %v1029_v41 = vstv %s2761_s7  ;;  %v975_v18 = vstv %s2754_s9  ;;  %v1051_v60 = vstv %s2765_s2  ;;  %v1005_v62 = vstv %s2758_s5  ;;  %s4302_s7 = sld [smem:[#allocation6 + $0x5b]]  ;;  %s4306_s9 = sld [smem:[#allocation6 + $0x5c]] }
 0x1b6   :  { %v1026_v21 = vadd.f32 %v1024_v17, %v996_v52  ;;  %v1027_v0 = vadd.f32 %v1025_v46, %v997_v15  ;;  %v1002_v23 = vadd.f32 %v1000_v35, %v972_v19  ;;  %v1003_v7 = vadd.f32 %v1001_v39, %v973_v4  ;;  %s4310_s2 = sld [smem:[#allocation6 + $0x5d]]  ;;  %s4351_s5 = sld [smem:[#allocation6 + $0x71]] }
 0x1b7   :  { %v1030_v38 = vmul.f32 %v1029_v41, %v4097_v44  ;;  %v1031_v31 = vmul.f32 %v1029_v41, %v4101_v36  ;;  %v976_v8 = vmul.f32 %v975_v18, %v4083_v32  ;;  %v977_v16 = vmul.f32 %v975_v18, %v4087_v47 }
 0x1b8   :  { %v1048_v3 = vadd.f32 %v1047_v48, %v1026_v21  ;;  %v1049_v12 = vadd.f32 %v1047_v48, %v1027_v0  ;;  %v1035_v2 = vstv %s2762_s10  ;;  %v1006_v14 = vmul.f32 %v1005_v62, %v4075_v63  ;;  %s4353_s10 = sld [smem:[#allocation6 + $0x72]] }
 0x1b9   :  { %v1032_v42 = vadd.f32 %v1030_v38, %v1002_v23  ;;  %v1033_v11 = vadd.f32 %v1031_v31, %v1003_v7  ;;  %v978_v5 = vadd.f32 %v976_v8, %v4064_v22  ;;  %v979_v27 = vadd.f32 %v977_v16, %v4069_v50 }
 0x1ba   :  { %vm1062_vm0 = vcmp.gt.f32.partialorder %v1048_v3, 0.0  ;;  %vm1063_vm1 = vcmp.gt.f32.partialorder %v1049_v12, 0.0  ;;  %v1064_v57 = vmul.f32 0.01, %v1048_v3  ;;  %v1065_v61 = vmul.f32 0.01, %v1049_v12 }
 0x1bb   :  { %v1052_v59 = vadd.f32 %v1051_v60, %v1032_v42  ;;  %v1053_v26 = vadd.f32 %v1051_v60, %v1033_v11  ;;  %v1007_v55 = vmul.f32 %v1005_v62, %v4079_v20  ;;  %v1008_v22 = vadd.f32 %v1006_v14, %v978_v5 }
 0x1bc   :  { %v4111_v28 = vsel %vm1062_vm0, %v1048_v3, %v1064_v57  ;;  %v4113_v6 = vsel %vm1063_vm1, %v1049_v12, %v1065_v61  ;;  %v1036_v43 = vmul.f32 %v1035_v2, %v4097_v44  ;;  %v1037_v50 = vmul.f32 %v1035_v2, %v4101_v36 }
 0x1bd   :  { %1086 = vrot.lane.b32.xlu0 %v4111_v28, %s6508_s0  ;;  %1088 = vrot.lane.b32.xlu1 %v4113_v6, %s6508_s0  ;;  %v1070_v10 = vmul.f32 0.01, %v1052_v59  ;;  %v1071_v56 = vmul.f32 0.01, %v1053_v26  ;;  %vm1068_vm2 = vcmp.gt.f32.partialorder %v1052_v59, 0.0  ;;  %vm1069_vm3 = vcmp.gt.f32.partialorder %v1053_v26, 0.0 }
 0x1be   :  { %v1009_v34 = vadd.f32 %v1007_v55, %v979_v27  ;;  %v981_v54 = vstv %s2755_s16  ;;  %v1038_v33 = vadd.f32 %v1036_v43, %v1008_v22  ;;  %v1055_v9 = vstv %s2766_s17  ;;  %s4376_s16 = sld [smem:[#allocation6 + $0x78]]  ;;  %s4378_s17 = sld [smem:[#allocation6 + $0x8b]] }
 0x1bf   :  { %v4139_v40 = vsel %vm1068_vm2, %v1052_v59, %v1070_v10  ;;  %v4141_v58 = vsel %vm1069_vm3, %v1053_v26, %v1071_v56  ;;  %v982_v24 = vmul.f32 %v981_v54, %v4083_v32  ;;  %v983_v45 = vmul.f32 %v981_v54, %v4087_v47  ;;  %v6516_v10 = vld [vmem:[#allocation11_spill] sm:$0xff] }
 0x1c0   :  { %v1039_v37 = vadd.f32 %v1037_v50, %v1009_v34  ;;  %v1056_v30 = vadd.f32 %v1055_v9, %v1038_v33  ;;  %v1011_v52 = vstv %s2759_s21  ;;  %v1041_v25 = vstv %s2763_s23  ;;  %v3010_v50 = vld.sshfl [vmem:[#allocation2] sm:$0x33 pattern:$0x76325410]  ;;  %s4393_s21 = sld [smem:[#allocation6 + $0x8d]]  ;;  %s4407_s23 = sld [smem:[#allocation6 + $0x91]] }
 0x1c1   :  { %1092 = vrot.lane.b32.xlu0 %v4111_v28, %s6509_s30  ;;  %1094 = vrot.lane.b32.xlu1 %v4113_v6, %s6509_s30  ;;  %v984_v15 = vadd.f32 %v982_v24, %v4066_v51  ;;  %v985_v53 = vadd.f32 %v983_v45, %v4071_v29  ;;  %v1012_v32 = vmul.f32 %v1011_v52, %v4075_v63  ;;  %v1059_v19 = vstv %s2767_s24  ;;  %s4409_s24 = sld [smem:[#allocation6 + $0x92]] }
 0x1c2   :  { %v1057_v49 = vadd.f32 %v1055_v9, %v1039_v37  ;;  %v1076_v17 = vmul.f32 0.01, %v1056_v30  ;;  %v1013_v47 = vmul.f32 %v1011_v52, %v4079_v20  ;;  %vm1074_vm4 = vcmp.gt.f32.partialorder %v1056_v30, 0.0 }
 0x1c3   :  { %v1014_v48 = vadd.f32 %v1012_v32, %v984_v15  ;;  %v1042_v29 = vmul.f32 %v1041_v25, %v4097_v44  ;;  %v1043_v13 = vmul.f32 %v1041_v25, %v4101_v36  ;;  %vm51_vm2 = vcmp.eq.s32.totalorder %v6516_v10, 0 }
 0x1c4   :  { %v1077_v46 = vmul.f32 0.01, %v1057_v49  ;;  %vm1075_vm5 = vcmp.gt.f32.partialorder %v1057_v49, 0.0  ;;  %v1015_v51 = vadd.f32 %v1013_v47, %v985_v53  ;;  %v4167_v21 = vsel %vm1074_vm4, %v1056_v30, %v1076_v17  ;;  %6524 = sst [smem:[#allocation22_spill]] %s4376_s16  ;;  %s4655_s16 = sld [smem:[#allocation6 + $0x4d]] }
 0x1c5   :  { %1100 = vrot.lane.b32.xlu0 %v4111_v28, %s6510_s11  ;;  %1102 = vrot.lane.b32.xlu1 %v4113_v6, %s6510_s11  ;;  %v1044_v20 = vadd.f32 %v1042_v29, %v1014_v48  ;;  %v72_v54 = vsel %vm51_vm2, %v3010_v50, 0.0  ;;  %v1199_v37 = vstv %s4247_s26  ;;  %v1205_v9 = vstv %s4249_s27  ;;  %6525 = sst [smem:[#allocation23_spill]] %s4378_s17  ;;  %s4424_s27 = sld [smem:[#allocation6 + $0xa6]] }
 0x1c6   :  { %v4169_v63 = vsel %vm1075_vm5, %v1057_v49, %v1077_v46  ;;  %v1045_v0 = vadd.f32 %v1043_v13, %v1015_v51  ;;  %v4308_v33 = vmul.f32 0.5, %v72_v54  ;;  %v1211_v49 = vstv %s4251_s6  ;;  %6528 = sst [smem:[#allocation28_spill]] %s4393_s21  ;;  %s4422_s26 = sld [smem:[#allocation6 + $0x93]] }
 0x1c7   :  { %v1060_v44 = vadd.f32 %v1059_v19, %v1044_v20  ;;  %v1425_v52 = vstv %s4253_s8  ;;  %v1431_v15 = vstv %s4255_s28  ;;  %v1437_v53 = vstv %s4257_s29  ;;  %6533 = sst [smem:[#allocation30_spill]] %s4407_s23  ;;  %s4434_s6 = sld [smem:[#allocation6 + $0x4f]] }
 0x1c8   :  { %v1061_v36 = vadd.f32 %v1059_v19, %v1045_v0  ;;  %v2001_v24 = vand.u32 2139095040, %v4308_v33  ;;  %v1651_v25 = vstv %s4259_s3  ;;  %v1657_v17 = vstv %s4263_s13  ;;  %6534 = sst [smem:[#allocation31_spill]] %s4409_s24  ;;  %s4439_s8 = sld [smem:[#allocation6 + $0xa7]] }
 0x1c9   :  { %1106 = vrot.lane.b32.xlu0 %v4111_v28, %s6511_s18  ;;  %1108 = vrot.lane.b32.xlu1 %v4113_v6, %s6511_s18  ;;  %v1082_v4 = vmul.f32 0.01, %v1060_v44  ;;  %vm1080_vm0 = vcmp.gt.f32.partialorder %v1060_v44, 0.0  ;;  %v1663_v46 = vstv %s4265_s14  ;;  %v1877_v48 = vstv %s4273_s4  ;;  %s4484_s28 = sld [smem:[#allocation6 + $0x50]]  ;;  %s4486_s29 = sld [smem:[#allocation6 + $0x51]] }
 0x1ca   :  { %v1083_v3 = vmul.f32 0.01, %v1061_v36  ;;  %vm1081_vm1 = vcmp.gt.f32.partialorder %v1061_v36, 0.0  ;;  %v2002_v32 = vshrl.u32 %v2001_v24, 23  ;;  %v1883_v51 = vstv %s4275_s12  ;;  %s4510_s3 = sld [smem:[#allocation6 + $0xa8]]  ;;  %s4536_s13 = sld [smem:[#allocation6 + $0x61]] }
 0x1cb   :  { %v4187_v12 = vsel %vm1080_vm0, %v1060_v44, %v1082_v4  ;;  %v6205_v29 = vstv %s4288_s19  ;;  %v4337_v0 = vmul.f32 %v1199_v37, %v4111_v28  ;;  %v4345_v4 = vmul.f32 %v1211_v49, %v4111_v28  ;;  %6537 = sst [smem:[#allocation33_spill]] %s4424_s27  ;;  %s4551_s14 = sld [smem:[#allocation6 + $0x62]] }
 0x1cc   :  { %v4189_v35 = vsel %vm1081_vm1, %v1061_v36, %v1083_v3  ;;  %v4342_v36 = vmul.f32 %v1205_v9, %v4111_v28  ;;  %v4405_v50 = vmul.f32 %v1651_v25, %v4169_v63  ;;  %6536 = sst [smem:[#allocation32_spill]] %s4422_s26  ;;  %s4553_s4 = sld [smem:[#allocation6 + $0x63]]  ;;  %v6560_v47 = vmov 2131351028  }
 0x1cd   :  { %1306 = vrot.lane.b32.xlu0 %v4139_v40, %s6508_s0  ;;  %1308 = vrot.lane.b32.xlu1 %v4141_v58, %s6508_s0  ;;  %6538 = sst [smem:[#allocation34_spill]] %s4434_s6  ;;  %s4565_s12 = sld [smem:[#allocation6 + $0x6a]]  ;;  %v6604_v56 = vstv %s4351_s5 }
 0x1ce   :  { %6532 = vst [vmem:[#allocation43_spill] sm:$0xff] %v4405_v50  ;;  %6540 = sst [smem:[#allocation35_spill]] %s4439_s8  ;;  %s4567_s6 = sld [smem:[#allocation6 + $0x6b]] }
 0x1cf   :  { %6546 = sst [smem:[#allocation36_spill]] %s4484_s28  ;;  %s4575_s8 = sld [smem:[#allocation6 + $0x6c]] }
 0x1d0   :  { %6547 = sst [smem:[#allocation37_spill]] %s4486_s29  ;;  %s4577_s27 = sld [smem:[#allocation6 + $0xac]] }
 0x1d1   :  { %1312 = vrot.lane.b32.xlu0 %v4139_v40, %s6509_s30  ;;  %1314 = vrot.lane.b32.xlu1 %v4141_v58, %s6509_s30  ;;  %6549 = sst [smem:[#allocation38_spill]] %s4510_s3  ;;  %s4592_s29 = sld [smem:[#allocation6 + $0xad]] }
 0x1d2   :  { %6552 = sst [smem:[#allocation29_spill]] %s4536_s13  ;;  %s4594_s28 = sld [smem:[#allocation6 + $0xae]] }
 0x1d3   :  { %6556 = sst [smem:[#allocation39_spill]] %s4551_s14  ;;  %s4602_s26 = sld [smem:[#allocation6 + $0x7c]] }
 0x1d4   :  { %6557 = sst [smem:[#allocation40_spill]] %s4553_s4  ;;  %s4604_s24 = sld [smem:[#allocation6 + $0x7d]] }
 0x1d5   :  { %1320 = vrot.lane.b32.xlu0 %v4139_v40, %s6510_s11  ;;  %1322 = vrot.lane.b32.xlu1 %v4141_v58, %s6510_s11  ;;  %6561 = sst [smem:[#allocation25_spill]] %s4565_s12  ;;  %s4619_s3 = sld [smem:[#allocation6 + $0x7e]] }
 0x1d6   :  { %6562 = sst [smem:[#allocation26_spill]] %s4567_s6  ;;  %s4621_s23 = sld [smem:[#allocation6 + $0x85]] }
 0x1d7   :  { %6564 = sst [smem:[#allocation27_spill]] %s4575_s8  ;;  %s4630_s21 = sld [smem:[#allocation6 + $0x86]] }
 0x1d8   :  { %s4641_s17 = sld [smem:[#allocation6 + $0x4c]]  ;;  %s4657_s13 = sld [smem:[#allocation6 + $0x4e]] }
 0x1d9   :  { %1326 = vrot.lane.b32.xlu0 %v4139_v40, %s6511_s18  ;;  %1328 = vrot.lane.b32.xlu1 %v4141_v58, %s6511_s18  ;;  %s4673_s14 = sld [smem:[#allocation6 + $0x52]]  ;;  %s4694_s4 = sld [smem:[#allocation6 + $0x54]] }
 0x1da   :  { %6567 = sst [smem:[#allocation62_spill]] %s4604_s24  ;;  %s4718_s6 = sld [smem:[#allocation6 + $0x99]] }
 0x1db   :  { %s4728_s8 = sld [smem:[#allocation6 + $0x5e]]  ;;  %s4739_s12 = sld [smem:[#allocation6 + $0x5f]] }
 0x1dc   :  { %s4749_s24 = sld [smem:[#allocation6 + $0x60]] }
 0x1dd   :  { %1532 = vrot.lane.b32.xlu0 %v4167_v21, %s6508_s0  ;;  %1534 = vrot.lane.b32.xlu1 %v4169_v63, %s6508_s0 }
 0x1df   :  { %6569 = sst [smem:[#allocation64_spill]] %s4673_s14  ;;  %s4792_s14 = sld [smem:[#allocation6 + $0x66]] }
 0x1e0   :  { %6571 = sst [smem:[#allocation66_spill]] %s4694_s4  ;;  %s4812_s4 = sld [smem:[#allocation6 + $0x68]] }
 0x1e1   :  { %1538 = vrot.lane.b32.xlu0 %v4167_v21, %s6509_s30  ;;  %1540 = vrot.lane.b32.xlu1 %v4169_v63, %s6509_s30  ;;  %6574 = sst [smem:[#allocation67_spill]] %s4718_s6  ;;  %s4913_s6 = sld [smem:[#allocation6 + $0x80]] }
 0x1e2   :  { %6575 = sst [smem:[#allocation68_spill]] %s4728_s8  ;;  %s4911_s8 = sld [smem:[#allocation6 + $0x7f]] }
 0x1e3   :  { %6576 = sst [smem:[#allocation69_spill]] %s4739_s12  ;;  %s4906_s12 = sld [smem:[#allocation6 + $0x7b]] }
 0x1e4   :  { %6577 = sst [smem:[#allocation70_spill]] %s4749_s24  ;;  %s4892_s24 = sld [smem:[#allocation6 + $0x79]] }
 0x1e5   :  { %1546 = vrot.lane.b32.xlu0 %v4167_v21, %s6510_s11  ;;  %1548 = vrot.lane.b32.xlu1 %v4169_v63, %s6510_s11  ;;  %6583 = sst [smem:[#allocation73_spill]] %s4792_s14  ;;  %s4945_s14 = sld [smem:[#allocation6 + $0x82]] }
 0x1e6   :  { %6588 = sst [smem:[#allocation75_spill]] %s4812_s4  ;;  %s4928_s4 = sld [smem:[#allocation6 + $0x81]] }
 0x1e7   :  { %6597 = sst [smem:[#allocation78_spill]] %s4913_s6  ;;  %s6639_s6 = sld [smem:[#allocation31_spill]] }
 0x1e9   :  { %1552 = vrot.lane.b32.xlu0 %v4167_v21, %s6511_s18  ;;  %1554 = vrot.lane.b32.xlu1 %v4169_v63, %s6511_s18 }
 0x1ed   :  { %1758 = vrot.lane.b32.xlu0 %v4187_v12, %s6508_s0  ;;  %1760 = vrot.lane.b32.xlu1 %v4189_v35, %s6508_s0  ;;  %s4339_s0 = sld [smem:[#allocation6 + $0x70]] }
 0x1f1   :  { %1764 = vrot.lane.b32.xlu0 %v4187_v12, %s6509_s30  ;;  %1766 = vrot.lane.b32.xlu1 %v4189_v35, %s6509_s30  ;;  %s4362_s30 = sld [smem:[#allocation6 + $0x76]] }
 0x1f5   :  { %1772 = vrot.lane.b32.xlu0 %v4187_v12, %s6510_s11  ;;  %1774 = vrot.lane.b32.xlu1 %v4189_v35, %s6510_s11  ;;  %s4364_s11 = sld [smem:[#allocation6 + $0x77]] }
 0x1f7   :  { %6519 = sst [smem:[#allocation20_spill]] %s4362_s30  ;;  %s4708_s30 = sld [smem:[#allocation6 + $0x97]] }
 0x1f9   :  { %1778 = vrot.lane.b32.xlu0 %v4187_v12, %s6511_s18  ;;  %1780 = vrot.lane.b32.xlu1 %v4189_v35, %s6511_s18  ;;  %s4391_s18 = sld [smem:[#allocation6 + $0x8c]] }
 0x1fb   :  { %6520 = sst [smem:[#allocation21_spill]] %s4364_s11  ;;  %s4675_s11 = sld [smem:[#allocation6 + $0x53]] }
 0x1fd   :  { %1132 = vrot.lane.b32.xlu0 %v4111_v28, %s6512_s1  ;;  %1134 = vrot.lane.b32.xlu1 %v4113_v6, %s6512_s1 }
 0x1ff   :  { %6527 = sst [smem:[#allocation24_spill]] %s4391_s18  ;;  %s4632_s18 = sld [smem:[#allocation6 + $0x87]] }
 0x200   :  { %s6628_s5 = sld [smem:[#allocation24_spill]] }
 0x201   :  { %1258 = vrot.lane.b32.xlu0 %v4111_v28, %s6513_s25  ;;  %1260 = vrot.lane.b32.xlu1 %v4113_v6, %s6513_s25  ;;  %v2879_v28 = vadd.s32 4294967169, %v2002_v32  ;;  %6570 = sst [smem:[#allocation65_spill]] %s4675_s11  ;;  %s4790_s11 = sld [smem:[#allocation6 + $0x65]] }
 0x205   :  { %1358 = vrot.lane.b32.xlu0 %v4139_v40, %s6512_s1  ;;  %1360 = vrot.lane.b32.xlu1 %v4141_v58, %s6512_s1  ;;  %6568 = sst [smem:[#allocation63_spill]] %s4632_s18  ;;  %s4758_s18 = sld [smem:[#allocation6 + $0x64]] }
 0x207   :  { %6582 = sst [smem:[#allocation72_spill]] %s4790_s11  ;;  %s6603_s11 = sld [smem:[#allocation21_spill]] }
 0x209   :  { %1484 = vrot.lane.b32.xlu0 %v4139_v40, %s6513_s25  ;;  %1486 = vrot.lane.b32.xlu1 %v4141_v58, %s6513_s25 }
 0x20b   :  { %6578 = sst [smem:[#allocation71_spill]] %s4758_s18  ;;  %s4968_s18 = sld [smem:[#allocation6 + $0x84]] }
 0x20d   :  { %1584 = vrot.lane.b32.xlu0 %v4167_v21, %s6512_s1  ;;  %1586 = vrot.lane.b32.xlu1 %v4169_v63, %s6512_s1 }
 0x211   :  { %6612 = sst [smem:[#allocation21_spill]] %s4968_s18  ;;  %s6672_s18 = sld [smem:[#allocation38_spill]] }
 0x22f   :  { %v1087_v39 = vpop.permute.xlu0 %1086  ;;  %v1089_v41 = vpop.permute.xlu1 %1088 }
 0x230   :  { %v1090_v23 = vsel %vm492_vm7, %v1087_v39, %v1089_v41  ;;  %v1091_v7 = vsel %vm492_vm7, %v1089_v41, %v1087_v39  ;;  %v4349_v39 = vmul.f32 %v1199_v37, %v4113_v6  ;;  %v6555_v41 = vmov 920167782  }
 0x233   :  { %v1093_v57 = vpop.permute.xlu0 %1092  ;;  %v1095_v61 = vpop.permute.xlu1 %1094 }
 0x234   :  { %v1096_v38 = vsel %vm499_vm6, %v1093_v57, %v1095_v61  ;;  %v1097_v31 = vsel %vm499_vm6, %v1095_v61, %v1093_v57  ;;  %v4357_v57 = vmul.f32 %v1205_v9, %v4113_v6  ;;  %v4360_v61 = vmul.f32 %v1211_v49, %v4113_v6 }
 0x235   :  { %v4237_v42 = vsel %vm3301_vm8, %v1090_v23, %v1097_v31  ;;  %v4241_v60 = vsel %vm3305_vm9, %v1091_v7, %v1096_v38  ;;  %v4368_v7 = vmul.f32 %v1425_v52, %v4139_v40  ;;  %v4371_v38 = vmul.f32 %v1425_v52, %v4141_v58 }
 0x236   :  { %1114 = vrot.lane.b32.xlu0 %v4237_v42, %s6512_s1  ;;  %1116 = vrot.lane.b32.xlu1 %v4241_v60, %s6512_s1  ;;  %v4374_v31 = vmul.f32 %v1431_v15, %v4139_v40 }
 0x237   :  { %v1101_v8 = vpop.permute.xlu0 %1100  ;;  %v1103_v16 = vpop.permute.xlu1 %1102  ;;  %6521 = vst [vmem:[#allocation51_spill] sm:$0xff] %v4368_v7  ;;  %6522 = vst [vmem:[#allocation52_spill] sm:$0xff] %v4371_v38 }
 0x238   :  { %v1104_v59 = vsel %vm508_vm10, %v1101_v8, %v1103_v16  ;;  %v1105_v5 = vsel %vm508_vm10, %v1103_v16, %v1101_v8  ;;  %6523 = vst [vmem:[#allocation54_spill] sm:$0xff] %v4374_v31  ;;  %v4389_v16 = vmul.f32 %v1431_v15, %v4141_v58 }
 0x23a   :  { %6526 = vst [vmem:[#allocation53_spill] sm:$0xff] %v4389_v16 }
 0x23b   :  { %v1107_v26 = vpop.permute.xlu0 %1106  ;;  %v1109_v62 = vpop.permute.xlu1 %1108 }
 0x23c   :  { %v1110_v27 = vsel %vm515_vm11, %v1107_v26, %v1109_v62  ;;  %v1111_v2 = vsel %vm515_vm11, %v1109_v62, %v1107_v26 }
 0x23d   :  { %v4280_v14 = vsel %vm3331_vm12, %v1105_v5, %v1110_v27  ;;  %v4284_v22 = vsel %vm3335_vm13, %v1104_v59, %v1111_v2  ;;  %v2008_v59 = vadd.s32 1, %v2879_v28  ;;  %v4396_v5 = vmul.f32 %v1437_v53, %v4139_v40 }
 0x23e   :  { %1158 = vrot.lane.b32.xlu1 %v4284_v22, %s6512_s1  ;;  %1156 = vrot.lane.b32.xlu0 %v4280_v14, %s6512_s1  ;;  %v4399_v27 = vmul.f32 %v1437_v53, %v4141_v58  ;;  %v4402_v2 = vmul.f32 %v1651_v25, %v4167_v21  ;;  %v4420_v58 = vmul.f32 %v1657_v17, %v4167_v21 }
 0x23f   :  { %v4298_v34 = vpop.permute.xlu0 %1306  ;;  %v4300_v43 = vpop.permute.xlu1 %1308  ;;  %6529 = vst [vmem:[#allocation55_spill] sm:$0xff] %v4396_v5  ;;  %vm2009_vm3 = vcmp.gt.s32.totalorder %v2008_v59, 0  ;;  %v4463_v53 = vmul.f32 %v1663_v46, %v4169_v63  ;;  %v4468_v25 = vmul.f32 %v1877_v48, %v4187_v12 }
 0x240   :  { %6530 = vst [vmem:[#allocation41_spill] sm:$0xff] %v4399_v27  ;;  %6531 = vst [vmem:[#allocation42_spill] sm:$0xff] %v4402_v2  ;;  %v1310_v54 = vsel %vm492_vm7, %v4298_v34, %v4300_v43  ;;  %v1311_v40 = vsel %vm492_vm7, %v4300_v43, %v4298_v34  ;;  %v4437_v34 = vmul.f32 %v1657_v17, %v4169_v63  ;;  %v2010_v43 = vsel %vm2009_vm3, %v2008_v59, 0 }
 0x241   :  { %6535 = vst [vmem:[#allocation44_spill] sm:$0xff] %v4420_v58  ;;  %v4454_v49 = vand.u32 31, %v2010_v43  ;;  %6542 = vst [vmem:[#allocation47_spill] sm:$0xff] %v4463_v53  ;;  %v4478_v17 = vmul.f32 %v1883_v51, %v4187_v12  ;;  %v4515_v59 = vmul.f32 %v6205_v29, %v4187_v12 }
 0x242   :  { %1712 = vrot.lane.b32.xlu1 %v4169_v63, %s6513_s25  ;;  %1710 = vrot.lane.b32.xlu0 %v4167_v21, %s6513_s25  ;;  %6539 = vst [vmem:[#allocation45_spill] sm:$0xff] %v4437_v34  ;;  %6543 = vst [vmem:[#allocation48_spill] sm:$0xff] %v4468_v25 }
 0x243   :  { %v1313_v45 = vpop.permute.xlu0 %1312  ;;  %v1315_v30 = vpop.permute.xlu1 %1314  ;;  %6545 = vst [vmem:[#allocation19_spill] sm:$0xff] %v4478_v17  ;;  %6550 = vst [vmem:[#allocation58_spill] sm:$0xff] %v4515_v59  ;;  %v6565_v59 = vmov 1326507024  }
 0x244   :  { %v1316_v6 = vsel %vm499_vm6, %v1313_v45, %v1315_v30  ;;  %v1317_v8 = vsel %vm499_vm6, %v1315_v30, %v1313_v45  ;;  %v4452_v30 = vmul.f32 %v1663_v46, %v4167_v21  ;;  %v4473_v21 = vmul.f32 %v1877_v48, %v4189_v35 }
 0x245   :  { %v4428_v37 = vsel %vm3301_vm8, %v1310_v54, %v1317_v8  ;;  %v4432_v9 = vsel %vm3305_vm9, %v1311_v40, %v1316_v6  ;;  %v4492_v48 = vmul.f32 %v1883_v51, %v4189_v35  ;;  %v4541_v8 = vshrl.u32 %v2010_v43, 5 }
 0x246   :  { %1236 = vrot.lane.b32.xlu1 %v4241_v60, %s6513_s25  ;;  %1234 = vrot.lane.b32.xlu0 %v4237_v42, %s6513_s25  ;;  %6541 = vst [vmem:[#allocation46_spill] sm:$0xff] %v4452_v30  ;;  %6544 = vst [vmem:[#allocation18_spill] sm:$0xff] %v4473_v21  ;;  %v6558_v40 = vmov 683565275   ;;  %v6559_v43 = vmov 2475754826   ;;  %v4954_v55 = vmul.f32 %v6604_v56, %v4428_v37 }
 0x247   :  { %v1321_v19 = vpop.permute.xlu0 %1320  ;;  %v1323_v44 = vpop.permute.xlu1 %1322  ;;  %6548 = vst [vmem:[#allocation56_spill] sm:$0xff] %v4492_v48  ;;  %v2015_v3 = vshll.u32 %v6558_v40, %v4454_v49  ;;  %v2018_v13 = vshll.u32 %v6559_v43, %v4454_v49  ;;  %v2021_v48 = vshll.u32 %v6560_v47, %v4454_v49  ;;  %vm2033_vm5 = vcmp.lt.s32.totalorder %v4541_v8, 4 }
 0x248   :  { %v1324_v32 = vsel %vm508_vm10, %v1321_v19, %v1323_v44  ;;  %v1325_v63 = vsel %vm508_vm10, %v1323_v44, %v1321_v19  ;;  %v6554_v19 = vmov 2102212464   ;;  %v2027_v44 = vshll.u32 %v6555_v41, %v4454_v49  ;;  %6605 = vst [vmem:[#allocation49_spill] sm:$0xff] %v4954_v55 }
 0x249   :  { %v2024_v23 = vshll.u32 %v6554_v19, %v4454_v49  ;;  %vm2030_vm0 = vcmp.lt.s32.totalorder %v4541_v8, 1  ;;  %vm2032_vm1 = vcmp.lt.s32.totalorder %v4541_v8, 3  ;;  %vm2031_vm3 = vcmp.lt.s32.totalorder %v4541_v8, 2 }
 0x24a   :  { %1284 = vrot.lane.b32.xlu1 %v4284_v22, %s6513_s25  ;;  %1282 = vrot.lane.b32.xlu0 %v4280_v14, %s6513_s25  ;;  %v6764_v55 = vstv %s4641_s17  ;;  %s6769_s17 = sld [smem:[#allocation65_spill]] }
 0x24b   :  { %v1327_v26 = vpop.permute.xlu0 %1326  ;;  %v1329_v62 = vpop.permute.xlu1 %1328 }
 0x24c   :  { %v1330_v24 = vsel %vm515_vm11, %v1327_v26, %v1329_v62  ;;  %v1331_v45 = vsel %vm515_vm11, %v1329_v62, %v1327_v26  ;;  %v4518_v26 = vsub.s32 32, %v4454_v49 }
 0x24d   :  { %v4496_v28 = vsel %vm3331_vm12, %v1325_v63, %v1330_v24  ;;  %v4500_v6 = vsel %vm3335_vm13, %v1324_v32, %v1331_v45  ;;  %v6551_v32 = vld [vmem:[#allocation12_spill] sm:$0xff]  ;;  %v6553_v45 = vld [vmem:[#allocation13_spill] sm:$0xff] }
 0x24e   :  { %1334 = vrot.lane.b32.xlu0 %v4428_v37, %s6512_s1  ;;  %1336 = vrot.lane.b32.xlu1 %v4432_v9, %s6512_s1  ;;  %vm52_vm4 = vcmp.eq.s32.totalorder %v6551_v32, 0  ;;  %v2025_v46 = vshrl.u32 %v6555_v41, %v4518_v26  ;;  %v2016_v20 = vshrl.u32 %v6559_v43, %v4518_v26  ;;  %v2019_v29 = vshrl.u32 %v6560_v47, %v4518_v26 }
 0x24f   :  { %v4456_v52 = vpop.permute.xlu0 %1532  ;;  %v4458_v15 = vpop.permute.xlu1 %1534  ;;  %v73_v51 = vsel %vm52_vm4, %v6553_v45, 0.0  ;;  %v6563_v32 = vand.u32 2147483647, %v4308_v33  ;;  %v2022_v45 = vshrl.u32 %v6554_v19, %v4518_v26  ;;  %v2028_v17 = vshrl.u32 %v6565_v59, %v4518_v26 }
 0x250   :  { %v4596_v53 = vmul.f32 0.5, %v73_v51  ;;  %v2026_v49 = vor.u32 %v2025_v46, %v2024_v23  ;;  %v1536_v30 = vsel %vm492_vm7, %v4456_v52, %v4458_v15  ;;  %v4606_v34 = vor.u32 %v2016_v20, %v2015_v3 }
 0x251   :  { %v2005_v10 = vand.u32 8388607, %v6563_v32  ;;  %v4608_v25 = vor.u32 %v2019_v29, %v2018_v13  ;;  %v1537_v23 = vsel %vm492_vm7, %v4458_v15, %v4456_v52  ;;  %v2023_v3 = vor.u32 %v2022_v45, %v2021_v48 }
 0x252   :  { %1384 = vrot.lane.b32.xlu1 %v4500_v6, %s6512_s1  ;;  %1382 = vrot.lane.b32.xlu0 %v4496_v28, %s6512_s1  ;;  %6566 = vst [vmem:[#allocation60_spill] sm:$0xff] %v4596_v53  ;;  %v2039_v15 = vsel %vm2033_vm5, %v2026_v49, 920167782 }
 0x253   :  { %v1539_v62 = vpop.permute.xlu0 %1538  ;;  %v1541_v54 = vpop.permute.xlu1 %1540  ;;  %v2006_v20 = vor.u32 8388608, %v2005_v10  ;;  %v2038_v51 = vsel %vm2030_vm0, %v4606_v34, %v4608_v25 }
 0x254   :  { %v1543_v21 = vsel %vm499_vm6, %v1541_v54, %v1539_v62  ;;  %v1542_v32 = vsel %vm499_vm6, %v1539_v62, %v1541_v54 }
 0x255   :  { %v4617_v46 = vsel %vm3301_vm8, %v1536_v30, %v1543_v21  ;;  %v4626_v29 = vsel %vm3305_vm9, %v1537_v23, %v1542_v32  ;;  %v2029_v30 = vor.u32 %v2028_v17, %v2027_v44 }
 0x256   :  { %1462 = vrot.lane.b32.xlu1 %v4432_v9, %s6513_s25  ;;  %1460 = vrot.lane.b32.xlu0 %v4428_v37, %s6513_s25 }
 0x257   :  { %v4547_v63 = vpop.permute.xlu0 %1546  ;;  %v4549_v24 = vpop.permute.xlu1 %1548 }
 0x258   :  { %v1551_v21 = vsel %vm508_vm10, %v4549_v24, %v4547_v63  ;;  %v1550_v45 = vsel %vm508_vm10, %v4547_v63, %v4549_v24  ;;  %v2040_v24 = vsel %vm2032_vm1, %v2023_v3, %v2039_v15  ;;  %v2043_v63 = vsel %vm2033_vm5, %v2029_v30, 1326507024 }
 0x25a   :  { %1510 = vrot.lane.b32.xlu1 %v4500_v6, %s6513_s25  ;;  %1508 = vrot.lane.b32.xlu0 %v4496_v28, %s6513_s25 }
 0x25b   :  { %v1553_v62 = vpop.permute.xlu0 %1552  ;;  %v1555_v54 = vpop.permute.xlu1 %1554 }
 0x25c   :  { %v1556_v13 = vsel %vm515_vm11, %v1553_v62, %v1555_v54  ;;  %v1557_v52 = vsel %vm515_vm11, %v1555_v54, %v1553_v62  ;;  %v2104_v54 = vand.u32 2139095040, %v4596_v53 }
 0x25d   :  { %v4670_v32 = vsel %vm3331_vm12, %v1551_v21, %v1556_v13  ;;  %v4680_v23 = vsel %vm3335_vm13, %v1550_v45, %v1557_v52  ;;  %v4686_v13 = vshll.u32 %v2006_v20, 8  ;;  %v6572_v52 = vstv %s4288_s19  ;;  %s4716_s19 = sld [smem:[#allocation6 + $0x98]] }
 0x25e   :  { %1560 = vrot.lane.b32.xlu0 %v4617_v46, %s6512_s1  ;;  %1562 = vrot.lane.b32.xlu1 %v4626_v29, %s6512_s1  ;;  %v4699_v15 = vmul.f32 %v6572_v52, %v4189_v35  ;;  %v2041_v20 = vsel %vm2031_vm3, %v2038_v51, %v2040_v24  ;;  %v2042_v21 = vsel %vm2030_vm0, %v4608_v25, %v2023_v3  ;;  %v2105_v10 = vshrl.u32 %v2104_v54, 23 }
 0x25f   :  { %v4650_v17 = vpop.permute.xlu0 %1758  ;;  %v4652_v48 = vpop.permute.xlu1 %1760  ;;  %v2044_v52 = vsel %vm2032_vm1, %v2026_v49, %v2043_v63  ;;  %v4722_v24 = vmul.u32.u64.low %v4686_v13, %v2041_v20  ;;  %v4723_v44 = vmul.u32.u64.high %v4686_v13, %v2041_v20, %v4722_v24  ;;  %v2014_v63 = vshrl.u32 %v6558_v40, %v4518_v26 }
 0x260   :  { %6573 = vst [vmem:[#allocation57_spill] sm:$0xff] %v4699_v15  ;;  %v2035_v15 = vsel %vm2033_vm5, %v2023_v3, 2102212464  ;;  %v2045_v62 = vsel %vm2031_vm3, %v2042_v21, %v2044_v52  ;;  %v2883_v2 = vadd.s32 4294967169, %v2105_v10  ;;  %v6579_v26 = vstv %s4286_s15  ;;  %s4810_s15 = sld [smem:[#allocation6 + $0x67]] }
 0x261   :  { %v2034_v52 = vsel %vm2030_vm0, %v2014_v63, %v4606_v34  ;;  %v2036_v54 = vsel %vm2032_vm1, %v4608_v25, %v2035_v15  ;;  %v4767_v10 = vmul.u32.u64.low %v4686_v13, %v2045_v62  ;;  %v4768_v58 = vmul.u32.u64.high %v4686_v13, %v2045_v62, %v4767_v10 }
 0x262   :  { %1610 = vrot.lane.b32.xlu1 %v4680_v23, %s6512_s1  ;;  %1608 = vrot.lane.b32.xlu0 %v4670_v32, %s6512_s1  ;;  %v4778_v34 = vmul.f32 %v6579_v26, %v4237_v42  ;;  %v6580_v25 = vmov %v6579_v26  ;;  %v6581_v62 = vstv %s4294_s20  ;;  %v6585_v26 = vstv %s4296_s22  ;;  %s4830_s20 = sld [smem:[#allocation6 + $0x69]]  ;;  %s4856_s22 = sld [smem:[#allocation6 + $0x6d]] }
 0x263   :  { %v4703_v30 = vpop.permute.xlu0 %1764  ;;  %v4705_v45 = vpop.permute.xlu1 %1766  ;;  %v4783_v15 = vmul.f32 %v6580_v25, %v4241_v60  ;;  %v4788_v63 = vmul.f32 %v6581_v62, %v4237_v42  ;;  %v6584_v10 = vmov %v6581_v62  ;;  %v4802_v20 = vmul.f32 %v6585_v26, %v4237_v42 }
 0x264   :  { %v4797_v50 = vmul.f32 %v6584_v10, %v4241_v60  ;;  %v6586_v25 = vmov %v6585_v26  ;;  %v2037_v10 = vsel %vm2031_vm3, %v2034_v52, %v2036_v54  ;;  %v2056_v42 = vadd.s32 1, %v4723_v44 }
 0x265   :  { %v4807_v51 = vmul.f32 %v6586_v25, %v4241_v60  ;;  %v6589_v26 = vstv %s4302_s7  ;;  %v2111_v62 = vadd.s32 1, %v2883_v2  ;;  %v1768_v8 = vsel %vm499_vm6, %v4703_v30, %v4705_v45  ;;  %s4858_s7 = sld [smem:[#allocation6 + $0x6e]] }
 0x266   :  { %1812 = vrot.lane.b32.xlu1 %v4189_v35, %s6512_s1  ;;  %1810 = vrot.lane.b32.xlu0 %v4187_v12, %s6512_s1  ;;  %6587 = sst [smem:[#allocation74_spill]] %s4810_s15  ;;  %v4822_v60 = vmul.f32 %v6589_v26, %v4280_v14  ;;  %v6590_v25 = vmov %v6589_v26  ;;  %v1769_v54 = vsel %vm499_vm6, %v4705_v45, %v4703_v30  ;;  %v6592_v52 = vstv %s4306_s9  ;;  %s4876_s9 = sld [smem:[#allocation6 + $0x6f]] }
 0x267   :  { %v4754_v3 = vpop.permute.xlu0 %1772  ;;  %v4756_v21 = vpop.permute.xlu1 %1774  ;;  %v4827_v49 = vmul.f32 %v6590_v25, %v4284_v22  ;;  %v4847_v2 = vmul.f32 %v6592_v52, %v4280_v14  ;;  %v6593_v27 = vmov %v6592_v52  ;;  %v2053_v30 = vmul.u32 %v4686_v13, %v2037_v10  ;;  %s6601_s15 = sld [smem:[#allocation20_spill]] }
 0x268   :  { %6591 = sst [smem:[#allocation76_spill]] %s4830_s20  ;;  %v4853_v16 = vmul.f32 %v6593_v27, %v4284_v22  ;;  %vm2055_vm6 = vc.u32 %v4768_v58, %v4722_v24  ;;  %v1762_v45 = vsel %vm492_vm7, %v4650_v17, %v4652_v48  ;;  %v1763_v27 = vsel %vm492_vm7, %v4652_v48, %v4650_v17 }
 0x269   :  { %v6594_v52 = vstv %s4310_s2  ;;  %v2057_v13 = vsel %vm2055_vm6, %v2056_v42, %v4723_v44  ;;  %v4881_v10 = vsel %vm3301_vm8, %v1762_v45, %v1769_v54  ;;  %v4885_v26 = vsel %vm3305_vm9, %v1763_v27, %v1768_v8  ;;  %s4904_s2 = sld [smem:[#allocation6 + $0x7a]]  ;;  %s4966_s20 = sld [smem:[#allocation6 + $0x83]] }
 0x26a   :  { %1688 = vrot.lane.b32.xlu1 %v4626_v29, %s6513_s25  ;;  %1686 = vrot.lane.b32.xlu0 %v4617_v46, %s6513_s25  ;;  %v4874_v31 = vmul.f32 %v6594_v52, %v4280_v14  ;;  %v6595_v17 = vmov %v6594_v52  ;;  %vm2112_vm7 = vcmp.gt.s32.totalorder %v2111_v62, 0  ;;  %v1776_v54 = vsel %vm508_vm10, %v4754_v3, %v4756_v21 }
 0x26b   :  { %v1779_v25 = vpop.permute.xlu0 %1778  ;;  %v1781_v5 = vpop.permute.xlu1 %1780  ;;  %v4890_v48 = vmul.f32 %v6595_v17, %v4284_v22  ;;  %v6598_v45 = vstv %s4339_s0  ;;  %s6607_s0 = sld [smem:[#allocation22_spill]]  ;;  %vm2000_vm5 = vcmp.lt.s32.totalorder %v4308_v33, 0 }
 0x26c   :  { %v1782_v14 = vsel %vm515_vm11, %v1779_v25, %v1781_v5  ;;  %v1783_v18 = vsel %vm515_vm11, %v1781_v5, %v1779_v25  ;;  %v2058_v5 = vadd.s32 %v2057_v13, %v2053_v30  ;;  %v1777_v25 = vsel %vm508_vm10, %v4756_v21, %v4754_v3 }
 0x26d   :  { %v4926_v27 = vmul.f32 %v6598_v45, %v4428_v37  ;;  %v2113_v30 = vsel %vm2112_vm7, %v2111_v62, 0  ;;  %v4933_v52 = vsel %vm3331_vm12, %v1777_v25, %v1782_v14  ;;  %v4937_v13 = vsel %vm3335_vm13, %v1776_v54, %v1783_v18 }
 0x26e   :  { %1736 = vrot.lane.b32.xlu1 %v4680_v23, %s6513_s25  ;;  %1734 = vrot.lane.b32.xlu0 %v4670_v32, %s6513_s25  ;;  %v6600_v21 = vmov %v6598_v45  ;;  %v6606_v62 = vmov %v6604_v56  ;;  %v6609_v18 = vstv %s4353_s10  ;;  %v2059_v25 = vadd.s32 536870912, %v2058_v5  ;;  %s6629_s10 = sld [smem:[#allocation28_spill]] }
 0x26f   :  { %6596 = sst [smem:[#allocation77_spill]] %s4904_s2  ;;  %6599 = vst [vmem:[#allocation59_spill] sm:$0xff] %v4926_v27  ;;  %v4943_v17 = vmul.f32 %v6600_v21, %v4432_v9  ;;  %v4959_v14 = vmul.f32 %v6606_v62, %v4432_v9  ;;  %v4964_v54 = vmul.f32 %v6609_v18, %v4428_v37  ;;  %v6613_v56 = vmov %v6609_v18  ;;  %s5026_s2 = sld [smem:[#allocation6 + $0x8a]] }
 0x270   :  { %6611 = sst [smem:[#allocation20_spill]] %s4966_s20  ;;  %v4975_v3 = vmul.f32 %v6613_v56, %v4432_v9  ;;  %v2115_v62 = vand.u32 31, %v2113_v30  ;;  %v6615_v42 = vstv %s6601_s15  ;;  %v4988_v44 = vshrl.u32 %v2059_v25, 30  ;;  %s5019_s15 = sld [smem:[#allocation6 + $0x89]] }
 0x271   :  { %6602 = vst [vmem:[#allocation61_spill] sm:$0xff] %v4943_v17  ;;  %6608 = vst [vmem:[#allocation50_spill] sm:$0xff] %v4959_v14  ;;  %v4981_v37 = vmul.f32 %v6615_v42, %v4496_v28  ;;  %v6617_v18 = vmov %v6615_v42  ;;  %v6619_v21 = vstv %s6603_s11  ;;  %v6623_v8 = vstv %s6607_s0  ;;  %s5017_s11 = sld [smem:[#allocation6 + $0x88]]  ;;  %s6632_s0 = sld [smem:[#allocation30_spill]] }
 0x272   :  { %1786 = vrot.lane.b32.xlu0 %v4881_v10, %s6512_s1  ;;  %1788 = vrot.lane.b32.xlu1 %v4885_v26, %s6512_s1  ;;  %6610 = vst [vmem:[#allocation14_spill] sm:$0xff] %v4964_v54  ;;  %6614 = vst [vmem:[#allocation15_spill] sm:$0xff] %v4975_v3  ;;  %v4986_v22 = vmul.f32 %v6617_v18, %v4500_v6  ;;  %v4993_v45 = vmul.f32 %v6619_v21, %v4496_v28  ;;  %v6621_v9 = vmov %v6619_v21  ;;  %s5348_s20 = sld [smem:[#allocation6 + $0xb0]] }
 0x273   :  { %6616 = vst [vmem:[#allocation16_spill] sm:$0xff] %v4981_v37  ;;  %v4998_v56 = vmul.f32 %v6621_v9, %v4500_v6  ;;  %v5003_v42 = vmul.f32 %v6623_v8, %v4496_v28  ;;  %v6626_v25 = vmov %v6623_v8  ;;  %v2061_v28 = vshll.u32 %v4988_v44, 30 }
 0x274   :  { %6618 = vst [vmem:[#allocation17_spill] sm:$0xff] %v4986_v22  ;;  %6620 = vst [vmem:[#allocation79_spill] sm:$0xff] %v4993_v45  ;;  %v5013_v21 = vmul.f32 %v6626_v25, %v4500_v6  ;;  %v2116_v6 = vsub.s32 32, %v2115_v62  ;;  %v6643_v45 = vstv %s6629_s10  ;;  %s6655_s10 = sld [smem:[#allocation32_spill]]  ;;  %v2130_v22 = vshll.u32 %v6555_v41, %v2115_v62 }
 0x275   :  { %6622 = vst [vmem:[#allocation80_spill] sm:$0xff] %v4998_v56  ;;  %6624 = vst [vmem:[#allocation81_spill] sm:$0xff] %v5003_v42  ;;  %6633 = sst [smem:[#allocation24_spill]] %s5026_s2  ;;  %v6638_v42 = vstv %s6628_s5  ;;  %s5082_s5 = sld [smem:[#allocation6 + $0xa1]]  ;;  %v6742_v3 = vstv %s4619_s3  ;;  %v6765_v17 = vmov %v6764_v55 }
 0x276   :  { %1836 = vrot.lane.b32.xlu1 %v4937_v13, %s6512_s1  ;;  %1834 = vrot.lane.b32.xlu0 %v4933_v52, %s6512_s1  ;;  %s6625_s1 = sld [smem:[#allocation23_spill]]  ;;  %6627 = vst [vmem:[#allocation82_spill] sm:$0xff] %v5013_v21  ;;  %v5044_v8 = vmul.f32 %v6638_v42, %v4617_v46  ;;  %v6641_v25 = vmov %v6638_v42  ;;  %v2131_v37 = vshrl.u32 %v6565_v59, %v2116_v6  ;;  %s5456_s3 = sld [smem:[#allocation6 + $0xb9]] }
 0x277   :  { %6630 = sst [smem:[#allocation22_spill]] %s5017_s11  ;;  %v5049_v56 = vmul.f32 %v6641_v25, %v4626_v29  ;;  %v6648_v25 = vstv %s6632_s0  ;;  %s5140_s0 = sld [smem:[#allocation6 + $0x95]] }
 0x278   :  { %6631 = sst [smem:[#allocation23_spill]] %s5019_s15  ;;  %6640 = vst [vmem:[#allocation85_spill] sm:$0xff] %v5044_v8  ;;  %v2125_v8 = vshrl.u32 %v6554_v19, %v2116_v6  ;;  %s6670_s15 = sld [smem:[#allocation35_spill]] }
 0x279   :  { %6642 = vst [vmem:[#allocation86_spill] sm:$0xff] %v5049_v56  ;;  %v2124_v56 = vshll.u32 %v6560_v47, %v2115_v62  ;;  %s5151_s2 = sld [smem:[#allocation6 + $0x9b]]  ;;  %s5156_s11 = sld [smem:[#allocation6 + $0x9c]] }
 0x27a   :  { %1938 = vrot.lane.b32.xlu1 %v4189_v35, %s6513_s25  ;;  %1936 = vrot.lane.b32.xlu0 %v4187_v12, %s6513_s25  ;;  %v5038_v35 = vsub.s32 %v2058_v5, %v2061_v28  ;;  %v6645_v28 = vmov %v6643_v45  ;;  %v5072_v12 = vmul.f32 %v6648_v25, %v4670_v32  ;;  %v2127_v5 = vshll.u32 %v6554_v19, %v2115_v62 }
 0x27b   :  { %v5065_v42 = vmul.f32 %v6645_v28, %v4626_v29  ;;  %6652 = sst [smem:[#allocation30_spill]] %s5082_s5  ;;  %v6653_v28 = vstv %s6639_s6  ;;  %v6659_v7 = vstv %s6655_s10  ;;  %s5134_s6 = sld [smem:[#allocation6 + $0x94]] }
 0x27c   :  { %v6634_v9 = vstv %s6625_s1  ;;  %s5067_s1 = sld [smem:[#allocation6 + $0xa0]]  ;;  %6649 = vst [vmem:[#allocation89_spill] sm:$0xff] %v5072_v12  ;;  %v2118_v12 = vshll.u32 %v6558_v40, %v2115_v62  ;;  %s5142_s10 = sld [smem:[#allocation6 + $0x96]] }
 0x27d   :  { %v5031_v18 = vmul.f32 %v6634_v9, %v4617_v46  ;;  %v6636_v11 = vmov %v6634_v9  ;;  %v5054_v9 = vmul.f32 %v6643_v45, %v4617_v46  ;;  %6646 = vst [vmem:[#allocation88_spill] sm:$0xff] %v5065_v42  ;;  %v6650_v46 = vmov %v6648_v25  ;;  %6665 = sst [smem:[#allocation95_spill]] %s5140_s0  ;;  %s5149_s5 = sld [smem:[#allocation6 + $0x9a]] }
 0x27e   :  { %v5036_v21 = vmul.f32 %v6636_v11, %v4626_v29  ;;  %1914 = vrot.lane.b32.xlu1 %v4885_v26, %s6513_s25  ;;  %1912 = vrot.lane.b32.xlu0 %v4881_v10, %s6513_s25  ;;  %v5077_v45 = vmul.f32 %v6650_v46, %v4680_v23  ;;  %v2128_v29 = vshrl.u32 %v6555_v41, %v2116_v6  ;;  %v5089_v25 = vshrl.u32 %v2113_v30, 5  ;;  %s5312_s0 = sld [smem:[#allocation6 + $0xb4]] }
 0x27f   :  { %6635 = vst [vmem:[#allocation83_spill] sm:$0xff] %v5031_v18  ;;  %6644 = vst [vmem:[#allocation87_spill] sm:$0xff] %v5054_v9  ;;  %v2064_v9 = vsub.s32 0, %v5038_v35  ;;  %v5087_v11 = vmul.f32 %v6653_v28, %v4670_v32  ;;  %v2119_v46 = vshrl.u32 %v6559_v43, %v2116_v6  ;;  %v2122_v42 = vshrl.u32 %v6560_v47, %v2116_v6  ;;  %6671 = sst [smem:[#allocation35_spill]] %s5156_s11  ;;  %s6693_s11 = sld [smem:[#allocation36_spill]] }
 0x280   :  { %6637 = vst [vmem:[#allocation84_spill] sm:$0xff] %v5036_v21  ;;  %6651 = vst [vmem:[#allocation90_spill] sm:$0xff] %v5077_v45  ;;  %v2121_v45 = vshll.u32 %v6559_v43, %v2115_v62  ;;  %v6658_v47 = vand.u32 2147483647, %v4596_v53  ;;  %v2129_v19 = vor.u32 %v2128_v29, %v2127_v5  ;;  %v5117_v30 = vmul.f32 %v6659_v7, %v4670_v32 }
 0x281   :  { %6654 = vst [vmem:[#allocation91_spill] sm:$0xff] %v5087_v11  ;;  %v6656_v11 = vmov %v6653_v28  ;;  %v2880_v43 = vmin.u32 %v2064_v9, %v5038_v35  ;;  %vm2136_vm8 = vcmp.lt.s32.totalorder %v5089_v25, 4  ;;  %v6662_v9 = vmov %v6659_v7  ;;  %6664 = sst [smem:[#allocation32_spill]] %s5134_s6  ;;  %s6718_s6 = sld [smem:[#allocation26_spill]] }
 0x282   :  { %6647 = sst [smem:[#allocation28_spill]] %s5067_s1  ;;  %1962 = vrot.lane.b32.xlu1 %v4937_v13, %s6513_s25  ;;  %1960 = vrot.lane.b32.xlu0 %v4933_v52, %s6513_s25  ;;  %v5106_v21 = vmul.f32 %v6656_v11, %v4680_v23  ;;  %v2108_v18 = vand.u32 8388607, %v6658_v47  ;;  %6660 = vst [vmem:[#allocation93_spill] sm:$0xff] %v5117_v30  ;;  %s5120_s25 = sld [smem:[#allocation6 + $0xa2]]  ;;  %v5125_v11 = vmul.f32 %v6662_v9, %v4680_v23  ;;  %vm2133_vm9 = vcmp.lt.s32.totalorder %v5089_v25, 1 }
 0x283   :  { %v2066_v28 = vclz %v2880_v43  ;;  %v2120_v5 = vor.u32 %v2119_v46, %v2118_v12  ;;  %v2123_v29 = vor.u32 %v2122_v42, %v2121_v45  ;;  %v2126_v41 = vor.u32 %v2125_v8, %v2124_v56  ;;  %v1133_v12 = vpop.permute.xlu0 %1132  ;;  %v1135_v8 = vpop.permute.xlu1 %1134  ;;  %6666 = sst [smem:[#allocation96_spill]] %s5142_s10  ;;  %s6668_s1 = sld [smem:[#allocation33_spill]] }
 0x284   :  { %6657 = vst [vmem:[#allocation92_spill] sm:$0xff] %v5106_v21  ;;  %6663 = vst [vmem:[#allocation94_spill] sm:$0xff] %v5125_v11  ;;  %vm2135_vm10 = vcmp.lt.s32.totalorder %v5089_v25, 3  ;;  %v2109_v7 = vor.u32 8388608, %v2108_v18  ;;  %v2117_v32 = vshrl.u32 %v6558_v40, %v2116_v6  ;;  %v2132_v43 = vor.u32 %v2131_v37, %v2130_v22  ;;  %6667 = sst [smem:[#allocation97_spill]] %s5149_s5  ;;  %s5253_s5 = sld [smem:[#allocation6 + $0xa4]] }
 0x285   :  { %v2881_v59 = vadd.s32 4294967294, %v2066_v28  ;;  %v2142_v47 = vsel %vm2136_vm8, %v2129_v19, 920167782  ;;  %v2054_v23 = vadd.s32 %v4722_v24, %v4768_v58  ;;  %v2138_v56 = vsel %vm2136_vm8, %v2126_v41, 2102212464  ;;  %6669 = sst [smem:[#allocation33_spill]] %s5151_s2 }
 0x286   :  { %vm2134_vm12 = vcmp.lt.s32.totalorder %v5089_v25, 2  ;;  %v2141_v22 = vsel %vm2133_vm9, %v2120_v5, %v2123_v29  ;;  %v2143_v37 = vsel %vm2135_vm10, %v2126_v41, %v2142_v47  ;;  %v2145_v6 = vsel %vm2133_vm9, %v2123_v29, %v2126_v41  ;;  %s5239_s2 = sld [smem:[#allocation6 + $0xa3]]  ;;  %s6709_s10 = sld [smem:[#allocation29_spill]] }
 0x287   :  { %vm2882_vm11 = vcmp.lt.s32.totalorder %v2881_v59, 0  ;;  %v2137_v42 = vsel %vm2133_vm9, %v2117_v32, %v2120_v5  ;;  %v2139_v45 = vsel %vm2135_vm10, %v2123_v29, %v2138_v56  ;;  %v2146_v46 = vsel %vm2136_vm8, %v2132_v43, 1326507024 }
 0x288   :  { %6661 = sst [smem:[#allocation31_spill]] %s5120_s25  ;;  %v2069_v40 = vsel %vm2882_vm11, 0, %v2881_v59  ;;  %v2149_v28 = vshll.u32 %v2109_v7, 8  ;;  %v2144_v59 = vsel %vm2134_vm12, %v2141_v22, %v2143_v37  ;;  %v2147_v41 = vsel %vm2135_vm10, %v2129_v19, %v2146_v46  ;;  %v1259_v37 = vpop.permute.xlu0 %1258  ;;  %s5220_s25 = sld [smem:[#allocation6 + $0x9f]] }
 0x289   :  { %v2070_v58 = vsub.s32 32, %v2069_v40  ;;  %v2071_v24 = vshll.u32 %v5038_v35, %v2069_v40  ;;  %v2074_v18 = vsub.s32 4294967266, %v2069_v40  ;;  %v6673_v5 = vstv %s6668_s1  ;;  %s5218_s1 = sld [smem:[#allocation6 + $0x9e]] }
 0x28a   :  { %v5172_v32 = vmul.f32 %v6673_v5, %v4881_v10  ;;  %v6675_v29 = vmov %v6673_v5  ;;  %v2148_v43 = vsel %vm2134_vm12, %v2145_v6, %v2147_v41  ;;  %v2140_v22 = vsel %vm2134_vm12, %v2137_v42, %v2139_v45 }
 0x28b   :  { %v2072_v9 = vshrl.u32 %v2054_v23, %v2070_v58  ;;  %v2075_v35 = vadd.s32 127, %v2074_v18  ;;  %v5177_v7 = vmul.f32 %v6675_v29, %v4885_v26  ;;  %v6677_v23 = vstv %s6670_s15  ;;  %v1261_v58 = vpop.permute.xlu1 %1260  ;;  %s5215_s15 = sld [smem:[#allocation6 + $0x9d]] }
 0x28c   :  { %6674 = vst [vmem:[#allocation98_spill] sm:$0xff] %v5172_v32  ;;  %v5184_v56 = vmul.f32 %v6677_v23, %v4881_v10  ;;  %v5188_v18 = vmul.u32.u64.low %v2149_v28, %v2148_v43  ;;  %v5189_v46 = vmul.u32.u64.high %v2149_v28, %v2148_v43, %v5188_v18  ;;  %v6679_v41 = vmov %v6677_v23 }
 0x28d   :  { %6676 = vst [vmem:[#allocation99_spill] sm:$0xff] %v5177_v7  ;;  %v2073_v19 = vor.u32 %v2072_v9, %v2071_v24  ;;  %v2076_v40 = vshll.u32 %v2075_v35, 23  ;;  %v5191_v5 = vmul.u32.u64.low %v2149_v28, %v2144_v59  ;;  %v5192_v6 = vmul.u32.u64.high %v2149_v28, %v2144_v59, %v5191_v5 }
 0x28e   :  { %6678 = vst [vmem:[#allocation100_spill] sm:$0xff] %v5184_v56  ;;  %v5198_v29 = vmul.f32 %v6679_v41, %v4885_v26  ;;  %v6681_v24 = vstv %s6672_s18  ;;  %v2156_v38 = vmul.u32 %v2149_v28, %v2140_v22  ;;  %6687 = sst [smem:[#allocation105_spill]] %s5220_s25  ;;  %s6690_s18 = sld [smem:[#allocation34_spill]]  ;;  %v1137_v28 = vsel %vm524_vm14, %v1135_v8, %v1133_v12 }
 0x28f   :  { %v5203_v9 = vmul.f32 %v6681_v24, %v4881_v10  ;;  %v2077_v25 = vor.u32 4788187, %v2076_v40  ;;  %v2080_v42 = vcvt.s32.f32 %v2073_v19  ;;  %v6683_v23 = vmov %v6681_v24  ;;  %6686 = sst [smem:[#allocation104_spill]] %s5218_s1  ;;  %v1361_v10 = vpop.permute.xlu1 %1360  ;;  %s6723_s25 = sld [smem:[#allocation27_spill]] }
 0x290   :  { %6680 = vst [vmem:[#allocation101_spill] sm:$0xff] %v5198_v29  ;;  %v5211_v59 = vmul.f32 %v6683_v23, %v4885_v26  ;;  %v6688_v19 = vstv %s4577_s27  ;;  %vm2158_vm13 = vc.u32 %v5189_v46, %v5191_v5  ;;  %v2159_v26 = vadd.s32 1, %v5192_v6  ;;  %s6698_s27 = sld [smem:[#allocation37_spill]]  ;;  %s5346_s1 = sld [smem:[#allocation6 + $0xaf]] }
 0x291   :  { %6682 = vst [vmem:[#allocation102_spill] sm:$0xff] %v5203_v9  ;;  %6685 = sst [smem:[#allocation38_spill]] %s5215_s15  ;;  %v2078_v41 = vand.u32 2147483647, %v2077_v25  ;;  %v5225_v40 = vmul.f32 %v6688_v19, %v4933_v52  ;;  %v1136_v24 = vsel %vm524_vm14, %v1133_v12, %v1135_v8  ;;  %v6691_v22 = vmov %v6688_v19  ;;  %v1359_v19 = vpop.permute.xlu0 %1358  ;;  %s6717_s15 = sld [smem:[#allocation25_spill]] }
 0x292   :  { %6684 = vst [vmem:[#allocation103_spill] sm:$0xff] %v5211_v59  ;;  %v5237_v25 = vmul.f32 %v6691_v22, %v4937_v13  ;;  %v6694_v47 = vstv %s4592_s29  ;;  %v2160_v12 = vsel %vm2158_vm13, %v2159_v26, %v5192_v6  ;;  %v6699_v8 = vstv %s4594_s28  ;;  %s5278_s29 = sld [smem:[#allocation6 + $0xa5]]  ;;  %s5302_s28 = sld [smem:[#allocation6 + $0xb2]] }
 0x293   :  { %6689 = vst [vmem:[#allocation106_spill] sm:$0xff] %v5225_v40  ;;  %v2081_v23 = vmul.f32 %v2080_v42, %v2078_v41  ;;  %v5244_v18 = vmul.f32 %v6694_v47, %v4933_v52  ;;  %v6696_v43 = vmov %v6694_v47  ;;  %v5258_v42 = vmul.f32 %v6699_v8, %v4933_v52 }
 0x294   :  { %6692 = vst [vmem:[#allocation107_spill] sm:$0xff] %v5237_v25  ;;  %v5249_v35 = vmul.f32 %v6696_v43, %v4937_v13  ;;  %v6701_v47 = vand.u32 2147483647, %v4308_v33  ;;  %v2161_v22 = vadd.s32 %v2160_v12, %v2156_v38  ;;  %v6704_v45 = vstv %s6690_s18  ;;  %s5310_s18 = sld [smem:[#allocation6 + $0xb3]] }
 0x295   :  { %6695 = vst [vmem:[#allocation108_spill] sm:$0xff] %v5244_v18  ;;  %6700 = vst [vmem:[#allocation110_spill] sm:$0xff] %v5258_v42  ;;  %v2082_v43 = vxor.u32 2147483648, %v2081_v23  ;;  %v5268_v62 = vmul.f32 %v6704_v45, %v1137_v28  ;;  %v6705_v6 = vmov %v6704_v45  ;;  %v6706_v53 = vstv %s6693_s11  ;;  %s6713_s11 = sld [smem:[#allocation39_spill]] }
 0x296   :  { %6697 = vst [vmem:[#allocation109_spill] sm:$0xff] %v5249_v35  ;;  %vm5262_vm0 = vcmp.le.f32.partialorder %v6701_v47, 0.7853982  ;;  %v5272_v26 = vmul.f32 %v6705_v6, %v1136_v24  ;;  %v5276_v35 = vmul.f32 %v6706_v53, %v1137_v28  ;;  %v6707_v52 = vmov %v6699_v8 }
 0x297   :  { %v5283_v8 = vmul.f32 %v6707_v52, %v4937_v13  ;;  %v1262_v38 = vsel %vm679_vm15, %v1259_v37, %v1261_v58  ;;  %v2083_v45 = vsel %vm2000_vm5, %v2082_v43, %v2081_v23  ;;  %v2084_v12 = vsub.s32 4, %v4988_v44 }
 0x298   :  { %v2162_v47 = vadd.s32 536870912, %v2161_v22  ;;  %v6710_v6 = vmov %v6706_v53  ;;  %v6711_v25 = vstv %s6698_s27  ;;  %v2086_v23 = vsel %vm5262_vm0, %v4308_v33, %v2083_v45  ;;  %s6714_s27 = sld [smem:[#allocation40_spill]]  ;;  %v1485_v45 = vpop.permute.xlu0 %1484 }
 0x299   :  { %6708 = vst [vmem:[#allocation111_spill] sm:$0xff] %v5283_v8  ;;  %v5292_v53 = vmul.f32 %v6710_v6, %v1136_v24  ;;  %v5296_v42 = vmul.f32 %v6711_v25, %v1137_v28  ;;  %v6712_v13 = vmov %v6711_v25  ;;  %v1263_v43 = vsel %vm679_vm15, %v1261_v58, %v1259_v37  ;;  %v1487_v6 = vpop.permute.xlu1 %1486 }
 0x29a   :  { %v5300_v52 = vmul.f32 %v6712_v13, %v1136_v24  ;;  %2950 = vcosq.f32 %v2086_v23  ;;  %v5314_v24 = vshrl.u32 %v2162_v47, 30  ;;  %v6716_v28 = vstv %s6709_s10 }
 0x29b   :  { %v5318_v25 = vmul.f32 %v6716_v28, %v1262_v38  ;;  %2952 = vsinq.f32 %v2086_v23  ;;  %v1362_v13 = vsel %vm524_vm14, %v1359_v19, %v1361_v10  ;;  %v1363_v47 = vsel %vm524_vm14, %v1361_v10, %v1359_v19 }
 0x29c   :  { %6715 = vst [vmem:[#allocation112_spill] sm:$0xff] %v5314_v24  ;;  %v2085_v28 = vsel %vm2000_vm5, %v2084_v12, %v4988_v44  ;;  %v2164_v8 = vshll.u32 %v5314_v24, 30  ;;  %v6719_v18 = vstv %s6709_s10  ;;  %v6720_v58 = vstv %s6713_s11  ;;  %s6728_s10 = sld [smem:[#allocation62_spill]]  ;;  %v1585_v19 = vpop.permute.xlu0 %1584  ;;  %s5434_s11 = sld [smem:[#allocation6 + $0xb7]] }
 0x29d   :  { %v5332_v37 = vmul.f32 %v6719_v18, %v1263_v43  ;;  %v5336_v23 = vmul.f32 %v6720_v58, %v1262_v38  ;;  %v6721_v40 = vmov %v6720_v58  ;;  %v2087_v56 = vsel %vm5262_vm0, 0, %v2085_v28  ;;  %v1587_v18 = vpop.permute.xlu1 %1586 }
 0x29e   :  { %v5340_v59 = vmul.f32 %v6721_v40, %v1263_v43  ;;  %v6722_v9 = vstv %s6714_s27  ;;  %v5356_v12 = vsub.s32 %v2161_v22, %v2164_v8  ;;  %v6725_v40 = vstv %s6717_s15  ;;  %s5393_s15 = sld [smem:[#allocation6 + $0xb1]]  ;;  %s5437_s27 = sld [smem:[#allocation6 + $0xb8]] }
 0x29f   :  { %v5344_v29 = vmul.f32 %v6722_v9, %v1262_v38  ;;  %v6724_v44 = vmov %v6722_v9  ;;  %v5360_v58 = vmul.f32 %v6725_v40, %v1363_v47  ;;  %v6726_v9 = vmov %v6725_v40 }
 0x2a0   :  { %v5352_v10 = vmul.f32 %v6724_v44, %v1263_v43  ;;  %v5364_v38 = vmul.f32 %v6726_v9, %v1362_v13  ;;  %v6727_v7 = vstv %s6718_s6  ;;  %v1488_v44 = vsel %vm679_vm15, %v1485_v45, %v1487_v6  ;;  %s5395_s6 = sld [smem:[#allocation6 + $0xb5]] }
 0x2a1   :  { %v5371_v43 = vmul.f32 %v6727_v7, %v1363_v47  ;;  %v1489_v22 = vsel %vm679_vm15, %v1487_v6, %v1485_v45  ;;  %v2167_v8 = vsub.s32 0, %v5356_v12  ;;  %v6729_v40 = vmov %v6727_v7 }
 0x2a2   :  { %v5380_v9 = vmul.f32 %v6729_v40, %v1362_v13  ;;  %v6730_v41 = vstv %s6723_s25  ;;  %v2091_v6 = vand.u32 3, %v2087_v56  ;;  %v6733_v40 = vstv %s4602_s26  ;;  %s6747_s26 = sld [smem:[#allocation63_spill]] }
 0x2a3   :  { %v5384_v28 = vmul.f32 %v6730_v41, %v1363_v47  ;;  %v6731_v7 = vmov %v6730_v41  ;;  %v2884_v47 = vmin.u32 %v2167_v8, %v5356_v12  ;;  %v5400_v41 = vmul.f32 %v6733_v40, %v1488_v44  ;;  %s5432_s25 = sld [smem:[#allocation6 + $0xb6]] }
 0x2a4   :  { %v5388_v24 = vmul.f32 %v6731_v7, %v1362_v13  ;;  %v6735_v13 = vmov %v6733_v40  ;;  %v6737_v30 = vstv %s6728_s10  ;;  %v5414_v21 = vpop.eup %2950  ;;  %v5418_v54 = vmul.f32 %v6742_v3, %v1488_v44  ;;  %s6789_s10 = sld [smem:[#allocation71_spill]] }
 0x2a5   :  { %6734 = vst [vmem:[#allocation114_spill] sm:$0xff] %v5400_v41  ;;  %v5404_v7 = vmul.f32 %v6735_v13, %v1489_v22  ;;  %v5408_v32 = vmul.f32 %v6737_v30, %v1488_v44  ;;  %v6739_v11 = vmov %v6737_v30  ;;  %6741 = vst [vmem:[#allocation118_spill] sm:$0xff] %v5414_v21  ;;  %v1588_v8 = vsel %vm524_vm14, %v1585_v19, %v1587_v18  ;;  %v5424_v30 = vpop.eup %2952 }
 0x2a6   :  { %6732 = vst [vmem:[#allocation113_spill] sm:$0xff] %v5388_v24  ;;  %v5412_v45 = vmul.f32 %v6739_v11, %v1489_v22  ;;  %6743 = vst [vmem:[#allocation119_spill] sm:$0xff] %v5418_v54  ;;  %v1589_v40 = vsel %vm524_vm14, %v1587_v18, %v1585_v19  ;;  %v2169_v13 = vclz %v2884_v47  ;;  %v6745_v11 = vmov %v6742_v3 }
 0x2a7   :  { %6736 = vst [vmem:[#allocation115_spill] sm:$0xff] %v5404_v7  ;;  %6738 = vst [vmem:[#allocation116_spill] sm:$0xff] %v5408_v32  ;;  %vm2093_vm1 = vcmp.eq.s32.totalorder %v2091_v6, 0  ;;  %vm2096_vm3 = vcmp.eq.s32.totalorder %v2091_v6, 2  ;;  %v6748_v47 = vstv %s4621_s23  ;;  %v6752_v32 = vstv %s4630_s21  ;;  %s6768_s21 = sld [smem:[#allocation64_spill]]  ;;  %s6770_s23 = sld [smem:[#allocation66_spill]] }
 0x2a8   :  { %6740 = vst [vmem:[#allocation117_spill] sm:$0xff] %v5412_v45  ;;  %6744 = vst [vmem:[#allocation120_spill] sm:$0xff] %v5424_v30  ;;  %v5428_v45 = vmul.f32 %v6745_v11, %v1489_v22  ;;  %v2885_v19 = vadd.s32 4294967294, %v2169_v13  ;;  %v5442_v22 = vmul.f32 %v6748_v47, %v1589_v40  ;;  %v6750_v11 = vmov %v6748_v47 }
 0x2a9   :  { %v5446_v3 = vmul.f32 %v6750_v11, %v1588_v8  ;;  %v6754_v54 = vmov %v6752_v32  ;;  %v6756_v18 = vstv %s6747_s26  ;;  %v1117_v11 = vpop.permute.xlu1 %1116  ;;  %vm2092_vm6 = vcmp.lt.s32.totalorder %v2091_v6, 2  ;;  %s6794_s26 = sld [smem:[#allocation72_spill]] }
 0x2aa   :  { %6746 = vst [vmem:[#allocation121_spill] sm:$0xff] %v5428_v45  ;;  %6749 = vst [vmem:[#allocation122_spill] sm:$0xff] %v5442_v22  ;;  %v5450_v45 = vmul.f32 %v6752_v32, %v1589_v40  ;;  %v5454_v44 = vmul.f32 %v6754_v54, %v1588_v8  ;;  %v5460_v13 = vmul.f32 %v6756_v18, %v1589_v40  ;;  %v6758_v7 = vmov %v6756_v18  ;;  %v1115_v22 = vpop.permute.xlu0 %1114 }
 0x2ab   :  { %6751 = vst [vmem:[#allocation123_spill] sm:$0xff] %v5446_v3  ;;  %v5464_v47 = vmul.f32 %v6758_v7, %v1588_v8  ;;  %vm2886_vm7 = vcmp.lt.s32.totalorder %v2885_v19, 0  ;;  %v1118_v54 = vsel %vm524_vm14, %v1115_v22, %v1117_v11  ;;  %v1119_v32 = vsel %vm524_vm14, %v1117_v11, %v1115_v22 }
 0x2ac   :  { %6753 = vst [vmem:[#allocation124_spill] sm:$0xff] %v5450_v45  ;;  %6755 = vst [vmem:[#allocation125_spill] sm:$0xff] %v5454_v44  ;;  %v6760_v44 = vxor.u32 2147483648, %v5424_v30  ;;  %v6761_v8 = vxor.u32 2147483648, %v5414_v21  ;;  %v2172_v22 = vsel %vm2886_vm7, 0, %v2885_v19  ;;  %v6762_v11 = vstv %s4657_s13  ;;  %s6784_s13 = sld [smem:[#allocation68_spill]] }
 0x2ad   :  { %6757 = vst [vmem:[#allocation126_spill] sm:$0xff] %v5460_v13  ;;  %6759 = vst [vmem:[#allocation127_spill] sm:$0xff] %v5464_v47  ;;  %v2157_v13 = vadd.s32 %v5191_v5, %v5189_v46  ;;  %v1130_v45 = vmul.f32 %v6762_v11, %v1119_v32  ;;  %v6763_v3 = vmov %v6762_v11  ;;  %v2297_v14 = vadd.s32 3, %v2087_v56 }
 0x2ae   :  { %v2095_v7 = vsel %vm2093_vm1, %v5414_v21, %v6760_v44  ;;  %v2098_v40 = vsel %vm2096_vm3, %v6761_v8, %v5424_v30  ;;  %v1131_v41 = vmul.f32 %v6763_v3, %v1118_v54  ;;  %v2173_v44 = vsub.s32 32, %v2172_v22 }
 0x2af   :  { %v1122_v21 = vmul.f32 %v6764_v55, %v1119_v32  ;;  %v1123_v8 = vmul.f32 %v6765_v17, %v1118_v54  ;;  %vm2090_vm8 = vweird.f32 %v4308_v33  ;;  %v2099_v47 = vsel %vm2092_vm6, %v2095_v7, %v2098_v40 }
 0x2b0   :  { %v6766_v18 = vstv %s4655_s16  ;;  %v1154_v19 = vadd.f32 %v5296_v42, %v1130_v45  ;;  %v1155_v11 = vadd.f32 %v5300_v52, %v1131_v41  ;;  %v1973_v27 = vstv %s5432_s25  ;;  %v1157_v45 = vpop.permute.xlu0 %1156  ;;  %v1159_v41 = vpop.permute.xlu1 %1158  ;;  %s6777_s16 = sld [smem:[#allocation67_spill]] }
 0x2b1   :  { %v1126_v30 = vmul.f32 %v6766_v18, %v1119_v32  ;;  %v6767_v46 = vmov %v6766_v18  ;;  %v1979_v3 = vstv %s5434_s11  ;;  %v2177_v56 = vsub.s32 4294967266, %v2172_v22 }
 0x2b2   :  { %v1127_v5 = vmul.f32 %v6767_v46, %v1118_v54  ;;  %v2174_v17 = vshll.u32 %v5356_v12, %v2172_v22  ;;  %v2175_v6 = vshrl.u32 %v2157_v13, %v2173_v44  ;;  %v5503_v32 = vand.u32 3, %v2297_v14 }
 0x2b3   :  { %v1142_v42 = vadd.f32 %v5268_v62, %v1122_v21  ;;  %v1143_v52 = vadd.f32 %v5272_v26, %v1123_v8  ;;  %v5509_v54 = vsel %vm2090_vm8, nan, %v2099_v47  ;;  %v5511_v7 = vadd.s32 127, %v2177_v56 }
 0x2b4   :  { %v1148_v12 = vadd.f32 %v5276_v35, %v1126_v30  ;;  %v1149_v13 = vadd.f32 %v5292_v53, %v1127_v5  ;;  %v1160_v14 = vsel %vm524_vm14, %v1157_v45, %v1159_v41  ;;  %v1161_v21 = vsel %vm524_vm14, %v1159_v41, %v1157_v45 }
 0x2b5   :  { %v6771_v62 = vstv %s6768_s21  ;;  %v6773_v22 = vstv %s6769_s17  ;;  %v6775_v46 = vstv %s6770_s23  ;;  %v5531_v30 = vor.u32 %v2175_v6, %v2174_v17  ;;  %s6795_s21 = sld [smem:[#allocation73_spill]]  ;;  %s6798_s17 = sld [smem:[#allocation74_spill]] }
 0x2b6   :  { %v1164_v26 = vmul.f32 %v6771_v62, %v1161_v21  ;;  %v6772_v40 = vmov %v6771_v62  ;;  %v1170_v44 = vmul.f32 %v6773_v22, %v1161_v21  ;;  %v6774_v47 = vmov %v6773_v22  ;;  %v1711_v62 = vpop.permute.xlu0 %1710  ;;  %s6799_s23 = sld [smem:[#allocation75_spill]] }
 0x2b7   :  { %v1165_v18 = vmul.f32 %v6772_v40, %v1160_v14  ;;  %v1171_v8 = vmul.f32 %v6774_v47, %v1160_v14  ;;  %v1176_v56 = vmul.f32 %v6775_v46, %v1161_v21  ;;  %v6776_v55 = vmov %v6775_v46  ;;  %v1713_v40 = vpop.permute.xlu1 %1712 }
 0x2b8   :  { %v1177_v35 = vmul.f32 %v6776_v55, %v1160_v14  ;;  %v2179_v53 = vshll.u32 %v5511_v7, 23  ;;  %v1166_v5 = vadd.f32 %v1164_v26, %v1142_v42  ;;  %v1172_v45 = vadd.f32 %v1170_v44, %v1148_v12 }
 0x2b9   :  { %v1167_v24 = vadd.f32 %v1165_v18, %v1143_v52  ;;  %v1173_v41 = vadd.f32 %v1171_v8, %v1149_v13  ;;  %v1178_v22 = vadd.f32 %v1176_v56, %v1154_v19  ;;  %v1714_v55 = vsel %vm679_vm15, %v1711_v62, %v1713_v40 }
 0x2ba   :  { %v1179_v21 = vadd.f32 %v1177_v35, %v1155_v11  ;;  %v1715_v17 = vsel %vm679_vm15, %v1713_v40, %v1711_v62  ;;  %v1184_v6 = vadd.f32 %v4778_v34, %v1166_v5  ;;  %v1190_v52 = vadd.f32 %v4788_v63, %v1172_v45 }
 0x2bb   :  { %v1185_v42 = vadd.f32 %v4783_v15, %v1167_v24  ;;  %v1191_v12 = vadd.f32 %v4797_v50, %v1173_v41  ;;  %v1196_v13 = vadd.f32 %v4802_v20, %v1178_v22  ;;  %v6778_v19 = vstv %s4708_s30  ;;  %v1235_v20 = vpop.permute.xlu0 %1234  ;;  %s6785_s30 = sld [smem:[#allocation69_spill]] }
 0x2bc   :  { %v1197_v14 = vadd.f32 %v4807_v51, %v1179_v21  ;;  %v5546_v11 = vmul.f32 %v6778_v19, %v1714_v55  ;;  %v6779_v26 = vmov %v6778_v19  ;;  %v6780_v44 = vstv %s4716_s19  ;;  %v1237_v51 = vpop.permute.xlu1 %1236  ;;  %s6786_s19 = sld [smem:[#allocation70_spill]] }
 0x2bd   :  { %v5550_v18 = vmul.f32 %v6779_v26, %v1715_v17  ;;  %v5554_v47 = vmul.f32 %v6780_v44, %v1714_v55  ;;  %v6781_v34 = vmov %v6780_v44  ;;  %v6782_v15 = vstv %s6777_s16  ;;  %s6804_s16 = sld [smem:[#allocation76_spill]] }
 0x2be   :  { %v5558_v8 = vmul.f32 %v6781_v34, %v1715_v17  ;;  %v5562_v63 = vmul.f32 %v6782_v15, %v1714_v55  ;;  %v6783_v50 = vmov %v6782_v15  ;;  %v1202_v46 = vadd.f32 %v4337_v0, %v1184_v6 }
 0x2bf   :  { %v5566_v24 = vmul.f32 %v6783_v50, %v1715_v17  ;;  %v1208_v56 = vadd.f32 %v4342_v36, %v1190_v52  ;;  %v1214_v35 = vadd.f32 %v4345_v4, %v1196_v13  ;;  %v1203_v5 = vadd.f32 %v4349_v39, %v1185_v42  ;;  %v1283_v6 = vpop.permute.xlu0 %1282 }
 0x2c0   :  { %v1209_v45 = vadd.f32 %v4357_v57, %v1191_v12  ;;  %v1215_v41 = vadd.f32 %v4360_v61, %v1197_v14  ;;  %v1238_v62 = vsel %vm679_vm15, %v1235_v20, %v1237_v51  ;;  %v1239_v0 = vsel %vm679_vm15, %v1237_v51, %v1235_v20  ;;  %v1285_v42 = vpop.permute.xlu1 %1284 }
 0x2c1   :  { %v1220_v36 = vadd.f32 %v4822_v60, %v1202_v46  ;;  %v1226_v4 = vadd.f32 %v4847_v2, %v1208_v56  ;;  %v1232_v40 = vadd.f32 %v4874_v31, %v1214_v35  ;;  %v1221_v39 = vadd.f32 %v4827_v49, %v1203_v5 }
 0x2c2   :  { %v1227_v57 = vadd.f32 %v4853_v16, %v1209_v45  ;;  %v1233_v22 = vadd.f32 %v4890_v48, %v1215_v41  ;;  %v6787_v61 = vstv %s6784_s13  ;;  %v6790_v52 = vstv %s6785_s30  ;;  %s6880_s13 = sld [smem:[#allocation30_spill]]  ;;  %s6881_s30 = sld [smem:[#allocation31_spill]] }
 0x2c3   :  { %v1242_v21 = vmul.f32 %v6787_v61, %v1238_v62  ;;  %v6788_v55 = vmov %v6787_v61  ;;  %v1248_v60 = vmul.f32 %v6790_v52, %v1238_v62  ;;  %v6791_v12 = vmov %v6790_v52  ;;  %v1335_v45 = vpop.permute.xlu0 %1334 }
 0x2c4   :  { %v1243_v17 = vmul.f32 %v6788_v55, %v1239_v0  ;;  %v1249_v2 = vmul.f32 %v6791_v12, %v1239_v0  ;;  %v6792_v13 = vstv %s6786_s19  ;;  %v1286_v48 = vsel %vm679_vm15, %v1283_v6, %v1285_v42  ;;  %v1337_v41 = vpop.permute.xlu1 %1336  ;;  %s6896_s19 = sld [smem:[#allocation32_spill]] }
 0x2c5   :  { %v1254_v31 = vmul.f32 %v6792_v13, %v1238_v62  ;;  %v6793_v14 = vmov %v6792_v13  ;;  %v1244_v19 = vadd.f32 %v1242_v21, %v1220_v36  ;;  %v1287_v26 = vsel %vm679_vm15, %v1285_v42, %v1283_v6 }
 0x2c6   :  { %v1255_v49 = vmul.f32 %v6793_v14, %v1239_v0  ;;  %v1245_v16 = vadd.f32 %v1243_v17, %v1221_v39  ;;  %v1250_v44 = vadd.f32 %v1248_v60, %v1226_v4  ;;  %v1251_v34 = vadd.f32 %v1249_v2, %v1227_v57 }
 0x2c7   :  { %v1256_v15 = vadd.f32 %v1254_v31, %v1232_v40  ;;  %v1268_v20 = vadd.f32 %v5318_v25, %v1244_v19  ;;  %v6796_v46 = vstv %s6789_s10  ;;  %v6802_v61 = vstv %s6795_s21  ;;  %v1383_v12 = vpop.permute.xlu0 %1382  ;;  %s6899_s10 = sld [smem:[#allocation95_spill]]  ;;  %s6911_s21 = sld [smem:[#allocation97_spill]] }
 0x2c8   :  { %v1257_v50 = vadd.f32 %v1255_v49, %v1233_v22  ;;  %v1269_v51 = vadd.f32 %v5332_v37, %v1245_v16  ;;  %v1290_v56 = vmul.f32 %v6796_v46, %v1286_v48  ;;  %v6797_v35 = vmov %v6796_v46  ;;  %v1385_v2 = vpop.permute.xlu1 %1384 }
 0x2c9   :  { %v1291_v5 = vmul.f32 %v6797_v35, %v1287_v26  ;;  %v1274_v62 = vadd.f32 %v5336_v23, %v1250_v44  ;;  %v1280_v0 = vadd.f32 %v5344_v29, %v1256_v15  ;;  %v1275_v36 = vadd.f32 %v5340_v59, %v1251_v34 }
 0x2ca   :  { %v1281_v4 = vadd.f32 %v5352_v10, %v1257_v50  ;;  %v1292_v40 = vadd.f32 %v1290_v56, %v1268_v20  ;;  %v6800_v37 = vstv %s6794_s26  ;;  %v1302_v21 = vmul.f32 %v6802_v61, %v1286_v48  ;;  %s6902_s26 = sld [smem:[#allocation96_spill]] }
 0x2cb   :  { %v1293_v25 = vadd.f32 %v1291_v5, %v1269_v51  ;;  %v1296_v39 = vmul.f32 %v6800_v37, %v1286_v48  ;;  %v6801_v57 = vmov %v6800_v37  ;;  %v6803_v55 = vmov %v6802_v61 }
 0x2cc   :  { %v1297_v22 = vmul.f32 %v6801_v57, %v1287_v26  ;;  %v1303_v17 = vmul.f32 %v6803_v55, %v1287_v26  ;;  %v1338_v29 = vsel %vm524_vm14, %v1335_v45, %v1337_v41  ;;  %v1339_v59 = vsel %vm524_vm14, %v1337_v41, %v1335_v45 }
 0x2cd   :  { %v1298_v23 = vadd.f32 %v1296_v39, %v1274_v62  ;;  %v6805_v6 = vstv %s6798_s17  ;;  %v1304_v13 = vadd.f32 %v1302_v21, %v1280_v0  ;;  %v6807_v14 = vstv %s6799_s23  ;;  %v1461_v62 = vpop.permute.xlu0 %1460  ;;  %v1463_v0 = vpop.permute.xlu1 %1462  ;;  %s6916_s17 = sld [smem:[#allocation33_spill]]  ;;  %s6917_s23 = sld [smem:[#allocation35_spill]] }
 0x2ce   :  { %v1299_v10 = vadd.f32 %v1297_v22, %v1275_v36  ;;  %v1342_v42 = vmul.f32 %v6805_v6, %v1339_v59  ;;  %v6806_v52 = vmov %v6805_v6  ;;  %v1305_v31 = vadd.f32 %v1303_v17, %v1281_v4  ;;  %v6813_v22 = vld [vmem:[#allocation113_spill] sm:$0xff] }
 0x2cf   :  { %v1343_v60 = vmul.f32 %v6806_v52, %v1338_v29  ;;  %v1348_v49 = vmul.f32 %v6807_v14, %v1339_v59  ;;  %v6808_v19 = vmov %v6807_v14  ;;  %v6809_v44 = vstv %s6804_s16  ;;  %v6820_v14 = vld [vmem:[#allocation61_spill] sm:$0xff]  ;;  %s6920_s16 = sld [smem:[#allocation38_spill]] }
 0x2d0   :  { %v1349_v16 = vmul.f32 %v6808_v19, %v1338_v29  ;;  %v1344_v48 = vadd.f32 %v1342_v42, %v1292_v40  ;;  %v1354_v34 = vmul.f32 %v6809_v44, %v1339_v59  ;;  %v6810_v15 = vmov %v6809_v44  ;;  %v6821_v19 = vld [vmem:[#allocation49_spill] sm:$0xff] }
 0x2d1   :  { %v1345_v26 = vadd.f32 %v1343_v60, %v1293_v25  ;;  %v1355_v50 = vmul.f32 %v6810_v15, %v1338_v29  ;;  %v1350_v20 = vadd.f32 %v1348_v49, %v1298_v23  ;;  %v1386_v46 = vsel %vm524_vm14, %v1383_v12, %v1385_v2  ;;  %v1509_v52 = vpop.permute.xlu0 %1508  ;;  %v1511_v60 = vpop.permute.xlu1 %1510 }
 0x2d2   :  { %v1351_v51 = vadd.f32 %v1349_v16, %v1299_v10  ;;  %v1387_v56 = vsel %vm524_vm14, %v1385_v2, %v1383_v12  ;;  %v1356_v35 = vadd.f32 %v1354_v34, %v1304_v13  ;;  %v1368_v45 = vadd.f32 %v5360_v58, %v1344_v48  ;;  %v6819_v13 = vld [vmem:[#allocation59_spill] sm:$0xff]  ;;  %v6822_v48 = vld [vmem:[#allocation50_spill] sm:$0xff] }
 0x2d3   :  { %v1357_v5 = vadd.f32 %v1355_v50, %v1305_v31  ;;  %v1369_v41 = vadd.f32 %v5364_v38, %v1345_v26  ;;  %v1374_v36 = vadd.f32 %v5371_v43, %v1350_v20  ;;  %v6811_v40 = vstv %s4856_s22  ;;  %s6818_s22 = sld [smem:[#allocation77_spill]]  ;;  %v6825_v20 = vld [vmem:[#allocation14_spill] sm:$0xff] }
 0x2d4   :  { %v1375_v4 = vadd.f32 %v5380_v9, %v1351_v51  ;;  %v1390_v25 = vmul.f32 %v6811_v40, %v1387_v56  ;;  %v6812_v37 = vmov %v6811_v40  ;;  %v1380_v57 = vadd.f32 %v5384_v28, %v1356_v35  ;;  %v6827_v35 = vld [vmem:[#allocation51_spill] sm:$0xff] }
 0x2d5   :  { %v1391_v39 = vmul.f32 %v6812_v37, %v1386_v46  ;;  %v1381_v61 = vadd.f32 %v6813_v22, %v1357_v5  ;;  %v6814_v21 = vstv %s4858_s7  ;;  %v6816_v59 = vstv %s4876_s9  ;;  %v1563_v22 = vpop.permute.xlu1 %1562  ;;  %s6855_s7 = sld [smem:[#allocation21_spill]]  ;;  %s6875_s9 = sld [smem:[#allocation28_spill]] }
 0x2d6   :  { %v1396_v55 = vmul.f32 %v6814_v21, %v1387_v56  ;;  %v6815_v17 = vmov %v6814_v21  ;;  %v1392_v29 = vadd.f32 %v1390_v25, %v1368_v45  ;;  %v1402_v43 = vmul.f32 %v6816_v59, %v1387_v56  ;;  %v6828_v45 = vld [vmem:[#allocation52_spill] sm:$0xff] }
 0x2d7   :  { %v1397_v58 = vmul.f32 %v6815_v17, %v1386_v46  ;;  %v1393_v38 = vadd.f32 %v1391_v39, %v1369_v41  ;;  %v6817_v23 = vmov %v6816_v59  ;;  %v1464_v42 = vsel %vm679_vm15, %v1461_v62, %v1463_v0 }
 0x2d8   :  { %v1403_v9 = vmul.f32 %v6817_v23, %v1386_v46  ;;  %v1398_v10 = vadd.f32 %v1396_v55, %v1374_v36  ;;  %v1465_v28 = vsel %vm679_vm15, %v1463_v0, %v1461_v62  ;;  %v1404_v12 = vadd.f32 %v1402_v43, %v1380_v57  ;;  %v6826_v46 = vld [vmem:[#allocation15_spill] sm:$0xff]  ;;  %v6829_v62 = vld [vmem:[#allocation54_spill] sm:$0xff]  ;;  %v6830_v36 = vld [vmem:[#allocation53_spill] sm:$0xff]  ;;  %v1561_v57 = vpop.permute.xlu0 %1560 }
 0x2d9   :  { %v1399_v6 = vadd.f32 %v1397_v58, %v1375_v4  ;;  %v1410_v31 = vadd.f32 %v6819_v13, %v1392_v29  ;;  %v1411_v49 = vadd.f32 %v6820_v14, %v1393_v38  ;;  %v6823_v44 = vstv %s4892_s24  ;;  %v6834_v55 = vld [vmem:[#allocation16_spill] sm:$0xff]  ;;  %v6836_v38 = vld [vmem:[#allocation17_spill] sm:$0xff]  ;;  %s6843_s24 = sld [smem:[#allocation78_spill]] }
 0x2da   :  { %v1405_v2 = vadd.f32 %v1403_v9, %v1381_v61  ;;  %v1416_v16 = vadd.f32 %v6821_v19, %v1398_v10  ;;  %v1468_v34 = vmul.f32 %v6823_v44, %v1464_v42  ;;  %v6824_v15 = vmov %v6823_v44  ;;  %v6833_v61 = vld [vmem:[#allocation55_spill] sm:$0xff]  ;;  %v6835_v58 = vld [vmem:[#allocation41_spill] sm:$0xff]  ;;  %v6837_v43 = vld [vmem:[#allocation79_spill] sm:$0xff] }
 0x2db   :  { %v1417_v26 = vadd.f32 %v6822_v48, %v1399_v6  ;;  %v1469_v50 = vmul.f32 %v6824_v15, %v1465_v28  ;;  %v1422_v51 = vadd.f32 %v6825_v20, %v1404_v12  ;;  %v1428_v5 = vadd.f32 %v6827_v35, %v1410_v31  ;;  %v6838_v9 = vld [vmem:[#allocation80_spill] sm:$0xff]  ;;  %v6841_v31 = vld [vmem:[#allocation81_spill] sm:$0xff] }
 0x2dc   :  { %v1423_v56 = vadd.f32 %v6826_v46, %v1405_v2  ;;  %v1429_v41 = vadd.f32 %v6828_v45, %v1411_v49  ;;  %v1434_v0 = vadd.f32 %v6829_v62, %v1416_v16  ;;  %v6831_v40 = vstv %s6818_s22  ;;  %v6842_v49 = vld [vmem:[#allocation82_spill] sm:$0xff]  ;;  %v1609_v20 = vpop.permute.xlu0 %1608  ;;  %s6921_s22 = sld [smem:[#allocation104_spill]] }
 0x2dd   :  { %v1435_v4 = vadd.f32 %v6830_v36, %v1417_v26  ;;  %v1474_v25 = vmul.f32 %v6831_v40, %v1464_v42  ;;  %v6832_v37 = vmov %v6831_v40  ;;  %v1440_v21 = vadd.f32 %v6833_v61, %v1422_v51 }
 0x2de   :  { %v1475_v39 = vmul.f32 %v6832_v37, %v1465_v28  ;;  %v1446_v17 = vadd.f32 %v6834_v55, %v1428_v5  ;;  %v1441_v29 = vadd.f32 %v6835_v58, %v1423_v56  ;;  %v1447_v59 = vadd.f32 %v6836_v38, %v1429_v41  ;;  %v6844_v56 = vld [vmem:[#allocation114_spill] sm:$0xff]  ;;  %v6846_v5 = vld [vmem:[#allocation116_spill] sm:$0xff]  ;;  %v6847_v41 = vld [vmem:[#allocation117_spill] sm:$0xff] }
 0x2df   :  { %v1452_v23 = vadd.f32 %v6837_v43, %v1434_v0  ;;  %v1453_v10 = vadd.f32 %v6838_v9, %v1435_v4  ;;  %v6839_v6 = vstv %s4906_s12  ;;  %v1458_v14 = vadd.f32 %v6841_v31, %v1440_v21  ;;  %s6854_s12 = sld [smem:[#allocation20_spill]] }
 0x2e0   :  { %v1480_v12 = vmul.f32 %v6839_v6, %v1464_v42  ;;  %v6840_v2 = vmov %v6839_v6  ;;  %v1459_v19 = vadd.f32 %v6842_v49, %v1441_v29  ;;  %v1470_v16 = vadd.f32 %v1468_v34, %v1446_v17  ;;  %v6845_v34 = vld [vmem:[#allocation115_spill] sm:$0xff] }
 0x2e1   :  { %v1481_v13 = vmul.f32 %v6840_v2, %v1465_v28  ;;  %v1471_v48 = vadd.f32 %v1469_v50, %v1447_v59  ;;  %v1476_v26 = vadd.f32 %v1474_v25, %v1452_v23  ;;  %v1477_v44 = vadd.f32 %v1475_v39, %v1453_v10  ;;  %v1611_v28 = vpop.permute.xlu1 %1610  ;;  %v6850_v25 = vld [vmem:[#allocation119_spill] sm:$0xff]  ;;  %v1811_v23 = vpop.permute.xlu0 %1810 }
 0x2e2   :  { %v1512_v15 = vsel %vm679_vm15, %v1509_v52, %v1511_v60  ;;  %v1513_v42 = vsel %vm679_vm15, %v1511_v60, %v1509_v52  ;;  %v1482_v51 = vadd.f32 %v1480_v12, %v1458_v14  ;;  %v1494_v35 = vadd.f32 %v6844_v56, %v1470_v16  ;;  %v6851_v60 = vld [vmem:[#allocation121_spill] sm:$0xff] }
 0x2e3   :  { %v1483_v46 = vadd.f32 %v1481_v13, %v1459_v19  ;;  %v1495_v50 = vadd.f32 %v6845_v34, %v1471_v48  ;;  %v1500_v45 = vadd.f32 %v6846_v5, %v1476_v26  ;;  %v1501_v62 = vadd.f32 %v6847_v41, %v1477_v44 }
 0x2e4   :  { %v6848_v0 = vstv %s4911_s8  ;;  %v1506_v52 = vadd.f32 %v6850_v25, %v1482_v51  ;;  %v6852_v39 = vstv %s6843_s24  ;;  %v6856_v29 = vstv %s4928_s4  ;;  %s6862_s8 = sld [smem:[#allocation22_spill]]  ;;  %s6866_s4 = sld [smem:[#allocation24_spill]] }
 0x2e5   :  { %v1516_v36 = vmul.f32 %v6848_v0, %v1512_v15  ;;  %v6849_v4 = vmov %v6848_v0  ;;  %v1507_v37 = vadd.f32 %v6851_v60, %v1483_v46  ;;  %v1522_v61 = vmul.f32 %v6852_v39, %v1512_v15  ;;  %v1813_v9 = vpop.permute.xlu1 %1812  ;;  %s6924_s24 = sld [smem:[#allocation105_spill]] }
 0x2e6   :  { %v1517_v40 = vmul.f32 %v6849_v4, %v1513_v42  ;;  %v6853_v21 = vmov %v6852_v39  ;;  %v1528_v38 = vmul.f32 %v6856_v29, %v1512_v15  ;;  %v6857_v59 = vmov %v6856_v29 }
 0x2e7   :  { %v1523_v55 = vmul.f32 %v6853_v21, %v1513_v42  ;;  %v1518_v17 = vadd.f32 %v1516_v36, %v1494_v35  ;;  %v1529_v43 = vmul.f32 %v6857_v59, %v1513_v42  ;;  %v1524_v10 = vadd.f32 %v1522_v61, %v1500_v45  ;;  %v6867_v36 = vld [vmem:[#allocation122_spill] sm:$0xff]  ;;  %v6871_v61 = vld [vmem:[#allocation124_spill] sm:$0xff] }
 0x2e8   :  { %v1519_v58 = vadd.f32 %v1517_v40, %v1495_v50  ;;  %v1564_v12 = vsel %vm524_vm14, %v1561_v57, %v1563_v22  ;;  %v1565_v2 = vsel %vm524_vm14, %v1563_v22, %v1561_v57  ;;  %v1530_v13 = vadd.f32 %v1528_v38, %v1506_v52  ;;  %v1687_v50 = vpop.permute.xlu0 %1686  ;;  %v6868_v40 = vld [vmem:[#allocation123_spill] sm:$0xff] }
 0x2e9   :  { %v1525_v6 = vadd.f32 %v1523_v55, %v1501_v62  ;;  %v1531_v31 = vadd.f32 %v1529_v43, %v1507_v37  ;;  %v6858_v14 = vstv %s4945_s14  ;;  %v6860_v48 = vstv %s6854_s12  ;;  %s6865_s14 = sld [smem:[#allocation23_spill]]  ;;  %v1689_v5 = vpop.permute.xlu1 %1688  ;;  %v6873_v55 = vld [vmem:[#allocation125_spill] sm:$0xff] }
 0x2ea   :  { %v1568_v49 = vmul.f32 %v6858_v14, %v1565_v2  ;;  %v6859_v19 = vmov %v6858_v14  ;;  %v1574_v26 = vmul.f32 %v6860_v48, %v1565_v2  ;;  %v6861_v44 = vmov %v6860_v48 }
 0x2eb   :  { %v1569_v16 = vmul.f32 %v6859_v19, %v1564_v12  ;;  %v1575_v15 = vmul.f32 %v6861_v44, %v1564_v12  ;;  %v6863_v42 = vstv %s6855_s7  ;;  %v1612_v57 = vsel %vm524_vm14, %v1609_v20, %v1611_v28 }
 0x2ec   :  { %v1580_v51 = vmul.f32 %v6863_v42, %v1565_v2  ;;  %v6864_v46 = vmov %v6863_v42  ;;  %v1570_v35 = vadd.f32 %v1568_v49, %v1518_v17  ;;  %v1613_v22 = vsel %vm524_vm14, %v1611_v28, %v1609_v20  ;;  %v6872_v28 = vld [vmem:[#allocation126_spill] sm:$0xff] }
 0x2ed   :  { %v1581_v56 = vmul.f32 %v6864_v46, %v1564_v12  ;;  %v1571_v34 = vadd.f32 %v1569_v16, %v1519_v58  ;;  %v1576_v45 = vadd.f32 %v1574_v26, %v1524_v10  ;;  %v1577_v41 = vadd.f32 %v1575_v15, %v1525_v6  ;;  %v6874_v58 = vld [vmem:[#allocation127_spill] sm:$0xff]  ;;  %v1735_v16 = vpop.permute.xlu0 %1734  ;;  %v1737_v48 = vpop.permute.xlu1 %1736  ;;  %v6882_v15 = vld [vmem:[#allocation83_spill] sm:$0xff] }
 0x2ee   :  { %v1582_v62 = vadd.f32 %v1580_v51, %v1530_v13  ;;  %v1594_v4 = vadd.f32 %v6867_v36, %v1570_v35  ;;  %v6869_v52 = vstv %s6862_s8  ;;  %v6878_v2 = vstv %s6866_s4  ;;  %v6883_v51 = vld [vmem:[#allocation84_spill] sm:$0xff] }
 0x2ef   :  { %v1583_v0 = vadd.f32 %v1581_v56, %v1531_v31  ;;  %v1595_v25 = vadd.f32 %v6868_v40, %v1571_v34  ;;  %v1616_v60 = vmul.f32 %v6869_v52, %v1613_v22  ;;  %v6870_v37 = vmov %v6869_v52 }
 0x2f0   :  { %v1617_v39 = vmul.f32 %v6870_v37, %v1612_v57  ;;  %v1600_v20 = vadd.f32 %v6871_v61, %v1576_v45  ;;  %v1606_v21 = vadd.f32 %v6872_v28, %v1582_v62  ;;  %v1601_v17 = vadd.f32 %v6873_v55, %v1577_v41  ;;  %v6886_v41 = vld [vmem:[#allocation85_spill] sm:$0xff] }
 0x2f1   :  { %v1607_v29 = vadd.f32 %v6874_v58, %v1583_v0  ;;  %v1618_v38 = vadd.f32 %v1616_v60, %v1594_v4  ;;  %v6876_v43 = vstv %s6865_s14  ;;  %v1628_v13 = vmul.f32 %v6878_v2, %v1613_v22  ;;  %v6891_v60 = vld [vmem:[#allocation88_spill] sm:$0xff] }
 0x2f2   :  { %v1619_v59 = vadd.f32 %v1617_v39, %v1595_v25  ;;  %v1622_v10 = vmul.f32 %v6876_v43, %v1613_v22  ;;  %v6877_v6 = vmov %v6876_v43  ;;  %v6879_v31 = vmov %v6878_v2  ;;  %v6890_v25 = vld [vmem:[#allocation87_spill] sm:$0xff] }
 0x2f3   :  { %v1623_v12 = vmul.f32 %v6877_v6, %v1612_v57  ;;  %v1629_v14 = vmul.f32 %v6879_v31, %v1612_v57  ;;  %v1814_v49 = vsel %vm524_vm14, %v1811_v23, %v1813_v9  ;;  %v1815_v19 = vsel %vm524_vm14, %v1813_v9, %v1811_v23  ;;  %v6887_v9 = vld [vmem:[#allocation86_spill] sm:$0xff] }
 0x2f4   :  { %v1624_v26 = vadd.f32 %v1622_v10, %v1600_v20  ;;  %v1636_v42 = vadd.f32 %v6882_v15, %v1618_v38  ;;  %v1637_v46 = vadd.f32 %v6883_v51, %v1619_v59  ;;  %v1630_v56 = vadd.f32 %v1628_v13, %v1606_v21  ;;  %v6894_v21 = vld [vmem:[#allocation42_spill] sm:$0xff]  ;;  %v6898_v59 = vld [vmem:[#allocation45_spill] sm:$0xff] }
 0x2f5   :  { %v1625_v44 = vadd.f32 %v1623_v12, %v1601_v17  ;;  %v1631_v35 = vadd.f32 %v1629_v14, %v1607_v29  ;;  %v6884_v34 = vstv %s6875_s9  ;;  %v6888_v0 = vstv %s6880_s13  ;;  %v6895_v17 = vld [vmem:[#allocation44_spill] sm:$0xff]  ;;  %v6897_v29 = vld [vmem:[#allocation43_spill] sm:$0xff]  ;;  %v6900_v10 = vld [vmem:[#allocation46_spill] sm:$0xff]  ;;  %v1787_v14 = vpop.permute.xlu0 %1786 }
 0x2f6   :  { %v5758_v57 = vmul.f32 %v6884_v34, %v1815_v19  ;;  %v6885_v22 = vmov %v6884_v34  ;;  %v1642_v23 = vadd.f32 %v6886_v41, %v1624_v26  ;;  %v5768_v36 = vmul.f32 %v6888_v0, %v1815_v19  ;;  %v6901_v12 = vld [vmem:[#allocation47_spill] sm:$0xff] }
 0x2f7   :  { %v5762_v45 = vmul.f32 %v6885_v22, %v1814_v49  ;;  %v1643_v62 = vadd.f32 %v6887_v9, %v1625_v44  ;;  %v6889_v4 = vmov %v6888_v0  ;;  %v1648_v52 = vadd.f32 %v6890_v25, %v1630_v56  ;;  %v6904_v44 = vld [vmem:[#allocation91_spill] sm:$0xff]  ;;  %v6908_v22 = vld [vmem:[#allocation94_spill] sm:$0xff] }
 0x2f8   :  { %v5772_v40 = vmul.f32 %v6889_v4, %v1814_v49  ;;  %v1649_v37 = vadd.f32 %v6891_v60, %v1631_v35  ;;  %v6892_v39 = vstv %s6881_s30  ;;  %v1654_v55 = vadd.f32 %v6894_v21, %v1636_v42  ;;  %v6905_v42 = vld [vmem:[#allocation90_spill] sm:$0xff]  ;;  %v6907_v35 = vld [vmem:[#allocation93_spill] sm:$0xff] }
 0x2f9   :  { %v5778_v61 = vmul.f32 %v6892_v39, %v1815_v19  ;;  %v6893_v20 = vmov %v6892_v39  ;;  %v1660_v58 = vadd.f32 %v6895_v17, %v1642_v23  ;;  %v1655_v38 = vadd.f32 %v6897_v29, %v1637_v46  ;;  %v6903_v19 = vld [vmem:[#allocation89_spill] sm:$0xff]  ;;  %v6906_v46 = vld [vmem:[#allocation92_spill] sm:$0xff] }
 0x2fa   :  { %v5782_v28 = vmul.f32 %v6893_v20, %v1814_v49  ;;  %v1661_v43 = vadd.f32 %v6898_v59, %v1643_v62  ;;  %v1666_v6 = vadd.f32 %v6900_v10, %v1648_v52  ;;  %v1667_v2 = vadd.f32 %v6901_v12, %v1649_v37  ;;  %v1789_v49 = vpop.permute.xlu1 %1788 }
 0x2fb   :  { %v1690_v13 = vsel %vm679_vm15, %v1687_v50, %v1689_v5  ;;  %v1691_v31 = vsel %vm679_vm15, %v1689_v5, %v1687_v50  ;;  %v1672_v26 = vadd.f32 %v6903_v19, %v1654_v55  ;;  %v1678_v15 = vadd.f32 %v6904_v44, %v1660_v58 }
 0x2fc   :  { %v1673_v51 = vadd.f32 %v6905_v42, %v1655_v38  ;;  %v1679_v56 = vadd.f32 %v6906_v46, %v1661_v43  ;;  %v1684_v34 = vadd.f32 %v6907_v35, %v1666_v6  ;;  %v1685_v41 = vadd.f32 %v6908_v22, %v1667_v2 }
 0x2fd   :  { %v6909_v23 = vstv %s6896_s19  ;;  %v6912_v50 = vstv %s6899_s10  ;;  %v6914_v52 = vstv %s6902_s26  ;;  %v1738_v55 = vsel %vm679_vm15, %v1735_v16, %v1737_v48 }
 0x2fe   :  { %v1694_v9 = vmul.f32 %v6909_v23, %v1690_v13  ;;  %v6910_v62 = vmov %v6909_v23  ;;  %v1700_v5 = vmul.f32 %v6912_v50, %v1690_v13  ;;  %v6913_v4 = vmov %v6912_v50  ;;  %v1837_v19 = vpop.permute.xlu1 %1836 }
 0x2ff   :  { %v1695_v0 = vmul.f32 %v6910_v62, %v1691_v31  ;;  %v1701_v25 = vmul.f32 %v6913_v4, %v1691_v31  ;;  %v1706_v60 = vmul.f32 %v6914_v52, %v1690_v13  ;;  %v6915_v37 = vmov %v6914_v52 }
 0x300   :  { %v1707_v39 = vmul.f32 %v6915_v37, %v1691_v31  ;;  %v1696_v20 = vadd.f32 %v1694_v9, %v1672_v26  ;;  %v1739_v17 = vsel %vm679_vm15, %v1737_v48, %v1735_v16  ;;  %v1702_v58 = vadd.f32 %v1700_v5, %v1678_v15  ;;  %v1835_v31 = vpop.permute.xlu0 %1834 }
 0x301   :  { %v1697_v21 = vadd.f32 %v1695_v0, %v1673_v51  ;;  %v1703_v29 = vadd.f32 %v1701_v25, %v1679_v56  ;;  %v1708_v38 = vadd.f32 %v1706_v60, %v1684_v34  ;;  %v6918_v6 = vstv %s6911_s21 }
 0x302   :  { %v1709_v59 = vadd.f32 %v1707_v39, %v1685_v41  ;;  %v1720_v43 = vadd.f32 %v5546_v11, %v1696_v20  ;;  %v1742_v12 = vmul.f32 %v6918_v6, %v1738_v55  ;;  %v6919_v2 = vmov %v6918_v6 }
 0x303   :  { %v1721_v10 = vadd.f32 %v5550_v18, %v1697_v21  ;;  %v1743_v13 = vmul.f32 %v6919_v2, %v1739_v17  ;;  %v1726_v16 = vadd.f32 %v5554_v47, %v1702_v58  ;;  %v1732_v48 = vadd.f32 %v5562_v63, %v1708_v38 }
 0x304   :  { %v1727_v26 = vadd.f32 %v5558_v8, %v1703_v29  ;;  %v1733_v44 = vadd.f32 %v5566_v24, %v1709_v59  ;;  %v1744_v11 = vadd.f32 %v1742_v12, %v1720_v43  ;;  %v6922_v15 = vstv %s6916_s17 }
 0x305   :  { %v1745_v18 = vadd.f32 %v1743_v13, %v1721_v10  ;;  %v1748_v42 = vmul.f32 %v6922_v15, %v1738_v55  ;;  %v6923_v51 = vmov %v6922_v15  ;;  %v6925_v56 = vstv %s6917_s23 }
 0x306   :  { %v1749_v46 = vmul.f32 %v6923_v51, %v1739_v17  ;;  %v1754_v35 = vmul.f32 %v6925_v56, %v1738_v55  ;;  %v6926_v34 = vmov %v6925_v56  ;;  %v1790_v63 = vsel %vm524_vm14, %v1787_v14, %v1789_v49  ;;  %v1939_v55 = vpop.permute.xlu1 %1938 }
 0x307   :  { %v1755_v47 = vmul.f32 %v6926_v34, %v1739_v17  ;;  %v1791_v8 = vsel %vm524_vm14, %v1789_v49, %v1787_v14  ;;  %v1750_v24 = vadd.f32 %v1748_v42, %v1726_v16  ;;  %v6927_v41 = vstv %s6920_s16  ;;  %v1937_v49 = vpop.permute.xlu0 %1936 }
 0x308   :  { %v1751_v22 = vadd.f32 %v1749_v46, %v1727_v26  ;;  %v1794_v23 = vmul.f32 %v6927_v41, %v1791_v8  ;;  %v6928_v9 = vmov %v6927_v41  ;;  %v1756_v0 = vadd.f32 %v1754_v35, %v1732_v48 }
 0x309   :  { %v1795_v62 = vmul.f32 %v6928_v9, %v1790_v63  ;;  %v1757_v50 = vadd.f32 %v1755_v47, %v1733_v44  ;;  %v6929_v5 = vstv %s6921_s22  ;;  %v6931_v39 = vstv %s6924_s24 }
 0x30a   :  { %v1800_v4 = vmul.f32 %v6929_v5, %v1791_v8  ;;  %v6930_v25 = vmov %v6929_v5  ;;  %v1796_v60 = vadd.f32 %v1794_v23, %v1744_v11  ;;  %v1806_v20 = vmul.f32 %v6931_v39, %v1791_v8  ;;  %v1915_v34 = vpop.permute.xlu1 %1914  ;;  %v6939_v8 = vld [vmem:[#allocation98_spill] sm:$0xff]  ;;  %v6941_v23 = vld [vmem:[#allocation100_spill] sm:$0xff] }
 0x30b   :  { %v1801_v52 = vmul.f32 %v6930_v25, %v1790_v63  ;;  %v1797_v37 = vadd.f32 %v1795_v62, %v1745_v18  ;;  %v6932_v21 = vmov %v6931_v39  ;;  %v1838_v29 = vsel %vm524_vm14, %v1835_v31, %v1837_v19  ;;  %v1913_v35 = vpop.permute.xlu0 %1912  ;;  %v6942_v62 = vld [vmem:[#allocation101_spill] sm:$0xff] }
 0x30c   :  { %v1807_v14 = vmul.f32 %v6932_v21, %v1790_v63  ;;  %v1802_v17 = vadd.f32 %v1800_v4, %v1750_v24  ;;  %v1839_v38 = vsel %vm524_vm14, %v1837_v19, %v1835_v31  ;;  %v1808_v59 = vadd.f32 %v1806_v20, %v1756_v0  ;;  %v6944_v4 = vld [vmem:[#allocation102_spill] sm:$0xff] }
 0x30d   :  { %v1803_v58 = vadd.f32 %v1801_v52, %v1751_v22  ;;  %v1820_v10 = vadd.f32 %v5758_v57, %v1796_v60  ;;  %v1821_v6 = vadd.f32 %v5762_v45, %v1797_v37  ;;  %v6933_v13 = vstv %s5239_s2  ;;  %v6940_v22 = vld [vmem:[#allocation99_spill] sm:$0xff]  ;;  %s3089_s2 = smov [#allocation7]  }
 0x30e   :  { %v1809_v43 = vadd.f32 %v1807_v14, %v1757_v50  ;;  %v1826_v12 = vadd.f32 %v5768_v36, %v1802_v17  ;;  %v1842_v16 = vmul.f32 %v6933_v13, %v1839_v38  ;;  %v6934_v48 = vmov %v6933_v13  ;;  %v6945_v52 = vld [vmem:[#allocation103_spill] sm:$0xff] }
 0x30f   :  { %v1827_v2 = vadd.f32 %v5772_v40, %v1803_v58  ;;  %v1843_v26 = vmul.f32 %v6934_v48, %v1838_v29  ;;  %v1832_v44 = vadd.f32 %v5778_v61, %v1808_v59  ;;  %v6935_v31 = vstv %s5253_s5  ;;  %v6950_v58 = vld [vmem:[#allocation48_spill] sm:$0xff]  ;;  %s2662_s5 = sshll.u32 %s3089_s2, 4  ;;  %s2663_s5 = int_to_ptr.vmem [resolvable:$true] %s2662_s5 }
 0x310   :  { %v1833_v11 = vadd.f32 %v5782_v28, %v1809_v43  ;;  %v1848_v19 = vmul.f32 %v6935_v31, %v1839_v38  ;;  %v6936_v18 = vmov %v6935_v31  ;;  %v1844_v42 = vadd.f32 %v1842_v16, %v1820_v10  ;;  %v6952_v43 = vld [vmem:[#allocation58_spill] sm:$0xff]  ;;  %v6955_v16 = vld [vmem:[#allocation57_spill] sm:$0xff]  ;;  %p3051_p0 = scmp.lt.s32.totalorder %s2663_s5, %s2663_s5 }
 0x311   :  { %v1849_v15 = vmul.f32 %v6936_v18, %v1838_v29  ;;  %v1845_v57 = vadd.f32 %v1843_v26, %v1821_v6  ;;  %v6937_v45 = vstv %s5278_s29  ;;  %v1940_v61 = vsel %vm679_vm15, %v1937_v49, %v1939_v55  ;;  %v6953_v6 = vld [vmem:[#allocation18_spill] sm:$0xff]  ;;  %v6956_v26 = vld [vmem:[#allocation106_spill] sm:$0xff] }
 0x312   :  { %v1854_v51 = vmul.f32 %v6937_v45, %v1839_v38  ;;  %v6938_v36 = vmov %v6937_v45  ;;  %v1850_v40 = vadd.f32 %v1848_v19, %v1826_v12  ;;  %v1941_v28 = vsel %vm679_vm15, %v1939_v55, %v1937_v49  ;;  %v6951_v38 = vld [vmem:[#allocation19_spill] sm:$0xff] }
 0x313   :  { %v1855_v46 = vmul.f32 %v6938_v36, %v1838_v29  ;;  %v1851_v56 = vadd.f32 %v1849_v15, %v1827_v2  ;;  %v1862_v24 = vadd.f32 %v6939_v8, %v1844_v42  ;;  %v1863_v41 = vadd.f32 %v6940_v22, %v1845_v57  ;;  %v6954_v2 = vld [vmem:[#allocation56_spill] sm:$0xff]  ;;  %v1961_v15 = vpop.permute.xlu0 %1960  ;;  %v1963_v42 = vpop.permute.xlu1 %1962 }
 0x314   :  { %v1856_v47 = vadd.f32 %v1854_v51, %v1832_v44  ;;  %v1868_v9 = vadd.f32 %v6941_v23, %v1850_v40  ;;  %v6943_v50 = vstv %s5302_s28  ;;  %2954 = vrcp.f32 %v5509_v54  ;;  %v6958_v57 = vld [vmem:[#allocation110_spill] sm:$0xff]  ;;  %v6959_v51 = vld [vmem:[#allocation107_spill] sm:$0xff] }
 0x315   :  { %v1857_v63 = vadd.f32 %v1855_v46, %v1833_v11  ;;  %v1869_v0 = vadd.f32 %v6942_v62, %v1851_v56  ;;  %v1944_v5 = vmul.f32 %v6943_v50, %v1940_v61  ;;  %v6946_v37 = vmov %v6943_v50  ;;  %v6957_v11 = vld [vmem:[#allocation108_spill] sm:$0xff]  ;;  %v6960_v46 = vld [vmem:[#allocation109_spill] sm:$0xff]  ;;  %v6961_v56 = vld [vmem:[#allocation111_spill] sm:$0xff] }
 0x316   :  { %v1874_v25 = vadd.f32 %v6944_v4, %v1856_v47  ;;  %v1945_v39 = vmul.f32 %v6946_v37, %v1941_v28  ;;  %v6947_v20 = vstv %s5310_s18  ;;  %v6949_v55 = vstv %s5312_s0  ;;  %s3046_s0 = scalar_lea.vmem %s2663_s5, 64 }
 0x317   :  { %v1875_v60 = vadd.f32 %v6945_v52, %v1857_v63  ;;  %v1950_v21 = vmul.f32 %v6947_v20, %v1940_v61  ;;  %v6948_v14 = vmov %v6947_v20  ;;  %v1956_v17 = vmul.f32 %v6949_v55, %v1940_v61  ;;  %p3047_p13 = scmp.ne.s32.totalorder %s2663_s5, %s3046_s0  ;;  %p3052_p1 = scmp.lt.s32.totalorder %s3046_s0, %s3046_s0 }
 0x318   :  { %v1951_v49 = vmul.f32 %v6948_v14, %v1941_v28  ;;  %v1880_v29 = vadd.f32 %v6950_v58, %v1862_v24  ;;  %v1886_v59 = vadd.f32 %v6951_v38, %v1868_v9  ;;  %v1892_v10 = vadd.f32 %v6952_v43, %v1874_v25 }
 0x319   :  { %v1881_v12 = vadd.f32 %v6953_v6, %v1863_v41  ;;  %v1887_v13 = vadd.f32 %v6954_v2, %v1869_v0  ;;  %v1893_v48 = vadd.f32 %v6955_v16, %v1875_v60  ;;  %v1916_v19 = vsel %vm679_vm15, %v1913_v35, %v1915_v34  ;;  %p3053_p2 = por %p3052_p1, %p3051_p0 }
 0x31a   :  { %v1898_v44 = vadd.f32 %v6956_v26, %v1880_v29  ;;  %v1904_v31 = vadd.f32 %v6957_v11, %v1886_v59  ;;  %v1917_v18 = vsel %vm679_vm15, %v1915_v34, %v1913_v35  ;;  %v1910_v45 = vadd.f32 %v6958_v57, %v1892_v10  ;;  %v6975_v57 = vld [vmem:[#allocation118_spill] sm:$0xff] }
 0x31b   :  { %v1899_v36 = vadd.f32 %v6959_v51, %v1881_v12  ;;  %v1905_v40 = vadd.f32 %v6960_v46, %v1887_v13  ;;  %v1911_v61 = vadd.f32 %v6961_v56, %v1893_v48  ;;  %vm2300_vm14 = vcmp.eq.s32.totalorder %v5503_v32, 0  ;;  %v6977_v56 = vld [vmem:[#allocation60_spill] sm:$0xff]  ;;  %p3054_p3 = pnand %p3053_p2, %p3047_p13 }
 0x31c   :  { %v6962_v47 = vstv %s5346_s1  ;;  %v6964_v22 = vstv %s5348_s20  ;;  %v6966_v23 = vstv %s5393_s15  ;;  %v1964_v50 = vsel %vm679_vm15, %v1961_v15, %v1963_v42  ;;  %s6077_s20 = sld [smem:[#allocation6 + $0xba]] }
 0x31d   :  { %v1920_v63 = vmul.f32 %v6962_v47, %v1916_v19  ;;  %v6963_v8 = vmov %v6962_v47  ;;  %v1926_v35 = vmul.f32 %v6964_v22, %v1916_v19  ;;  %v6965_v34 = vmov %v6964_v22 }
 0x31e   :  { %v1921_v24 = vmul.f32 %v6963_v8, %v1917_v18  ;;  %v1927_v41 = vmul.f32 %v6965_v34, %v1917_v18  ;;  %v1932_v9 = vmul.f32 %v6966_v23, %v1916_v19  ;;  %v6967_v62 = vmov %v6966_v23  ;;  %v2955_v59 = vpop.eup %2954 }
 0x31f   :  { %v1933_v0 = vmul.f32 %v6967_v62, %v1917_v18  ;;  %v1965_v4 = vsel %vm679_vm15, %v1963_v42, %v1961_v15  ;;  %v1922_v25 = vadd.f32 %v1920_v63, %v1898_v44  ;;  %v1928_v60 = vadd.f32 %v1926_v35, %v1904_v31 }
 0x320   :  { %v1923_v52 = vadd.f32 %v1921_v24, %v1899_v36  ;;  %v1929_v37 = vadd.f32 %v1927_v41, %v1905_v40  ;;  %v6968_v20 = vmov %v6949_v55  ;;  %v1934_v55 = vadd.f32 %v1932_v9, %v1910_v45 }
 0x321   :  { %v1957_v14 = vmul.f32 %v6968_v20, %v1941_v28  ;;  %v1935_v58 = vadd.f32 %v1933_v0, %v1911_v61  ;;  %v6969_v29 = vstv %s5395_s6  ;;  %v1946_v43 = vadd.f32 %v1944_v5, %v1922_v25 }
 0x322   :  { %v1968_v38 = vmul.f32 %v6969_v29, %v1964_v50  ;;  %v1952_v10 = vadd.f32 %v1950_v21, %v1928_v60  ;;  %v1947_v6 = vadd.f32 %v1945_v39, %v1923_v52  ;;  %v6970_v1 = vmov %v6969_v29 }
 0x323   :  { %v1969_v12 = vmul.f32 %v6970_v1, %v1965_v4  ;;  %v1958_v2 = vadd.f32 %v1956_v17, %v1934_v55  ;;  %v1953_v13 = vadd.f32 %v1951_v49, %v1929_v37  ;;  %v1959_v16 = vadd.f32 %v1957_v14, %v1935_v58 }
 0x324   :  { %v1974_v48 = vmul.f32 %v1973_v27, %v1964_v50  ;;  %v1970_v26 = vadd.f32 %v1968_v38, %v1946_v43  ;;  %v1975_v28 = vmul.f32 %v1973_v27, %v1965_v4  ;;  %v1980_v44 = vmul.f32 %v1979_v3, %v1964_v50 }
 0x325   :  { %v1981_v11 = vmul.f32 %v1979_v3, %v1965_v4  ;;  %v2180_v5 = vor.u32 4788187, %v2179_v53  ;;  %v2183_v39 = vcvt.s32.f32 %v5531_v30  ;;  %vm2303_vm15 = vcmp.eq.s32.totalorder %v5503_v32, 2  ;;  %v6973_v53 = vld [vmem:[#allocation120_spill] sm:$0xff] }
 0x326   :  { %v1976_v31 = vadd.f32 %v1974_v48, %v1952_v10  ;;  %v1971_v21 = vadd.f32 %v1969_v12, %v1947_v6  ;;  %v5944_v49 = vadd.f32 %v1980_v44, %v1958_v2  ;;  %v6971_v19 = vstv %s5437_s27 }
 0x327   :  { %v5946_v17 = vadd.f32 %v1981_v11, %v1959_v16  ;;  %v1986_v27 = vadd.f32 %v6971_v19, %v1970_v26  ;;  %v6972_v18 = vstv %s5456_s3  ;;  %v2181_v42 = vand.u32 2147483647, %v2180_v5 }
 0x328   :  { %v1990_v15 = vadd.f32 %v6972_v18, %v1976_v31  ;;  %vm2299_vm9 = vcmp.lt.s32.totalorder %v5503_v32, 2  ;;  %v1977_v3 = vadd.f32 %v1975_v28, %v1953_v13  ;;  %v6974_v30 = vxor.u32 2147483648, %v6973_v53  ;;  %v6982_v32 = vld [vmem:[#allocation112_spill] sm:$0xff] }
 0x329   :  { %v2420_v7 = vmul.f32 1.442695, %v1986_v27  ;;  %v6976_v51 = vxor.u32 2147483648, %v6975_v57  ;;  %v2424_v46 = vsub.f32 0.0, %v1986_v27  ;;  %vm2103_vm10 = vcmp.lt.s32.totalorder %v6977_v56, 0 }
 0x32a   :  { %v2302_v45 = vsel %vm2300_vm14, %v6975_v57, %v6974_v30  ;;  %v2508_v40 = vmul.f32 1.442695, %v1990_v15  ;;  %v6978_v61 = vmov %v6971_v19  ;;  %v2512_v63 = vsub.f32 0.0, %v1990_v15 }
 0x32b   :  { %v2305_v36 = vsel %vm2303_vm15, %v6976_v51, %v6973_v53  ;;  %v1987_v47 = vadd.f32 %v6978_v61, %v1971_v21  ;;  %2956 = vpow2.f32 %v2420_v7  ;;  %v2184_v8 = vmul.f32 %v2183_v39, %v2181_v42 }
 0x32c   :  { %v2426_v24 = vmul.f32 1.442695, %v2424_v46  ;;  %v6979_v22 = vand.u32 2147483647, %v6977_v56  ;;  %v2187_v34 = vsub.s32 4, %v6982_v32  ;;  %v2306_v41 = vsel %vm2299_vm9, %v2302_v45, %v2305_v36 }
 0x32d   :  { %v6983_v23 = vmov %v6972_v18  ;;  %2958 = vpow2.f32 %v2508_v40  ;;  %v2514_v62 = vmul.f32 1.442695, %v2512_v63  ;;  %v2185_v0 = vxor.u32 2147483648, %v2184_v8 }
 0x32e   :  { %vm5966_vm11 = vcmp.le.f32.partialorder %v6979_v22, 0.7853982  ;;  %v1991_v9 = vadd.f32 %v6983_v23, %v1977_v3  ;;  %2960 = vpow2.f32 %v2426_v24  ;;  %v2425_v50 = vsub.f32 0.0, %v1987_v47 }
 0x32f   :  { %v2186_v4 = vsel %vm2103_vm10, %v2185_v0, %v2184_v8  ;;  %v2307_v25 = vsel %vm2090_vm8, nan, %v2306_v41  ;;  %2962 = vpow2.f32 %v2514_v62  ;;  %v2188_v37 = vsel %vm2103_vm10, %v2187_v34, %v6982_v32 }
 0x330   :  { %v2189_v52 = vsel %vm5966_vm11, %v6977_v56, %v2186_v4  ;;  %v2513_v60 = vsub.f32 0.0, %v1991_v9  ;;  %v2422_v20 = vmul.f32 1.442695, %v1987_v47  ;;  %v2414_v14 = vmul.f32 %v2955_v59, %v2307_v25 }
 0x331   :  { %v2428_v55 = vmul.f32 1.442695, %v2425_v50  ;;  %2964 = vcosq.f32 %v2189_v52  ;;  %v2510_v58 = vmul.f32 1.442695, %v1991_v9  ;;  %v2190_v29 = vsel %vm5966_vm11, 0, %v2188_v37 }
 0x332   :  { %2966 = vsinq.f32 %v2189_v52  ;;  %v2516_v38 = vmul.f32 1.442695, %v2513_v60  ;;  %v2401_v43 = vadd.s32 3, %v2190_v29  ;;  %v2416_v10 = vmul.f32 %v5509_v54, %v5509_v54 }
 0x333   :  { %v2418_v6 = vmul.f32 %v2307_v25, %v2307_v25  ;;  %2968 = vpow2.f32 %v2422_v20  ;;  %v2194_v2 = vand.u32 3, %v2190_v29  ;;  %vm2193_vm6 = vweird.f32 %v6977_v56 }
 0x334   :  { %2970 = vpow2.f32 %v2428_v55  ;;  %v2402_v48 = vand.u32 3, %v2401_v43 }
 0x335   :  { %v2957_v33 = vpop.eup %2956  ;;  %2972 = vpow2.f32 %v2510_v58  ;;  %vm2196_vm12 = vcmp.eq.s32.totalorder %v2194_v2, 0  ;;  %vm2199_vm13 = vcmp.eq.s32.totalorder %v2194_v2, 2  ;;  %vm2195_vm1 = vcmp.lt.s32.totalorder %v2194_v2, 2 }
 0x336   :  { %v5987_v1 = vmul.f32 %v2957_v33, %v2414_v14  ;;  %2974 = vpow2.f32 %v2516_v38  ;;  %v2498_v28 = vmul.f32 %v2957_v33, %v2418_v6  ;;  %vm2407_vm5 = vcmp.eq.s32.totalorder %v2402_v48, 2 }
 0x337   :  { %v2959_v12 = vpop.eup %2958  ;;  %vm2404_vm0 = vcmp.eq.s32.totalorder %v2402_v48, 0  ;;  %vm2403_vm3 = vcmp.lt.s32.totalorder %v2402_v48, 2 }
 0x338   :  { %v2961_v59 = vpop.eup %2960  ;;  %v5990_v13 = vand.u32 2147483647, %v5987_v1  ;;  %v5992_v16 = vmul.f32 %v2959_v12, %v2414_v14  ;;  %v2588_v39 = vmul.f32 %v2959_v12, %v2418_v6  ;;  %vm2480_vm9 = vcmp.lt.f32.partialorder %v5987_v1, 0.0 }
 0x339   :  { %v2496_v26 = vmul.f32 %v2961_v59, %v2416_v10  ;;  %v2963_v44 = vpop.eup %2962 }
 0x33a   :  { %v2440_v54 = vadd.f32 1.0, %v5990_v13  ;;  %2976 = vrcp.f32 %v5990_v13  ;;  %v5997_v31 = vand.u32 2147483647, %v5992_v16  ;;  %v2586_v5 = vmul.f32 %v2963_v44, %v2416_v10 }
 0x33b   :  { %v2500_v11 = vadd.f32 %v2498_v28, %v2496_v26  ;;  %v2965_v21 = vpop.eup %2964  ;;  %v2895_v22 = vadd.f32 -1.0, %v5990_v13  ;;  %vm2436_vm7 = vcmp.gt.f32.partialorder %v5990_v13, 0.41421357  ;;  %vm2434_vm8 = vcmp.gt.f32.partialorder %v5990_v13, 2.4142137 }
 0x33c   :  { %2978 = vrcp.f32 %v2440_v54  ;;  %v2528_v19 = vadd.f32 1.0, %v5997_v31  ;;  %v2967_v27 = vpop.eup %2966  ;;  %v2200_v18 = vxor.u32 2147483648, %v2965_v21  ;;  %v2590_v15 = vadd.f32 %v2588_v39, %v2586_v5 }
 0x33d   :  { %2980 = vlog2.f32 %v2500_v11  ;;  %v2197_v42 = vxor.u32 2147483648, %v2967_v27  ;;  %v2969_v3 = vpop.eup %2968  ;;  %v2901_v62 = vadd.f32 -1.0, %v5997_v31  ;;  %vm2524_vm14 = vcmp.gt.f32.partialorder %v5997_v31, 0.41421357 }
 0x33e   :  { %2982 = vrcp.f32 %v5997_v31  ;;  %v2201_v7 = vsel %vm2199_vm13, %v2200_v18, %v2967_v27  ;;  %v2409_v53 = vsel %vm2407_vm5, %v2200_v18, %v2967_v27  ;;  %v2971_v30 = vpop.eup %2970  ;;  %vm2522_vm15 = vcmp.gt.f32.partialorder %v5997_v31, 2.4142137 }
 0x33f   :  { %2984 = vrcp.f32 %v2528_v19  ;;  %v2198_v57 = vsel %vm2196_vm12, %v2965_v21, %v2197_v42  ;;  %v2406_v45 = vsel %vm2404_vm0, %v2965_v21, %v2197_v42  ;;  %v2973_v51 = vpop.eup %2972  ;;  %vm2568_vm5 = vcmp.lt.f32.partialorder %v5992_v16, 0.0 }
 0x340   :  { %2986 = vlog2.f32 %v2590_v15  ;;  %v2202_v36 = vsel %vm2195_vm1, %v2198_v57, %v2201_v7  ;;  %v2410_v46 = vsel %vm2403_vm3, %v2406_v45, %v2409_v53  ;;  %v2975_v40 = vpop.eup %2974  ;;  %vm2622_vm0 = vcmask 1041408  }
 0x341   :  { %v2203_v61 = vsel %vm2193_vm6, nan, %v2202_v36  ;;  %v2411_v47 = vsel %vm2193_vm6, nan, %v2410_v46 }
 0x342   :  { %2988 = vrcp.f32 %v2203_v61  ;;  %v2417_v63 = vmul.f32 %v2203_v61, %v2203_v61  ;;  %v2419_v8 = vmul.f32 %v2411_v47, %v2411_v47 }
 0x344   :  { %v2977_v24 = vpop.eup %2976  ;;  %v2497_v35 = vmul.f32 %v2971_v30, %v2417_v63  ;;  %v2499_v32 = vmul.f32 %v2969_v3, %v2419_v8  ;;  %v2587_v34 = vmul.f32 %v2975_v40, %v2417_v63  ;;  %v2589_v41 = vmul.f32 %v2973_v51, %v2419_v8 }
 0x345   :  { %v2444_v52 = vsub.f32 0.0, %v2977_v24  ;;  %v3088_v24 = vmov 0.0  }
 0x346   :  { %v2979_v56 = vpop.eup %2978  ;;  %v2501_v50 = vadd.f32 %v2499_v32, %v2497_v35  ;;  %v2591_v25 = vadd.f32 %v2589_v41, %v2587_v34 }
 0x347   :  { %v2981_v23 = vpop.eup %2980  ;;  %v2448_v9 = vmul.f32 %v2979_v56, %v2895_v22  ;;  %v2454_v22 = vsel %vm2436_vm7, 0.7853982, %v3088_v24 }
 0x348   :  { %v2983_v0 = vpop.eup %2982  ;;  %v2503_v4 = vmul.f32 0.6931472, %v2981_v23  ;;  %2990 = vlog2.f32 %v2501_v50 }
 0x349   :  { %v2985_v60 = vpop.eup %2984  ;;  %v2450_v37 = vsel %vm2436_vm7, %v2448_v9, %v5990_v13  ;;  %v2532_v55 = vsub.f32 0.0, %v2983_v0  ;;  %2992 = vlog2.f32 %v2591_v25  ;;  %v2456_v9 = vsel %vm2434_vm8, 1.5707964, %v2454_v22 }
 0x34a   :  { %v2987_v20 = vpop.eup %2986  ;;  %v6013_v14 = vsel %vm2434_vm8, %v2444_v52, %v2450_v37  ;;  %v2536_v58 = vmul.f32 %v2985_v60, %v2901_v62  ;;  %v2506_v29 = vsub.f32 0.0, %v2503_v4  ;;  %v2542_v25 = vsel %vm2524_vm14, 0.7853982, %v3088_v24 }
 0x34b   :  { %v2593_v33 = vmul.f32 0.6931472, %v2987_v20  ;;  %v2458_v38 = vmul.f32 %v6013_v14, %v6013_v14 }
 0x34c   :  { %v2538_v43 = vsel %vm2524_vm14, %v2536_v58, %v5997_v31  ;;  %v2989_v59 = vpop.eup %2988 }
 0x34d   :  { %v2596_v10 = vsub.f32 0.0, %v2593_v33  ;;  %v2460_v6 = vmul.f32 0.080537446, %v2458_v38  ;;  %v6023_v12 = vsel %vm2522_vm15, %v2532_v55, %v2538_v43  ;;  %v2415_v28 = vmul.f32 %v2989_v59, %v2411_v47 }
 0x34e   :  { %v2546_v2 = vmul.f32 %v6023_v12, %v6023_v12  ;;  %v2544_v33 = vsel %vm2522_vm15, 1.5707964, %v2542_v25 }
 0x34f   :  { %v2598_v48 = vsub.f32 %v2506_v29, %v2596_v10  ;;  %v6027_v26 = vmax.f32 %v2506_v29, %v2596_v10  ;;  %v2897_v54 = vadd.f32 -0.13877685, %v2460_v6  ;;  %v6029_v5 = vmul.f32 %v2969_v3, %v2415_v28 }
 0x350   :  { %v2548_v44 = vmul.f32 0.080537446, %v2546_v2  ;;  %v6031_v21 = vmul.f32 %v2973_v51, %v2415_v28 }
 0x351   :  { %v2602_v11 = vand.u32 2147483647, %v2598_v48  ;;  %v2464_v39 = vmul.f32 %v2897_v54, %v2458_v38  ;;  %v6034_v18 = vand.u32 2147483647, %v6029_v5  ;;  %vm2481_vm1 = vcmp.lt.f32.partialorder %v6029_v5, 0.0 }
 0x352   :  { %v2903_v19 = vadd.f32 -0.13877685, %v2548_v44  ;;  %v2991_v42 = vpop.eup %2990  ;;  %v6037_v57 = vand.u32 2147483647, %v6031_v21  ;;  %vm2569_vm3 = vcmp.lt.f32.partialorder %v6031_v21, 0.0 }
 0x353   :  { %v2604_v27 = vsub.f32 0.0, %v2602_v11  ;;  %v2466_v15 = vadd.f32 0.19977711, %v2464_v39  ;;  %v2993_v7 = vpop.eup %2992  ;;  %v2505_v53 = vmul.f32 0.6931472, %v2991_v42  ;;  %2994 = vrcp.f32 %v6034_v18 }
 0x354   :  { %v2595_v45 = vmul.f32 0.6931472, %v2993_v7  ;;  %v2441_v3 = vadd.f32 1.0, %v6034_v18  ;;  %v2552_v46 = vmul.f32 %v2903_v19, %v2546_v2  ;;  %v2529_v47 = vadd.f32 1.0, %v6037_v57 }
 0x355   :  { %v2606_v30 = vmul.f32 1.442695, %v2604_v27  ;;  %v2507_v51 = vsub.f32 0.0, %v2505_v53  ;;  %v2468_v36 = vmul.f32 %v2466_v15, %v2458_v38  ;;  %v2896_v60 = vadd.f32 -1.0, %v6034_v18 }
 0x356   :  { %v2597_v40 = vsub.f32 0.0, %v2595_v45  ;;  %v2554_v35 = vadd.f32 0.19977711, %v2552_v46  ;;  %vm2437_vm10 = vcmp.gt.f32.partialorder %v6034_v18, 0.41421357 }
 0x357   :  { %2996 = vpow2.f32 %v2606_v30  ;;  %v2899_v61 = vadd.f32 -0.3333295, %v2468_v36  ;;  %vm2435_vm11 = vcmp.gt.f32.partialorder %v6034_v18, 2.4142137  ;;  %vm2525_vm12 = vcmp.gt.f32.partialorder %v6037_v57, 0.41421357 }
 0x358   :  { %2998 = vrcp.f32 %v2441_v3  ;;  %v2599_v63 = vsub.f32 %v2507_v51, %v2597_v40  ;;  %v6042_v8 = vmax.f32 %v2507_v51, %v2597_v40  ;;  %v2556_v41 = vmul.f32 %v2554_v35, %v2546_v2 }
 0x359   :  { %3000 = vrcp.f32 %v6037_v57  ;;  %v2472_v56 = vmul.f32 %v2899_v61, %v2458_v38  ;;  %vm2523_vm13 = vcmp.gt.f32.partialorder %v6037_v57, 2.4142137 }
 0x35a   :  { %3002 = vrcp.f32 %v2529_v47  ;;  %v2603_v32 = vand.u32 2147483647, %v2599_v63  ;;  %v2905_v0 = vadd.f32 -0.3333295, %v2556_v41 }
 0x35b   :  { %v2474_v34 = vmul.f32 %v2472_v56, %v6013_v14 }
 0x35c   :  { %v2605_v23 = vsub.f32 0.0, %v2603_v32  ;;  %v2560_v20 = vmul.f32 %v2905_v0, %v2546_v2  ;;  %v1993_v0 = vstv %s6077_s20 }
 0x35d   :  { %v2476_v62 = vadd.f32 %v2474_v34, %v2456_v9  ;;  %v2995_v50 = vpop.eup %2994 }
 0x35e   :  { %v2608_v4 = vmul.f32 1.442695, %v2605_v23  ;;  %v2562_v38 = vmul.f32 %v2560_v20, %v6023_v12  ;;  %v2445_v10 = vsub.f32 0.0, %v2995_v50  ;;  %v2455_v50 = vsel %vm2437_vm10, 0.7853982, %v3088_v24 }
 0x35f   :  { %v2478_v37 = vadd.f32 %v2476_v62, %v6013_v14  ;;  %v2902_v14 = vadd.f32 -1.0, %v6037_v57  ;;  %v1994_v20 = vadd.f32 %v1993_v0, %v5944_v49 }
 0x360   :  { %3004 = vpow2.f32 %v2608_v4  ;;  %v2564_v2 = vadd.f32 %v2562_v38, %v2544_v33 }
 0x361   :  { %v2997_v52 = vpop.eup %2996  ;;  %v2482_v29 = vsub.f32 0.0, %v2478_v37 }
 0x362   :  { %v2999_v55 = vpop.eup %2998  ;;  %v2610_v58 = vadd.f32 1.0, %v2997_v52  ;;  %v2566_v11 = vadd.f32 %v2564_v2, %v6023_v12 }
 0x363   :  { %v2449_v13 = vmul.f32 %v2999_v55, %v2896_v60  ;;  %v3001_v43 = vpop.eup %3000  ;;  %v2484_v59 = vsel %vm2480_vm9, %v2482_v29, %v2478_v37 }
 0x364   :  { %3006 = vlog2.f32 %v2610_v58  ;;  %v3003_v6 = vpop.eup %3002  ;;  %v2486_v48 = vmul.f32 2.0, %v2484_v59  ;;  %v2533_v44 = vsub.f32 0.0, %v3001_v43  ;;  %v2570_v42 = vsub.f32 0.0, %v2566_v11 }
 0x365   :  { %v2451_v1 = vsel %vm2437_vm10, %v2449_v13, %v6034_v18  ;;  %v2537_v28 = vmul.f32 %v3003_v6, %v2902_v14  ;;  %v2543_v13 = vsel %vm2525_vm12, 0.7853982, %v3088_v24 }
 0x366   :  { %v2453_v31 = vsel %vm2435_vm11, %v2445_v10, %v2451_v1  ;;  %v2488_v39 = vmul.f32 0.15915494, %v2486_v48  ;;  %v2572_v45 = vsel %vm2568_vm5, %v2570_v42, %v2566_v11  ;;  %v2545_v49 = vsel %vm2523_vm13, 1.5707964, %v2543_v13 }
 0x367   :  { %v2459_v54 = vmul.f32 %v2453_v31, %v2453_v31  ;;  %v2539_v19 = vsel %vm2525_vm12, %v2537_v28, %v6037_v57  ;;  %v2574_v51 = vmul.f32 2.0, %v2572_v45 }
 0x368   :  { %v2541_v15 = vsel %vm2523_vm13, %v2533_v44, %v2539_v19  ;;  %v2490_v7 = vfloor.f32 %v2488_v39 }
 0x369   :  { %v2461_v27 = vmul.f32 0.080537446, %v2459_v54  ;;  %v2547_v53 = vmul.f32 %v2541_v15, %v2541_v15  ;;  %v2576_v63 = vmul.f32 0.15915494, %v2574_v51 }
 0x36a   :  { %v3005_v3 = vpop.eup %3004  ;;  %v2492_v61 = vmul.f32 6.2831855, %v2490_v7 }
 0x36b   :  { %v2898_v30 = vadd.f32 -0.13877685, %v2461_v27  ;;  %v2549_v12 = vmul.f32 0.080537446, %v2547_v53  ;;  %v2611_v36 = vadd.f32 1.0, %v3005_v3  ;;  %v2578_v32 = vfloor.f32 %v2576_v63 }
 0x36c   :  { %v2494_v41 = vsub.f32 %v2486_v48, %v2492_v61  ;;  %v1995_v61 = vadd.f32 %v1993_v0, %v5946_v17 }
 0x36d   :  { %v2465_v46 = vmul.f32 %v2898_v30, %v2459_v54  ;;  %v2904_v47 = vadd.f32 -0.13877685, %v2549_v12  ;;  %3008 = vlog2.f32 %v2611_v36  ;;  %v2580_v9 = vmul.f32 6.2831855, %v2578_v32 }
 0x36e   :  { %v3007_v40 = vpop.eup %3006 }
 0x36f   :  { %v2613_v22 = vmul.f32 0.6931472, %v3007_v40  ;;  %v2467_v56 = vadd.f32 0.19977711, %v2465_v46  ;;  %v2553_v35 = vmul.f32 %v2904_v47, %v2547_v53  ;;  %v2582_v25 = vsub.f32 %v2574_v51, %v2580_v9 }
 0x371   :  { %v2616_v16 = vadd.f32 %v2613_v22, %v6027_v26  ;;  %v2469_v34 = vmul.f32 %v2467_v56, %v2459_v54  ;;  %v2555_v23 = vadd.f32 0.19977711, %v2553_v35  ;;  %v2584_v37 = vadd.f32 %v2582_v25, %v2494_v41 }
 0x372   :  { %v2457_v26 = vsel %vm2435_vm11, 1.5707964, %v2455_v50 }
 0x373   :  { %v2900_v62 = vadd.f32 -0.3333295, %v2469_v34  ;;  %v2557_v4 = vmul.f32 %v2555_v23, %v2547_v53  ;;  %v2907_v58 = vadd.f32 -0.6931472, %v2616_v16  ;;  %v2630_v33 = vmul.f32 0.5, %v2584_v37  ;;  %v6986_v23 = vld [vmem:[#allocation13_spill] sm:$0xff] }
 0x374   :  { %v3011_v34 = vld.sshfl [vmem:[#allocation2] sm:$0x33 pattern:$0x76325410] }
 0x375   :  { %v2473_v52 = vmul.f32 %v2900_v62, %v2459_v54  ;;  %v2906_v60 = vadd.f32 -0.3333295, %v2557_v4  ;;  %v2632_v6 = vadd.f32 %v2630_v33, %v1994_v20  ;;  %v2620_v2 = vsel %vm51_vm2, %v2907_v58, 0.0 }
 0x376   :  { %v2623_v44 = vsel %vm2622_vm0, %v2620_v2, 0.0 }
 0x377   :  { %v2475_v55 = vmul.f32 %v2473_v52, %v2453_v31  ;;  %v2561_v29 = vmul.f32 %v2906_v60, %v2547_v53  ;;  %v3009_v38 = vpop.eup %3008  ;;  %v2634_v51 = vmul.f32 0.15915494, %v2632_v6 }
 0x378   :  { %v2615_v10 = vmul.f32 0.6931472, %v3009_v38 }
 0x379   :  { %v2477_v43 = vadd.f32 %v2475_v55, %v2457_v26  ;;  %v2563_v14 = vmul.f32 %v2561_v29, %v2541_v15  ;;  %v2636_v40 = vfloor.f32 %v2634_v51 }
 0x37a   :  { %v2617_v18 = vadd.f32 %v2615_v10, %v6042_v8 }
 0x37b   :  { %v2479_v1 = vadd.f32 %v2477_v43, %v2453_v31  ;;  %v2565_v48 = vadd.f32 %v2563_v14, %v2545_v49  ;;  %v2638_v21 = vmul.f32 6.2831855, %v2636_v40 }
 0x37c   :  { %v2908_v24 = vadd.f32 -0.6931472, %v2617_v18 }
 0x37d   :  { %v2483_v28 = vsub.f32 0.0, %v2479_v1  ;;  %v2567_v54 = vadd.f32 %v2565_v48, %v2541_v15  ;;  %v2640_v35 = vsub.f32 %v2632_v6, %v2638_v21 }
 0x37e   :  { %v2621_v31 = vsel %vm52_vm4, %v2908_v24, 0.0 }
 0x37f   :  { %v2485_v11 = vsel %vm2481_vm1, %v2483_v28, %v2479_v1  ;;  %v2571_v57 = vsub.f32 0.0, %v2567_v54  ;;  %v2624_v27 = vsel %vm2622_vm0, %v2621_v31, 0.0  ;;  %v2642_v41 = vsel %vm51_vm2, %v2640_v35, %v3011_v34 }
 0x380   :  { %v2487_v19 = vmul.f32 2.0, %v2485_v11  ;;  %v2625_v8 = vadd.f32 %v2624_v27, %v2623_v44 }
 0x381   :  { %v2573_v7 = vsel %vm2569_vm3, %v2571_v57, %v2567_v54 }
 0x382   :  { %v2489_v42 = vmul.f32 0.15915494, %v2487_v19  ;;  %v2575_v53 = vmul.f32 2.0, %v2573_v7  ;;  %2626 = vadd.xlane.f32.xlu0 %v2625_v8 }
 0x384   :  { %v2491_v30 = vfloor.f32 %v2489_v42  ;;  %v2577_v45 = vmul.f32 0.15915494, %v2575_v53 }
 0x386   :  { %v2493_v3 = vmul.f32 6.2831855, %v2491_v30  ;;  %v2579_v5 = vfloor.f32 %v2577_v45 }
 0x388   :  { %v2495_v15 = vsub.f32 %v2487_v19, %v2493_v3  ;;  %v2581_v12 = vmul.f32 6.2831855, %v2579_v5 }
 0x38a   :  { %v2583_v36 = vsub.f32 %v2575_v53, %v2581_v12 }
 0x38c   :  { %v2585_v46 = vadd.f32 %v2583_v36, %v2495_v15 }
 0x38e   :  { %v2631_v47 = vmul.f32 0.5, %v2585_v46 }
 0x390   :  { %v2633_v63 = vadd.f32 %v2631_v47, %v1995_v61 }
 0x392   :  { %v2635_v22 = vmul.f32 0.15915494, %v2633_v63 }
 0x394   :  { %v2637_v56 = vfloor.f32 %v2635_v22 }
 0x396   :  { %v2639_v32 = vmul.f32 6.2831855, %v2637_v56 }
 0x398   :  { %v2641_v16 = vsub.f32 %v2633_v63, %v2639_v32 }
 0x39a   :  { %v2643_v9 = vsel %vm52_vm4, %v2641_v16, %v6986_v23 }
 0x39b   :  { %v2646_v62 = vcombine.low %v2642_v41, %v2643_v9 }
 0x39d   :  { %2909 = vst.sshfl [vmem:[#allocation7] sm:$0x33 pattern:$0x76325410] %v2646_v62 }
 0x39e   :  { %3057 = shalt.err (!%p3054_p3)
}
 0x39f   :  { %s6987_s28 = sld [smem:[#allocation128_spill]] }
 0x3a5   :  { %s3058_s18 = scalar_lea.hbm %s6987_s28, 64 }
 0x3a6   :  { %p3059_p4 = scmp.ne.s32.totalorder %s6987_s28, %s3058_s18  ;;  %p3062_p5 = scmp.lt.u32.totalorder %s3058_s18, %s6987_s28 }
 0x3a8   :  { %p3064_p6 = pnand %p3062_p5, %p3059_p4 }
 0x3aa   :  { %3067 = shalt.err (!%p3064_p6)
}
 0x3ab   :  { %2665 = dma.vmem_to_hbm [thread:$0]  %s2663_s5, 64, %s6987_s28, [#allocation4]   ;;  %vm2628_vm2 = vcmask 1024  }
 0x3ac   :  { %s6988_s8 = sld [smem:[#allocation129_spill]] }
 0x40f   :  { %v2627_v17 = vpop.xlane.xlu0 %2626 }
 0x410   :  { %2629 = vst.msk [vmem:[%s6988_s8] sm:$0x3] %vm2628_vm2, %v2627_v17 }
 0x411   :  { %3072 = dma.done.wait [#allocation4], 64  }
 0x412   :  { %3073 = vsyncadd [#allocation4], 4294967232 }
 0x413   :  { %2673 = vsyncpa [#allocation3], 1 }
 0x414   :  { %2674 = vsyncpa [#allocation4], 1 }
 0x415   :  { %2675 = vsyncpa [#allocation5], 1 }

</bundles_post_ra>
